<compile_context>
chip_gen: v6e
topology: v6e:2x2x1
jax: 0.10.0
libtpu: 0.0.40
codegen_flags: <defaults>
</compile_context>

<pallas_src>
import functools

import jax
import jax.numpy as jnp
from jax.experimental import pallas as pl
from jax.experimental.pallas import tpu as pltpu


def _pads(kernel_size, dilation=1):
    """Replication-pad sizes exactly as in Interactor.__init__."""
    if kernel_size % 2 == 0:
        pad_l = dilation * (kernel_size - 2) // 2 + 1
        pad_r = dilation * kernel_size // 2 + 1
    else:
        pad_l = dilation * (kernel_size - 1) // 2 + 1
        pad_r = dilation * (kernel_size - 1) // 2 + 1
    return pad_l, pad_r


def _ceil8(n):
    return ((n + 7) // 8) * 8


def _pick_batch_blocks(m, batch, l):
    """Number of batch blocks per level.

    Keep the whole batch in one lane-dense block unless splitting (a) keeps the
    per-block lane width a multiple of 128 (unmasked stores / clean tiling) and
    (b) is needed to expose >=2 parallel grid steps for v7x's two TensorCores."""
    if m >= 2 or batch < 2:
        return 1
    for nb in (2, 4, 8):
        if batch % nb == 0 and ((batch // nb) * l) % 128 == 0:
            return nb
    return 1


def _vmem_limit_bytes(per_step_bytes):
    # Explicit VMEM budget (perf feedback): leave headroom for v7x's 64 MiB
    # physical VMEM; v5e/v6e have 128 MiB so this is conservative there.
    return int(min(48 * 1024 * 1024, max(32 * 1024 * 1024, 4 * per_step_bytes)))


# ----------------------------------------------------------------------------
# Paired conv chain: ReplicationPad(done by caller) -> Conv1d(K) -> LeakyReLU
# -> [dropout = identity] -> Conv1d(3) -> Tanh, for TWO subnets at once.
# ----------------------------------------------------------------------------
def _paired_conv_chain(x_pad, w1, b1, w2, b2, *, k1):
    """x_pad: (Dp, Nx) replication-padded sequences laid side by side along lanes
    (segments of length Lp each).  w1: (2Hp, K*Dp) tap-major paired conv1 weights
    (rows [0:Hp] = first subnet, [Hp:2Hp] = second), possibly bf16.  b1: (2Hp, 1)
    f32.  w2: (2Dp, 3*2Hp) block-diagonal per tap.  b2: (2Dp, 1) f32.

    Returns (2Dp, Nx - K - 1) f32.  Column n maps to (segment n // Lp, t = n % Lp)
    and is valid for t < L; other columns are don't-care garbage (never read)."""
    dp = x_pad.shape[0]
    nx = x_pad.shape[1]
    hp2 = w1.shape[0]
    mm_dtype = w1.dtype
    xm = x_pad.astype(mm_dtype)

    # Conv1d(kernel=K): K-step accumulating dot (no (K*C, L) sublane concat).
    nh = nx - k1 + 1
    h = jnp.dot(w1[:, 0:dp], xm[:, 0:nh], preferred_element_type=jnp.float32)
    for k in range(1, k1):
        h = h + jnp.dot(w1[:, k * dp:(k + 1) * dp], xm[:, k:k + nh],
                        preferred_element_type=jnp.float32)
    h = h + b1
    h = jnp.maximum(h, 0.01 * h)          # LeakyReLU(0.01); dropout = identity (eval)

    # Conv1d(kernel=3), block-diagonal paired weights, then Tanh.
    ny = nh - 2
    hm = h.astype(mm_dtype)
    y = jnp.dot(w2[:, 0:hp2], hm[:, 0:ny], preferred_element_type=jnp.float32)
    for j in range(1, 3):
        y = y + jnp.dot(w2[:, j * hp2:(j + 1) * hp2], hm[:, j:j + ny],
                        preferred_element_type=jnp.float32)
    return jnp.tanh(y + b2)


# ----------------------------------------------------------------------------
# Fused Interactor kernel: one (tree-node, batch-block) pair per grid step.
# All matmuls run with N = 2 * bt * Lp lanes (batch folded into the lane dim).
# ----------------------------------------------------------------------------
def _interactor_kernel(xe_ref, xo_ref, w1_ref, b1_ref, w2_ref, b2_ref, out_ref,
                       *, bt, seq_len, k1, pad_l, pad_r):
    dp = xe_ref.shape[1]
    lp = seq_len + pad_l + pad_r             # padded per-sequence segment length
    half = bt * lp                            # lanes holding the first operand
    nc = (bt - 1) * lp + seq_len              # width covering all valid columns

    xe = xe_ref[0]                            # (Dp, bt*L), f32 or bf16
    xo = xo_ref[0]

    def pad_segments(v, stride):
        # Per-sequence ReplicationPad1d((pad_l, pad_r)) on lane-flattened segments.
        parts = []
        for b in range(bt):
            seg = v[:, b * stride:b * stride + seq_len]
            parts.append(jnp.broadcast_to(seg[:, 0:1], (dp, pad_l)))
            parts.append(seg)
            parts.append(jnp.broadcast_to(seg[:, seq_len - 1:seq_len], (dp, pad_r)))
        return jnp.concatenate(parts, axis=1)                      # (Dp, bt*Lp)

    def compact(v):
        # Strided-core layout (segment stride Lp) -> contiguous (Dp, bt*L).
        if bt == 1:
            return v[:, 0:seq_len]
        return jnp.concatenate(
            [v[:, b * lp:b * lp + seq_len] for b in range(bt)], axis=1)

    pe = pad_segments(xe, seq_len)
    po = pad_segments(xo, seq_len)

    # ---- pair 1: phi(x_even) and psi(x_odd) in one conv chain ---------------
    y1 = _paired_conv_chain(jnp.concatenate([pe, po], axis=1),
                            w1_ref[0, 0], b1_ref[0, 0],
                            w2_ref[0, 0], b2_ref[0, 0], k1=k1)
    phi = y1[0:dp, 0:nc]                      # diagonal block: phi(x_even)
    psi = y1[dp:2 * dp, half:half + nc]       # diagonal block: psi(x_odd)

    xe_s = pe[:, pad_l:pad_l + nc].astype(jnp.float32)   # x_even aligned to cols
    xo_s = po[:, pad_l:pad_l + nc].astype(jnp.float32)
    d = xo_s * jnp.exp(phi)                   # d = x_odd  * exp(phi(x_even))
    c = xe_s * jnp.exp(psi)                   # c = x_even * exp(psi(x_odd))

    # ---- pair 2: U(d) and P(c) in one conv chain -----------------------------
    y2 = _paired_conv_chain(jnp.concatenate([pad_segments(d, lp),
                                             pad_segments(c, lp)], axis=1),
                            w1_ref[0, 1], b1_ref[0, 1],
                            w2_ref[0, 1], b2_ref[0, 1], k1=k1)
    u_d = y2[0:dp, 0:nc]                      # U(d)
    p_c = y2[dp:2 * dp, half:half + nc]       # P(c)

    out_ref[0] = compact(c + u_d).astype(out_ref.dtype)   # x_even_update
    out_ref[1] = compact(d - p_c).astype(out_ref.dtype)   # x_odd_update


def interactor_level(seqs, w1, b1, w2, b2, *, batch, kernel_size, use_bf16):
    """Apply all Interactor nodes of one tree depth in a single pallas_call.

    seqs: (M, Dp, B*S) channel-major, lane-flattened (per-batch segments of S).
    Returns (2M, Dp, B*(S//2)); node i's even child is row 2i, odd child 2i+1."""
    m, dp, n = seqs.shape
    s = n // batch
    l = s // 2
    hp2 = w1.shape[2]
    dp2 = w2.shape[2]
    k1 = kernel_size
    pad_l, pad_r = _pads(k1)
    assert pad_l + pad_r == k1 + 1, "kernel assumes dilation == 1"

    # Even/odd split: stride-2 lane slice on the flattened (batch, time) lanes
    # (valid because every per-batch segment length is even) — no transposes.
    xe = seqs[:, :, 0::2]                                  # (M, Dp, B*L)
    xo = seqs[:, :, 1::2]

    nb = _pick_batch_blocks(m, batch, l)
    bt = batch // nb
    lp = l + pad_l + pad_r
    nx = 2 * bt * lp

    mm_dtype = jnp.bfloat16 if use_bf16 else jnp.float32
    xe = xe.astype(mm_dtype)
    xo = xo.astype(mm_dtype)
    w1c = w1.astype(mm_dtype)
    w2c = w2.astype(mm_dtype)

    kern = functools.partial(_interactor_kernel, bt=bt, seq_len=l, k1=k1,
                             pad_l=pad_l, pad_r=pad_r)

    flops = 2 * m * nb * nx * (2 * k1 * hp2 * dp + 6 * dp2 * hp2)
    cost = pl.CostEstimate(
        flops=int(flops),
        transcendentals=int(m * nb * nx * (dp + dp2)),
        bytes_accessed=int(2 * xe.size * xe.dtype.itemsize
                           + 8 * m * dp * batch * l
                           + (w1c.size + w2c.size) * w1c.dtype.itemsize
                           + 4 * (b1.size + b2.size)))

    est_step_bytes = (6 * dp * bt * l * 4
                      + 16 * max(dp2, hp2) * nx * 4
                      + (w1c.size + w2c.size) * w1c.dtype.itemsize // m)

    out = pl.pallas_call(
        kern,
        out_shape=jax.ShapeDtypeStruct((2 * m, dp, batch * l), jnp.float32),
        grid=(m, nb),
        in_specs=[
            pl.BlockSpec((1, dp, bt * l), lambda i, j: (i, 0, j)),        # x_even
            pl.BlockSpec((1, dp, bt * l), lambda i, j: (i, 0, j)),        # x_odd
            pl.BlockSpec((1, 2, hp2, w1.shape[3]), lambda i, j: (i, 0, 0, 0)),
            pl.BlockSpec((1, 2, hp2, 1), lambda i, j: (i, 0, 0, 0)),
            pl.BlockSpec((1, 2, dp2, w2.shape[3]), lambda i, j: (i, 0, 0, 0)),
            pl.BlockSpec((1, 2, dp2, 1), lambda i, j: (i, 0, 0, 0)),
        ],
        # Child packing folded into the output layout: block (2, Dp, bt*L) at
        # block-row i covers rows (2i, 2i+1) = (even child, odd child).
        out_specs=pl.BlockSpec((2, dp, bt * l), lambda i, j: (i, 0, j)),
        compiler_params=pltpu.CompilerParams(
            dimension_semantics=("parallel", "parallel"),
            vmem_limit_bytes=_vmem_limit_bytes(est_step_bytes)),
        cost_estimate=cost,
    )(xe, xo, w1c, b1, w2c, b2)
    return out


# ----------------------------------------------------------------------------
# Fused residual-add + projection1: one lane-dense (O,T) @ (T, B*Dp) matmul.
# ----------------------------------------------------------------------------
def _residual_projection_kernel(t_ref, r_ref, w_ref, o_ref):
    y = t_ref[...].astype(jnp.float32) + r_ref[...].astype(jnp.float32)   # (T, B*Dp)
    o_ref[...] = jnp.dot(w_ref[...], y, preferred_element_type=jnp.float32)


def residual_projection(tree_tm, x_tm, w):
    t, bd = tree_tm.shape
    o = w.shape[0]
    return pl.pallas_call(
        _residual_projection_kernel,
        out_shape=jax.ShapeDtypeStruct((o, bd), jnp.float32),
        grid=(1,),
        in_specs=[pl.BlockSpec((t, bd), lambda i: (0, 0)),
                  pl.BlockSpec((t, bd), lambda i: (0, 0)),
                  pl.BlockSpec((o, t), lambda i: (0, 0))],
        out_specs=pl.BlockSpec((o, bd), lambda i: (0, 0)),
        compiler_params=pltpu.CompilerParams(dimension_semantics=("arbitrary",)),
    )(tree_tm, x_tm, w)


# ----------------------------------------------------------------------------
# SCINet forward: BFS over the tree, one fused pallas_call per depth.
# ----------------------------------------------------------------------------
def scinet_forward(x, params, *, num_levels, kernel_size, use_bf16=False):
    """x: (B, input_len, D) -> (B, output_len, D)."""
    b, t, d = x.shape
    assert t % (2 ** num_levels) == 0
    dp = params["tree"][0][2].shape[2] // 2          # padded channel count (x8)

    # Channel-pad to Dp and go channel-major / lane-flattened once up front
    # (this matches the permute the Torch Interactor does anyway).
    xp = jnp.pad(x, ((0, 0), (0, 0), (0, dp - d)))                   # (B, T, Dp)
    seqs = jnp.transpose(xp, (2, 0, 1)).reshape(1, dp, b * t)        # (1, Dp, B*T)

    for depth in range(num_levels):
        w1, b1, w2, b2 = params["tree"][depth]
        seqs = interactor_level(seqs, w1, b1, w2, b2, batch=b,
                                kernel_size=kernel_size, use_bf16=use_bf16)

    # Bottom-up zip_up_the_pants: interleave even/odd results along time
    # (pure layout plumbing on the channel-major flattened arrays).
    res = seqs                                        # (2^L, Dp, B*(T/2^L))
    for _ in range(num_levels):
        m2 = res.shape[0] // 2
        lc = res.shape[2] // b
        ev = res[0::2].reshape(m2, dp, b, lc)
        od = res[1::2].reshape(m2, dp, b, lc)
        res = jnp.stack([ev, od], axis=4).reshape(m2, dp, b * 2 * lc)
    tree_out = res[0]                                 # (Dp, B*T)

    # x = blocks1(x) + res1 ; x = projection1(x)  — one lane-dense matmul.
    tree_tm = jnp.transpose(tree_out.reshape(dp, b, t), (2, 1, 0)).reshape(t, b * dp)
    x_tm = jnp.transpose(xp, (1, 0, 2)).reshape(t, b * dp)
    out_flat = residual_projection(tree_tm, x_tm, params["proj_w"])   # (O, B*Dp)
    o = params["proj_w"].shape[0]
    return jnp.transpose(out_flat.reshape(o, b, dp), (1, 0, 2))[:, :, :d]


# ----------------------------------------------------------------------------
# Parameter construction (plain JAX glue) + paired / channel-padded packing.
# ----------------------------------------------------------------------------
def _pack_pair(sub_a, sub_b, dp, hp, k1):
    """Pack two subnets ((phi,psi) or (U,P)) into MXU-friendly paired weights."""
    h = sub_a["w1"].shape[0]
    d = sub_a["w1"].shape[1]
    hp2, dp2 = 2 * hp, 2 * dp
    w1 = jnp.zeros((hp2, k1 * dp), jnp.float32)
    b1 = jnp.zeros((hp2, 1), jnp.float32)
    w2 = jnp.zeros((dp2, 3 * hp2), jnp.float32)
    b2 = jnp.zeros((dp2, 1), jnp.float32)
    for k in range(k1):
        w1 = w1.at[:h, k * dp:k * dp + d].set(sub_a["w1"][:, :, k])
        w1 = w1.at[hp:hp + h, k * dp:k * dp + d].set(sub_b["w1"][:, :, k])
    b1 = b1.at[:h, 0].set(sub_a["b1"])
    b1 = b1.at[hp:hp + h, 0].set(sub_b["b1"])
    for j in range(3):
        w2 = w2.at[:d, j * hp2:j * hp2 + h].set(sub_a["w2"][:, :, j])
        w2 = w2.at[dp:dp + d, j * hp2 + hp:j * hp2 + hp + h].set(sub_b["w2"][:, :, j])
    b2 = b2.at[:d, 0].set(sub_a["b2"])
    b2 = b2.at[dp:dp + d, 0].set(sub_b["b2"])
    return w1, b1, w2, b2


def make_scinet_params(key, *, input_dim, input_len, output_len, num_levels,
                       kernel_size, hid_size=1):
    d = input_dim
    h = int(d * hid_size)
    dp, hp = _ceil8(d), _ceil8(h)

    tree_nodes = []            # raw conv-layout weights (used by the reference)
    for depth in range(num_levels):
        nodes = []
        for _ in range(2 ** depth):
            subnets = []
            for _ in range(4):                    # order: phi, psi, U, P
                key, k1, k2, k3, k4 = jax.random.split(key, 5)
                subnets.append(dict(
                    w1=0.3 * jax.random.normal(k1, (h, d, kernel_size), jnp.float32),
                    b1=0.1 * jax.random.normal(k2, (h,), jnp.float32),
                    w2=0.3 * jax.random.normal(k3, (d, h, 3), jnp.float32),
                    b2=0.1 * jax.random.normal(k4, (d,), jnp.float32),
                ))
            nodes.append(subnets)
        tree_nodes.append(nodes)
    key, kp = jax.random.split(key)
    proj_w = 0.3 * jax.random.normal(kp, (output_len, input_len), jnp.float32)

    tree_packed = []
    for nodes in tree_nodes:
        per_node = []
        for sn in nodes:
            pair0 = _pack_pair(sn[0], sn[1], dp, hp, kernel_size)   # (phi, psi)
            pair1 = _pack_pair(sn[2], sn[3], dp, hp, kernel_size)   # (U, P)
            per_node.append(tuple(jnp.stack([a, bb]) for a, bb in zip(pair0, pair1)))
        w1 = jnp.stack([pn[0] for pn in per_node])    # (M, 2, 2Hp, K*Dp)
        b1 = jnp.stack([pn[1] for pn in per_node])    # (M, 2, 2Hp, 1)
        w2 = jnp.stack([pn[2] for pn in per_node])    # (M, 2, 2Dp, 3*2Hp)
        b2 = jnp.stack([pn[3] for pn in per_node])    # (M, 2, 2Dp, 1)
        tree_packed.append((w1, b1, w2, b2))

    return dict(tree_nodes=tree_nodes, tree=tree_packed, proj_w=proj_w)


# ----------------------------------------------------------------------------
# Pure-JAX reference (mirrors the PyTorch recursion) for correctness check.
# ----------------------------------------------------------------------------
def _ref_conv_block(u, p, pad_l, pad_r):                      # u: (B, C, L)
    left = jnp.broadcast_to(u[:, :, 0:1], u.shape[:2] + (pad_l,))
    right = jnp.broadcast_to(u[:, :, -1:], u.shape[:2] + (pad_r,))
    up = jnp.concatenate([left, u, right], axis=2)
    hh = jax.lax.conv_general_dilated(
        up, p["w1"], (1,), "VALID", dimension_numbers=("NCH", "OIH", "NCH"))
    hh = hh + p["b1"][None, :, None]
    hh = jnp.maximum(hh, 0.01 * hh)
    y = jax.lax.conv_general_dilated(
        hh, p["w2"], (1,), "VALID", dimension_numbers=("NCH", "OIH", "NCH"))
    y = y + p["b2"][None, :, None]
    return jnp.tanh(y)


def _ref_interactor(x, subnets, pad_l, pad_r):                # x: (B, S, D)
    xe = jnp.transpose(x[:, 0::2, :], (0, 2, 1))
    xo = jnp.transpose(x[:, 1::2, :], (0, 2, 1))
    d = xo * jnp.exp(_ref_conv_block(xe, subnets[0], pad_l, pad_r))
    c = xe * jnp.exp(_ref_conv_block(xo, subnets[1], pad_l, pad_r))
    e_up = c + _ref_conv_block(d, subnets[2], pad_l, pad_r)
    o_up = d - _ref_conv_block(c, subnets[3], pad_l, pad_r)
    return jnp.transpose(e_up, (0, 2, 1)), jnp.transpose(o_up, (0, 2, 1))


def _ref_zip(even, odd):
    b, l, d = even.shape
    return jnp.stack([even, odd], axis=2).reshape(b, 2 * l, d)


def _ref_tree(x, tree_nodes, depth, idx, num_levels, pad_l, pad_r):
    e_up, o_up = _ref_interactor(x, tree_nodes[depth][idx], pad_l, pad_r)
    if depth == num_levels - 1:
        return _ref_zip(e_up, o_up)
    return _ref_zip(
        _ref_tree(e_up, tree_nodes, depth + 1, 2 * idx, num_levels, pad_l, pad_r),
        _ref_tree(o_up, tree_nodes, depth + 1, 2 * idx + 1, num_levels, pad_l, pad_r))


def scinet_forward_ref(x, params, *, num_levels, kernel_size):
    pad_l, pad_r = _pads(kernel_size)
    tree_out = _ref_tree(x, params["tree_nodes"], 0, 0, num_levels, pad_l, pad_r)
    y = tree_out + x
    return jnp.einsum("ot,btd->bod", params["proj_w"], y)


# ----------------------------------------------------------------------------
if __name__ == "__main__":
    key = jax.random.PRNGKey(0)
    k_x, k_p = jax.random.split(key)

    batch, input_dim, input_len = 2, 4, 16
    output_len, num_levels, kernel_size = 8, 3, 5

    x = jax.random.normal(k_x, (batch, input_len, input_dim), jnp.float32)
    params = make_scinet_params(
        k_p, input_dim=input_dim, input_len=input_len, output_len=output_len,
        num_levels=num_levels, kernel_size=kernel_size, hid_size=1)

    fwd = jax.jit(functools.partial(
        scinet_forward, num_levels=num_levels, kernel_size=kernel_size,
        use_bf16=False))
    out = jax.block_until_ready(fwd(x, params))

    ref = jax.block_until_ready(
        scinet_forward_ref(x, params, num_levels=num_levels,
                           kernel_size=kernel_size))
    assert out.shape == (batch, output_len, input_dim), out.shape
    max_err = float(jnp.max(jnp.abs(out - ref)))
    assert max_err < 1e-3, max_err

    # bf16 matmul-operand path (perf feedback): exp gating amplifies bf16
    # rounding across the levels, so check with a loose relative tolerance.
    fwd_bf16 = jax.jit(functools.partial(
        scinet_forward, num_levels=num_levels, kernel_size=kernel_size,
        use_bf16=True))
    out_bf16 = jax.block_until_ready(fwd_bf16(x, params))
    denom = max(1.0, float(jnp.max(jnp.abs(ref))))
    rel_err_bf16 = float(jnp.max(jnp.abs(out_bf16 - ref))) / denom
    assert rel_err_bf16 < 0.1, rel_err_bf16

    print("KERNEL_OK")
</pallas_src>

<mosaic_0001>
module attributes {stable_mosaic.version = 11 : i64} {
  func.func @_interactor_kernel(%arg0: i32, %arg1: i32, %arg2: memref<1x8x16xf32, #tpu.memory_space<vmem>>, %arg3: memref<1x8x16xf32, #tpu.memory_space<vmem>>, %arg4: memref<1x2x16x40xf32, #tpu.memory_space<vmem>>, %arg5: memref<1x2x16x1xf32, #tpu.memory_space<vmem>>, %arg6: memref<1x2x16x48xf32, #tpu.memory_space<vmem>>, %arg7: memref<1x2x16x1xf32, #tpu.memory_space<vmem>>, %arg8: memref<2x8x16xf32, #tpu.memory_space<vmem>>) attributes {dimension_semantics = [#tpu.dimension_semantics<parallel>, #tpu.dimension_semantics<parallel>], iteration_bounds = array<i64: 1, 1>, scalar_prefetch = 0 : i64, scratch_operands = 0 : i64, tpu.core_type = #tpu.core_type<tc>, window_params = [{transform_indices = @transform_0, window_bounds = array<i64: 1, 8, 16>}, {transform_indices = @transform_1, window_bounds = array<i64: 1, 8, 16>}, {transform_indices = @transform_2, window_bounds = array<i64: 1, 2, 16, 40>}, {transform_indices = @transform_3, window_bounds = array<i64: 1, 2, 16, 1>}, {transform_indices = @transform_4, window_bounds = array<i64: 1, 2, 16, 48>}, {transform_indices = @transform_5, window_bounds = array<i64: 1, 2, 16, 1>}, {transform_indices = @transform_6, window_bounds = array<i64: 2, 8, 16>}]} {
    %c0 = arith.constant 0 : index
    %c0_0 = arith.constant 0 : index
    %c0_1 = arith.constant 0 : index
    %0 = vector.load %arg2[%c0, %c0_0, %c0_1] : memref<1x8x16xf32, #tpu.memory_space<vmem>>, vector<1x8x16xf32>
    %1 = vector.shape_cast %0 : vector<1x8x16xf32> to vector<8x16xf32>
    %c0_2 = arith.constant 0 : index
    %c0_3 = arith.constant 0 : index
    %c0_4 = arith.constant 0 : index
    %2 = vector.load %arg3[%c0_2, %c0_3, %c0_4] : memref<1x8x16xf32, #tpu.memory_space<vmem>>, vector<1x8x16xf32>
    %3 = vector.shape_cast %2 : vector<1x8x16xf32> to vector<8x16xf32>
    %4 = vector.extract_strided_slice %1 {offsets = [0, 0], sizes = [8, 8], strides = [1, 1]} : vector<8x16xf32> to vector<8x8xf32>
    %5 = vector.extract_strided_slice %4 {offsets = [0, 0], sizes = [8, 1], strides = [1, 1]} : vector<8x8xf32> to vector<8x1xf32>
    %6 = vector.shape_cast %5 : vector<8x1xf32> to vector<8x1xf32>
    %7 = vector.broadcast %6 : vector<8x1xf32> to vector<8x3xf32>
    %8 = vector.extract_strided_slice %4 {offsets = [0, 7], sizes = [8, 1], strides = [1, 1]} : vector<8x8xf32> to vector<8x1xf32>
    %9 = vector.shape_cast %8 : vector<8x1xf32> to vector<8x1xf32>
    %10 = vector.broadcast %9 : vector<8x1xf32> to vector<8x3xf32>
    %11 = vector.extract_strided_slice %1 {offsets = [0, 8], sizes = [8, 8], strides = [1, 1]} : vector<8x16xf32> to vector<8x8xf32>
    %12 = vector.extract_strided_slice %11 {offsets = [0, 0], sizes = [8, 1], strides = [1, 1]} : vector<8x8xf32> to vector<8x1xf32>
    %13 = vector.shape_cast %12 : vector<8x1xf32> to vector<8x1xf32>
    %14 = vector.broadcast %13 : vector<8x1xf32> to vector<8x3xf32>
    %15 = vector.extract_strided_slice %11 {offsets = [0, 7], sizes = [8, 1], strides = [1, 1]} : vector<8x8xf32> to vector<8x1xf32>
    %16 = vector.shape_cast %15 : vector<8x1xf32> to vector<8x1xf32>
    %17 = vector.broadcast %16 : vector<8x1xf32> to vector<8x3xf32>
    %18 = tpu.concatenate %7, %4, %10, %14, %11, %17 in 1 : vector<8x3xf32>, vector<8x8xf32>, vector<8x3xf32>, vector<8x3xf32>, vector<8x8xf32>, vector<8x3xf32> -> vector<8x28xf32>
    %19 = vector.extract_strided_slice %3 {offsets = [0, 0], sizes = [8, 8], strides = [1, 1]} : vector<8x16xf32> to vector<8x8xf32>
    %20 = vector.extract_strided_slice %19 {offsets = [0, 0], sizes = [8, 1], strides = [1, 1]} : vector<8x8xf32> to vector<8x1xf32>
    %21 = vector.shape_cast %20 : vector<8x1xf32> to vector<8x1xf32>
    %22 = vector.broadcast %21 : vector<8x1xf32> to vector<8x3xf32>
    %23 = vector.extract_strided_slice %19 {offsets = [0, 7], sizes = [8, 1], strides = [1, 1]} : vector<8x8xf32> to vector<8x1xf32>
    %24 = vector.shape_cast %23 : vector<8x1xf32> to vector<8x1xf32>
    %25 = vector.broadcast %24 : vector<8x1xf32> to vector<8x3xf32>
    %26 = vector.extract_strided_slice %3 {offsets = [0, 8], sizes = [8, 8], strides = [1, 1]} : vector<8x16xf32> to vector<8x8xf32>
    %27 = vector.extract_strided_slice %26 {offsets = [0, 0], sizes = [8, 1], strides = [1, 1]} : vector<8x8xf32> to vector<8x1xf32>
    %28 = vector.shape_cast %27 : vector<8x1xf32> to vector<8x1xf32>
    %29 = vector.broadcast %28 : vector<8x1xf32> to vector<8x3xf32>
    %30 = vector.extract_strided_slice %26 {offsets = [0, 7], sizes = [8, 1], strides = [1, 1]} : vector<8x8xf32> to vector<8x1xf32>
    %31 = vector.shape_cast %30 : vector<8x1xf32> to vector<8x1xf32>
    %32 = vector.broadcast %31 : vector<8x1xf32> to vector<8x3xf32>
    %33 = tpu.concatenate %22, %19, %25, %29, %26, %32 in 1 : vector<8x3xf32>, vector<8x8xf32>, vector<8x3xf32>, vector<8x3xf32>, vector<8x8xf32>, vector<8x3xf32> -> vector<8x28xf32>
    %34 = tpu.concatenate %18, %33 in 1 : vector<8x28xf32>, vector<8x28xf32> -> vector<8x56xf32>
    %c0_5 = arith.constant 0 : index
    %c0_6 = arith.constant 0 : index
    %c0_7 = arith.constant 0 : index
    %c0_8 = arith.constant 0 : index
    %35 = vector.load %arg4[%c0_5, %c0_6, %c0_7, %c0_8] : memref<1x2x16x40xf32, #tpu.memory_space<vmem>>, vector<1x1x16x40xf32>
    %36 = vector.shape_cast %35 : vector<1x1x16x40xf32> to vector<16x40xf32>
    %c0_9 = arith.constant 0 : index
    %c0_10 = arith.constant 0 : index
    %c0_11 = arith.constant 0 : index
    %c0_12 = arith.constant 0 : index
    %37 = vector.load %arg5[%c0_9, %c0_10, %c0_11, %c0_12] : memref<1x2x16x1xf32, #tpu.memory_space<vmem>>, vector<1x1x16x1xf32>
    %38 = vector.shape_cast %37 : vector<1x1x16x1xf32> to vector<16x1xf32>
    %c0_13 = arith.constant 0 : index
    %c0_14 = arith.constant 0 : index
    %c0_15 = arith.constant 0 : index
    %c0_16 = arith.constant 0 : index
    %39 = vector.load %arg6[%c0_13, %c0_14, %c0_15, %c0_16] : memref<1x2x16x48xf32, #tpu.memory_space<vmem>>, vector<1x1x16x48xf32>
    %40 = vector.shape_cast %39 : vector<1x1x16x48xf32> to vector<16x48xf32>
    %c0_17 = arith.constant 0 : index
    %c0_18 = arith.constant 0 : index
    %c0_19 = arith.constant 0 : index
    %c0_20 = arith.constant 0 : index
    %41 = vector.load %arg7[%c0_17, %c0_18, %c0_19, %c0_20] : memref<1x2x16x1xf32, #tpu.memory_space<vmem>>, vector<1x1x16x1xf32>
    %42 = vector.shape_cast %41 : vector<1x1x16x1xf32> to vector<16x1xf32>
    %43 = vector.extract_strided_slice %36 {offsets = [0, 0], sizes = [16, 8], strides = [1, 1]} : vector<16x40xf32> to vector<16x8xf32>
    %44 = vector.extract_strided_slice %34 {offsets = [0, 0], sizes = [8, 52], strides = [1, 1]} : vector<8x56xf32> to vector<8x52xf32>
    %cst = arith.constant dense<0.000000e+00> : vector<16x52xf32>
    %45 = tpu.matmul %43, %44, %cst {dimension_numbers = #tpu.dot_dimension_numbers<[1], [0], [0], [1], [0, 0, 1, 1], [], []>} : vector<16x8xf32>, vector<8x52xf32>, vector<16x52xf32> -> vector<16x52xf32>
    %46 = vector.extract_strided_slice %36 {offsets = [0, 8], sizes = [16, 8], strides = [1, 1]} : vector<16x40xf32> to vector<16x8xf32>
    %47 = vector.extract_strided_slice %34 {offsets = [0, 1], sizes = [8, 52], strides = [1, 1]} : vector<8x56xf32> to vector<8x52xf32>
    %cst_21 = arith.constant dense<0.000000e+00> : vector<16x52xf32>
    %48 = tpu.matmul %46, %47, %cst_21 {dimension_numbers = #tpu.dot_dimension_numbers<[1], [0], [0], [1], [0, 0, 1, 1], [], []>} : vector<16x8xf32>, vector<8x52xf32>, vector<16x52xf32> -> vector<16x52xf32>
    %49 = arith.addf %45, %48 : vector<16x52xf32>
    %50 = vector.extract_strided_slice %36 {offsets = [0, 16], sizes = [16, 8], strides = [1, 1]} : vector<16x40xf32> to vector<16x8xf32>
    %51 = vector.extract_strided_slice %34 {offsets = [0, 2], sizes = [8, 52], strides = [1, 1]} : vector<8x56xf32> to vector<8x52xf32>
    %cst_22 = arith.constant dense<0.000000e+00> : vector<16x52xf32>
    %52 = tpu.matmul %50, %51, %cst_22 {dimension_numbers = #tpu.dot_dimension_numbers<[1], [0], [0], [1], [0, 0, 1, 1], [], []>} : vector<16x8xf32>, vector<8x52xf32>, vector<16x52xf32> -> vector<16x52xf32>
    %53 = arith.addf %49, %52 : vector<16x52xf32>
    %54 = vector.extract_strided_slice %36 {offsets = [0, 24], sizes = [16, 8], strides = [1, 1]} : vector<16x40xf32> to vector<16x8xf32>
    %55 = vector.extract_strided_slice %34 {offsets = [0, 3], sizes = [8, 52], strides = [1, 1]} : vector<8x56xf32> to vector<8x52xf32>
    %cst_23 = arith.constant dense<0.000000e+00> : vector<16x52xf32>
    %56 = tpu.matmul %54, %55, %cst_23 {dimension_numbers = #tpu.dot_dimension_numbers<[1], [0], [0], [1], [0, 0, 1, 1], [], []>} : vector<16x8xf32>, vector<8x52xf32>, vector<16x52xf32> -> vector<16x52xf32>
    %57 = arith.addf %53, %56 : vector<16x52xf32>
    %58 = vector.extract_strided_slice %36 {offsets = [0, 32], sizes = [16, 8], strides = [1, 1]} : vector<16x40xf32> to vector<16x8xf32>
    %59 = vector.extract_strided_slice %34 {offsets = [0, 4], sizes = [8, 52], strides = [1, 1]} : vector<8x56xf32> to vector<8x52xf32>
    %cst_24 = arith.constant dense<0.000000e+00> : vector<16x52xf32>
    %60 = tpu.matmul %58, %59, %cst_24 {dimension_numbers = #tpu.dot_dimension_numbers<[1], [0], [0], [1], [0, 0, 1, 1], [], []>} : vector<16x8xf32>, vector<8x52xf32>, vector<16x52xf32> -> vector<16x52xf32>
    %61 = arith.addf %57, %60 : vector<16x52xf32>
    %62 = vector.broadcast %38 : vector<16x1xf32> to vector<16x52xf32>
    %63 = arith.addf %61, %62 : vector<16x52xf32>
    %cst_25 = arith.constant 0.00999999977 : f32
    %64 = vector.broadcast %cst_25 : f32 to vector<16x52xf32>
    %65 = arith.mulf %64, %63 : vector<16x52xf32>
    %66 = arith.maximumf %63, %65 : vector<16x52xf32>
    %67 = vector.extract_strided_slice %40 {offsets = [0, 0], sizes = [16, 16], strides = [1, 1]} : vector<16x48xf32> to vector<16x16xf32>
    %68 = vector.extract_strided_slice %66 {offsets = [0, 0], sizes = [16, 50], strides = [1, 1]} : vector<16x52xf32> to vector<16x50xf32>
    %cst_26 = arith.constant dense<0.000000e+00> : vector<16x50xf32>
    %69 = tpu.matmul %67, %68, %cst_26 {dimension_numbers = #tpu.dot_dimension_numbers<[1], [0], [0], [1], [0, 0, 1, 1], [], []>} : vector<16x16xf32>, vector<16x50xf32>, vector<16x50xf32> -> vector<16x50xf32>
    %70 = vector.extract_strided_slice %40 {offsets = [0, 16], sizes = [16, 16], strides = [1, 1]} : vector<16x48xf32> to vector<16x16xf32>
    %71 = vector.extract_strided_slice %66 {offsets = [0, 1], sizes = [16, 50], strides = [1, 1]} : vector<16x52xf32> to vector<16x50xf32>
    %cst_27 = arith.constant dense<0.000000e+00> : vector<16x50xf32>
    %72 = tpu.matmul %70, %71, %cst_27 {dimension_numbers = #tpu.dot_dimension_numbers<[1], [0], [0], [1], [0, 0, 1, 1], [], []>} : vector<16x16xf32>, vector<16x50xf32>, vector<16x50xf32> -> vector<16x50xf32>
    %73 = arith.addf %69, %72 : vector<16x50xf32>
    %74 = vector.extract_strided_slice %40 {offsets = [0, 32], sizes = [16, 16], strides = [1, 1]} : vector<16x48xf32> to vector<16x16xf32>
    %75 = vector.extract_strided_slice %66 {offsets = [0, 2], sizes = [16, 50], strides = [1, 1]} : vector<16x52xf32> to vector<16x50xf32>
    %cst_28 = arith.constant dense<0.000000e+00> : vector<16x50xf32>
    %76 = tpu.matmul %74, %75, %cst_28 {dimension_numbers = #tpu.dot_dimension_numbers<[1], [0], [0], [1], [0, 0, 1, 1], [], []>} : vector<16x16xf32>, vector<16x50xf32>, vector<16x50xf32> -> vector<16x50xf32>
    %77 = arith.addf %73, %76 : vector<16x50xf32>
    %78 = vector.broadcast %42 : vector<16x1xf32> to vector<16x50xf32>
    %79 = arith.addf %77, %78 : vector<16x50xf32>
    %80 = math.tanh %79 : vector<16x50xf32>
    %81 = vector.extract_strided_slice %80 {offsets = [0, 0], sizes = [8, 22], strides = [1, 1]} : vector<16x50xf32> to vector<8x22xf32>
    %82 = vector.extract_strided_slice %80 {offsets = [8, 28], sizes = [8, 22], strides = [1, 1]} : vector<16x50xf32> to vector<8x22xf32>
    %83 = vector.extract_strided_slice %18 {offsets = [0, 3], sizes = [8, 22], strides = [1, 1]} : vector<8x28xf32> to vector<8x22xf32>
    %84 = vector.extract_strided_slice %33 {offsets = [0, 3], sizes = [8, 22], strides = [1, 1]} : vector<8x28xf32> to vector<8x22xf32>
    %85 = math.exp %81 : vector<8x22xf32>
    %86 = arith.mulf %84, %85 : vector<8x22xf32>
    %87 = math.exp %82 : vector<8x22xf32>
    %88 = arith.mulf %83, %87 : vector<8x22xf32>
    %89 = vector.extract_strided_slice %86 {offsets = [0, 0], sizes = [8, 8], strides = [1, 1]} : vector<8x22xf32> to vector<8x8xf32>
    %90 = vector.extract_strided_slice %89 {offsets = [0, 0], sizes = [8, 1], strides = [1, 1]} : vector<8x8xf32> to vector<8x1xf32>
    %91 = vector.shape_cast %90 : vector<8x1xf32> to vector<8x1xf32>
    %92 = vector.broadcast %91 : vector<8x1xf32> to vector<8x3xf32>
    %93 = vector.extract_strided_slice %89 {offsets = [0, 7], sizes = [8, 1], strides = [1, 1]} : vector<8x8xf32> to vector<8x1xf32>
    %94 = vector.shape_cast %93 : vector<8x1xf32> to vector<8x1xf32>
    %95 = vector.broadcast %94 : vector<8x1xf32> to vector<8x3xf32>
    %96 = vector.extract_strided_slice %86 {offsets = [0, 14], sizes = [8, 8], strides = [1, 1]} : vector<8x22xf32> to vector<8x8xf32>
    %97 = vector.extract_strided_slice %96 {offsets = [0, 0], sizes = [8, 1], strides = [1, 1]} : vector<8x8xf32> to vector<8x1xf32>
    %98 = vector.shape_cast %97 : vector<8x1xf32> to vector<8x1xf32>
    %99 = vector.broadcast %98 : vector<8x1xf32> to vector<8x3xf32>
    %100 = vector.extract_strided_slice %96 {offsets = [0, 7], sizes = [8, 1], strides = [1, 1]} : vector<8x8xf32> to vector<8x1xf32>
    %101 = vector.shape_cast %100 : vector<8x1xf32> to vector<8x1xf32>
    %102 = vector.broadcast %101 : vector<8x1xf32> to vector<8x3xf32>
    %103 = tpu.concatenate %92, %89, %95, %99, %96, %102 in 1 : vector<8x3xf32>, vector<8x8xf32>, vector<8x3xf32>, vector<8x3xf32>, vector<8x8xf32>, vector<8x3xf32> -> vector<8x28xf32>
    %104 = vector.extract_strided_slice %88 {offsets = [0, 0], sizes = [8, 8], strides = [1, 1]} : vector<8x22xf32> to vector<8x8xf32>
    %105 = vector.extract_strided_slice %104 {offsets = [0, 0], sizes = [8, 1], strides = [1, 1]} : vector<8x8xf32> to vector<8x1xf32>
    %106 = vector.shape_cast %105 : vector<8x1xf32> to vector<8x1xf32>
    %107 = vector.broadcast %106 : vector<8x1xf32> to vector<8x3xf32>
    %108 = vector.extract_strided_slice %104 {offsets = [0, 7], sizes = [8, 1], strides = [1, 1]} : vector<8x8xf32> to vector<8x1xf32>
    %109 = vector.shape_cast %108 : vector<8x1xf32> to vector<8x1xf32>
    %110 = vector.broadcast %109 : vector<8x1xf32> to vector<8x3xf32>
    %111 = vector.extract_strided_slice %88 {offsets = [0, 14], sizes = [8, 8], strides = [1, 1]} : vector<8x22xf32> to vector<8x8xf32>
    %112 = vector.extract_strided_slice %111 {offsets = [0, 0], sizes = [8, 1], strides = [1, 1]} : vector<8x8xf32> to vector<8x1xf32>
    %113 = vector.shape_cast %112 : vector<8x1xf32> to vector<8x1xf32>
    %114 = vector.broadcast %113 : vector<8x1xf32> to vector<8x3xf32>
    %115 = vector.extract_strided_slice %111 {offsets = [0, 7], sizes = [8, 1], strides = [1, 1]} : vector<8x8xf32> to vector<8x1xf32>
    %116 = vector.shape_cast %115 : vector<8x1xf32> to vector<8x1xf32>
    %117 = vector.broadcast %116 : vector<8x1xf32> to vector<8x3xf32>
    %118 = tpu.concatenate %107, %104, %110, %114, %111, %117 in 1 : vector<8x3xf32>, vector<8x8xf32>, vector<8x3xf32>, vector<8x3xf32>, vector<8x8xf32>, vector<8x3xf32> -> vector<8x28xf32>
    %119 = tpu.concatenate %103, %118 in 1 : vector<8x28xf32>, vector<8x28xf32> -> vector<8x56xf32>
    %c0_29 = arith.constant 0 : index
    %c1 = arith.constant 1 : index
    %c0_30 = arith.constant 0 : index
    %c0_31 = arith.constant 0 : index
    %120 = vector.load %arg4[%c0_29, %c1, %c0_30, %c0_31] : memref<1x2x16x40xf32, #tpu.memory_space<vmem>>, vector<1x1x16x40xf32>
    %121 = vector.shape_cast %120 : vector<1x1x16x40xf32> to vector<16x40xf32>
    %c0_32 = arith.constant 0 : index
    %c1_33 = arith.constant 1 : index
    %c0_34 = arith.constant 0 : index
    %c0_35 = arith.constant 0 : index
    %122 = vector.load %arg5[%c0_32, %c1_33, %c0_34, %c0_35] : memref<1x2x16x1xf32, #tpu.memory_space<vmem>>, vector<1x1x16x1xf32>
    %123 = vector.shape_cast %122 : vector<1x1x16x1xf32> to vector<16x1xf32>
    %c0_36 = arith.constant 0 : index
    %c1_37 = arith.constant 1 : index
    %c0_38 = arith.constant 0 : index
    %c0_39 = arith.constant 0 : index
    %124 = vector.load %arg6[%c0_36, %c1_37, %c0_38, %c0_39] : memref<1x2x16x48xf32, #tpu.memory_space<vmem>>, vector<1x1x16x48xf32>
    %125 = vector.shape_cast %124 : vector<1x1x16x48xf32> to vector<16x48xf32>
    %c0_40 = arith.constant 0 : index
    %c1_41 = arith.constant 1 : index
    %c0_42 = arith.constant 0 : index
    %c0_43 = arith.constant 0 : index
    %126 = vector.load %arg7[%c0_40, %c1_41, %c0_42, %c0_43] : memref<1x2x16x1xf32, #tpu.memory_space<vmem>>, vector<1x1x16x1xf32>
    %127 = vector.shape_cast %126 : vector<1x1x16x1xf32> to vector<16x1xf32>
    %128 = vector.extract_strided_slice %121 {offsets = [0, 0], sizes = [16, 8], strides = [1, 1]} : vector<16x40xf32> to vector<16x8xf32>
    %129 = vector.extract_strided_slice %119 {offsets = [0, 0], sizes = [8, 52], strides = [1, 1]} : vector<8x56xf32> to vector<8x52xf32>
    %cst_44 = arith.constant dense<0.000000e+00> : vector<16x52xf32>
    %130 = tpu.matmul %128, %129, %cst_44 {dimension_numbers = #tpu.dot_dimension_numbers<[1], [0], [0], [1], [0, 0, 1, 1], [], []>} : vector<16x8xf32>, vector<8x52xf32>, vector<16x52xf32> -> vector<16x52xf32>
    %131 = vector.extract_strided_slice %121 {offsets = [0, 8], sizes = [16, 8], strides = [1, 1]} : vector<16x40xf32> to vector<16x8xf32>
    %132 = vector.extract_strided_slice %119 {offsets = [0, 1], sizes = [8, 52], strides = [1, 1]} : vector<8x56xf32> to vector<8x52xf32>
    %cst_45 = arith.constant dense<0.000000e+00> : vector<16x52xf32>
    %133 = tpu.matmul %131, %132, %cst_45 {dimension_numbers = #tpu.dot_dimension_numbers<[1], [0], [0], [1], [0, 0, 1, 1], [], []>} : vector<16x8xf32>, vector<8x52xf32>, vector<16x52xf32> -> vector<16x52xf32>
    %134 = arith.addf %130, %133 : vector<16x52xf32>
    %135 = vector.extract_strided_slice %121 {offsets = [0, 16], sizes = [16, 8], strides = [1, 1]} : vector<16x40xf32> to vector<16x8xf32>
    %136 = vector.extract_strided_slice %119 {offsets = [0, 2], sizes = [8, 52], strides = [1, 1]} : vector<8x56xf32> to vector<8x52xf32>
    %cst_46 = arith.constant dense<0.000000e+00> : vector<16x52xf32>
    %137 = tpu.matmul %135, %136, %cst_46 {dimension_numbers = #tpu.dot_dimension_numbers<[1], [0], [0], [1], [0, 0, 1, 1], [], []>} : vector<16x8xf32>, vector<8x52xf32>, vector<16x52xf32> -> vector<16x52xf32>
    %138 = arith.addf %134, %137 : vector<16x52xf32>
    %139 = vector.extract_strided_slice %121 {offsets = [0, 24], sizes = [16, 8], strides = [1, 1]} : vector<16x40xf32> to vector<16x8xf32>
    %140 = vector.extract_strided_slice %119 {offsets = [0, 3], sizes = [8, 52], strides = [1, 1]} : vector<8x56xf32> to vector<8x52xf32>
    %cst_47 = arith.constant dense<0.000000e+00> : vector<16x52xf32>
    %141 = tpu.matmul %139, %140, %cst_47 {dimension_numbers = #tpu.dot_dimension_numbers<[1], [0], [0], [1], [0, 0, 1, 1], [], []>} : vector<16x8xf32>, vector<8x52xf32>, vector<16x52xf32> -> vector<16x52xf32>
    %142 = arith.addf %138, %141 : vector<16x52xf32>
    %143 = vector.extract_strided_slice %121 {offsets = [0, 32], sizes = [16, 8], strides = [1, 1]} : vector<16x40xf32> to vector<16x8xf32>
    %144 = vector.extract_strided_slice %119 {offsets = [0, 4], sizes = [8, 52], strides = [1, 1]} : vector<8x56xf32> to vector<8x52xf32>
    %cst_48 = arith.constant dense<0.000000e+00> : vector<16x52xf32>
    %145 = tpu.matmul %143, %144, %cst_48 {dimension_numbers = #tpu.dot_dimension_numbers<[1], [0], [0], [1], [0, 0, 1, 1], [], []>} : vector<16x8xf32>, vector<8x52xf32>, vector<16x52xf32> -> vector<16x52xf32>
    %146 = arith.addf %142, %145 : vector<16x52xf32>
    %147 = vector.broadcast %123 : vector<16x1xf32> to vector<16x52xf32>
    %148 = arith.addf %146, %147 : vector<16x52xf32>
    %cst_49 = arith.constant 0.00999999977 : f32
    %149 = vector.broadcast %cst_49 : f32 to vector<16x52xf32>
    %150 = arith.mulf %149, %148 : vector<16x52xf32>
    %151 = arith.maximumf %148, %150 : vector<16x52xf32>
    %152 = vector.extract_strided_slice %125 {offsets = [0, 0], sizes = [16, 16], strides = [1, 1]} : vector<16x48xf32> to vector<16x16xf32>
    %153 = vector.extract_strided_slice %151 {offsets = [0, 0], sizes = [16, 50], strides = [1, 1]} : vector<16x52xf32> to vector<16x50xf32>
    %cst_50 = arith.constant dense<0.000000e+00> : vector<16x50xf32>
    %154 = tpu.matmul %152, %153, %cst_50 {dimension_numbers = #tpu.dot_dimension_numbers<[1], [0], [0], [1], [0, 0, 1, 1], [], []>} : vector<16x16xf32>, vector<16x50xf32>, vector<16x50xf32> -> vector<16x50xf32>
    %155 = vector.extract_strided_slice %125 {offsets = [0, 16], sizes = [16, 16], strides = [1, 1]} : vector<16x48xf32> to vector<16x16xf32>
    %156 = vector.extract_strided_slice %151 {offsets = [0, 1], sizes = [16, 50], strides = [1, 1]} : vector<16x52xf32> to vector<16x50xf32>
    %cst_51 = arith.constant dense<0.000000e+00> : vector<16x50xf32>
    %157 = tpu.matmul %155, %156, %cst_51 {dimension_numbers = #tpu.dot_dimension_numbers<[1], [0], [0], [1], [0, 0, 1, 1], [], []>} : vector<16x16xf32>, vector<16x50xf32>, vector<16x50xf32> -> vector<16x50xf32>
    %158 = arith.addf %154, %157 : vector<16x50xf32>
    %159 = vector.extract_strided_slice %125 {offsets = [0, 32], sizes = [16, 16], strides = [1, 1]} : vector<16x48xf32> to vector<16x16xf32>
    %160 = vector.extract_strided_slice %151 {offsets = [0, 2], sizes = [16, 50], strides = [1, 1]} : vector<16x52xf32> to vector<16x50xf32>
    %cst_52 = arith.constant dense<0.000000e+00> : vector<16x50xf32>
    %161 = tpu.matmul %159, %160, %cst_52 {dimension_numbers = #tpu.dot_dimension_numbers<[1], [0], [0], [1], [0, 0, 1, 1], [], []>} : vector<16x16xf32>, vector<16x50xf32>, vector<16x50xf32> -> vector<16x50xf32>
    %162 = arith.addf %158, %161 : vector<16x50xf32>
    %163 = vector.broadcast %127 : vector<16x1xf32> to vector<16x50xf32>
    %164 = arith.addf %162, %163 : vector<16x50xf32>
    %165 = math.tanh %164 : vector<16x50xf32>
    %166 = vector.extract_strided_slice %165 {offsets = [0, 0], sizes = [8, 22], strides = [1, 1]} : vector<16x50xf32> to vector<8x22xf32>
    %167 = vector.extract_strided_slice %165 {offsets = [8, 28], sizes = [8, 22], strides = [1, 1]} : vector<16x50xf32> to vector<8x22xf32>
    %168 = arith.addf %88, %166 : vector<8x22xf32>
    %169 = vector.extract_strided_slice %168 {offsets = [0, 0], sizes = [8, 8], strides = [1, 1]} : vector<8x22xf32> to vector<8x8xf32>
    %170 = vector.extract_strided_slice %168 {offsets = [0, 14], sizes = [8, 8], strides = [1, 1]} : vector<8x22xf32> to vector<8x8xf32>
    %171 = tpu.concatenate %169, %170 in 1 : vector<8x8xf32>, vector<8x8xf32> -> vector<8x16xf32>
    %c0_53 = arith.constant 0 : index
    %c0_54 = arith.constant 0 : index
    %c0_55 = arith.constant 0 : index
    %172 = vector.load %arg8[%c0_53, %c0_54, %c0_55] : memref<2x8x16xf32, #tpu.memory_space<vmem>>, vector<1x8x16xf32>
    %173 = vector.shape_cast %172 : vector<1x8x16xf32> to vector<8x16xf32>
    %174 = vector.shape_cast %171 : vector<8x16xf32> to vector<1x8x16xf32>
    tpu.vector_store %arg8[%c0_53, %c0_54, %c0_55], %174 {strides = array<i32>} : memref<2x8x16xf32, #tpu.memory_space<vmem>>, vector<1x8x16xf32>,
    %175 = arith.subf %86, %167 : vector<8x22xf32>
    %176 = vector.extract_strided_slice %175 {offsets = [0, 0], sizes = [8, 8], strides = [1, 1]} : vector<8x22xf32> to vector<8x8xf32>
    %177 = vector.extract_strided_slice %175 {offsets = [0, 14], sizes = [8, 8], strides = [1, 1]} : vector<8x22xf32> to vector<8x8xf32>
    %178 = tpu.concatenate %176, %177 in 1 : vector<8x8xf32>, vector<8x8xf32> -> vector<8x16xf32>
    %c1_56 = arith.constant 1 : index
    %c0_57 = arith.constant 0 : index
    %c0_58 = arith.constant 0 : index
    %179 = vector.load %arg8[%c1_56, %c0_57, %c0_58] : memref<2x8x16xf32, #tpu.memory_space<vmem>>, vector<1x8x16xf32>
    %180 = vector.shape_cast %179 : vector<1x8x16xf32> to vector<8x16xf32>
    %181 = vector.shape_cast %178 : vector<8x16xf32> to vector<1x8x16xf32>
    tpu.vector_store %arg8[%c1_56, %c0_57, %c0_58], %181 {strides = array<i32>} : memref<2x8x16xf32, #tpu.memory_space<vmem>>, vector<1x8x16xf32>,
    return
  }
  func.func @transform_0(%arg0: i32, %arg1: i32) -> (i32, i32, i32) {
    %c0_i32 = arith.constant 0 : i32
    %c0_i32_0 = arith.constant 0 : i32
    return %arg0, %c0_i32, %arg1 : i32, i32, i32
  }
  func.func @transform_1(%arg0: i32, %arg1: i32) -> (i32, i32, i32) {
    %c0_i32 = arith.constant 0 : i32
    %c0_i32_0 = arith.constant 0 : i32
    return %arg0, %c0_i32, %arg1 : i32, i32, i32
  }
  func.func @transform_2(%arg0: i32, %arg1: i32) -> (i32, i32, i32, i32) {
    %c0_i32 = arith.constant 0 : i32
    %c0_i32_0 = arith.constant 0 : i32
    %c0_i32_1 = arith.constant 0 : i32
    %c0_i32_2 = arith.constant 0 : i32
    return %arg0, %c0_i32, %c0_i32_0, %c0_i32_1 : i32, i32, i32, i32
  }
  func.func @transform_3(%arg0: i32, %arg1: i32) -> (i32, i32, i32, i32) {
    %c0_i32 = arith.constant 0 : i32
    %c0_i32_0 = arith.constant 0 : i32
    %c0_i32_1 = arith.constant 0 : i32
    %c0_i32_2 = arith.constant 0 : i32
    return %arg0, %c0_i32, %c0_i32_0, %c0_i32_1 : i32, i32, i32, i32
  }
  func.func @transform_4(%arg0: i32, %arg1: i32) -> (i32, i32, i32, i32) {
    %c0_i32 = arith.constant 0 : i32
    %c0_i32_0 = arith.constant 0 : i32
    %c0_i32_1 = arith.constant 0 : i32
    %c0_i32_2 = arith.constant 0 : i32
    return %arg0, %c0_i32, %c0_i32_0, %c0_i32_1 : i32, i32, i32, i32
  }
  func.func @transform_5(%arg0: i32, %arg1: i32) -> (i32, i32, i32, i32) {
    %c0_i32 = arith.constant 0 : i32
    %c0_i32_0 = arith.constant 0 : i32
    %c0_i32_1 = arith.constant 0 : i32
    %c0_i32_2 = arith.constant 0 : i32
    return %arg0, %c0_i32, %c0_i32_0, %c0_i32_1 : i32, i32, i32, i32
  }
  func.func @transform_6(%arg0: i32, %arg1: i32) -> (i32, i32, i32) {
    %c0_i32 = arith.constant 0 : i32
    %c0_i32_0 = arith.constant 0 : i32
    return %arg0, %c0_i32, %arg1 : i32, i32, i32
  }
}

module attributes {stable_mosaic.version = 11 : i64} {
  func.func @_interactor_kernel(%arg0: i32, %arg1: i32, %arg2: memref<1x8x8xf32, #tpu.memory_space<vmem>>, %arg3: memref<1x8x8xf32, #tpu.memory_space<vmem>>, %arg4: memref<1x2x16x40xf32, #tpu.memory_space<vmem>>, %arg5: memref<1x2x16x1xf32, #tpu.memory_space<vmem>>, %arg6: memref<1x2x16x48xf32, #tpu.memory_space<vmem>>, %arg7: memref<1x2x16x1xf32, #tpu.memory_space<vmem>>, %arg8: memref<2x8x8xf32, #tpu.memory_space<vmem>>) attributes {dimension_semantics = [#tpu.dimension_semantics<parallel>, #tpu.dimension_semantics<parallel>], iteration_bounds = array<i64: 2, 1>, scalar_prefetch = 0 : i64, scratch_operands = 0 : i64, tpu.core_type = #tpu.core_type<tc>, window_params = [{transform_indices = @transform_0, window_bounds = array<i64: 1, 8, 8>}, {transform_indices = @transform_1, window_bounds = array<i64: 1, 8, 8>}, {transform_indices = @transform_2, window_bounds = array<i64: 1, 2, 16, 40>}, {transform_indices = @transform_3, window_bounds = array<i64: 1, 2, 16, 1>}, {transform_indices = @transform_4, window_bounds = array<i64: 1, 2, 16, 48>}, {transform_indices = @transform_5, window_bounds = array<i64: 1, 2, 16, 1>}, {transform_indices = @transform_6, window_bounds = array<i64: 2, 8, 8>}]} {
    %c0 = arith.constant 0 : index
    %c0_0 = arith.constant 0 : index
    %c0_1 = arith.constant 0 : index
    %0 = vector.load %arg2[%c0, %c0_0, %c0_1] : memref<1x8x8xf32, #tpu.memory_space<vmem>>, vector<1x8x8xf32>
    %1 = vector.shape_cast %0 : vector<1x8x8xf32> to vector<8x8xf32>
    %c0_2 = arith.constant 0 : index
    %c0_3 = arith.constant 0 : index
    %c0_4 = arith.constant 0 : index
    %2 = vector.load %arg3[%c0_2, %c0_3, %c0_4] : memref<1x8x8xf32, #tpu.memory_space<vmem>>, vector<1x8x8xf32>
    %3 = vector.shape_cast %2 : vector<1x8x8xf32> to vector<8x8xf32>
    %4 = vector.extract_strided_slice %1 {offsets = [0, 0], sizes = [8, 4], strides = [1, 1]} : vector<8x8xf32> to vector<8x4xf32>
    %5 = vector.extract_strided_slice %4 {offsets = [0, 0], sizes = [8, 1], strides = [1, 1]} : vector<8x4xf32> to vector<8x1xf32>
    %6 = vector.shape_cast %5 : vector<8x1xf32> to vector<8x1xf32>
    %7 = vector.broadcast %6 : vector<8x1xf32> to vector<8x3xf32>
    %8 = vector.extract_strided_slice %4 {offsets = [0, 3], sizes = [8, 1], strides = [1, 1]} : vector<8x4xf32> to vector<8x1xf32>
    %9 = vector.shape_cast %8 : vector<8x1xf32> to vector<8x1xf32>
    %10 = vector.broadcast %9 : vector<8x1xf32> to vector<8x3xf32>
    %11 = vector.extract_strided_slice %1 {offsets = [0, 4], sizes = [8, 4], strides = [1, 1]} : vector<8x8xf32> to vector<8x4xf32>
    %12 = vector.extract_strided_slice %11 {offsets = [0, 0], sizes = [8, 1], strides = [1, 1]} : vector<8x4xf32> to vector<8x1xf32>
    %13 = vector.shape_cast %12 : vector<8x1xf32> to vector<8x1xf32>
    %14 = vector.broadcast %13 : vector<8x1xf32> to vector<8x3xf32>
    %15 = vector.extract_strided_slice %11 {offsets = [0, 3], sizes = [8, 1], strides = [1, 1]} : vector<8x4xf32> to vector<8x1xf32>
    %16 = vector.shape_cast %15 : vector<8x1xf32> to vector<8x1xf32>
    %17 = vector.broadcast %16 : vector<8x1xf32> to vector<8x3xf32>
    %18 = tpu.concatenate %7, %4, %10, %14, %11, %17 in 1 : vector<8x3xf32>, vector<8x4xf32>, vector<8x3xf32>, vector<8x3xf32>, vector<8x4xf32>, vector<8x3xf32> -> vector<8x20xf32>
    %19 = vector.extract_strided_slice %3 {offsets = [0, 0], sizes = [8, 4], strides = [1, 1]} : vector<8x8xf32> to vector<8x4xf32>
    %20 = vector.extract_strided_slice %19 {offsets = [0, 0], sizes = [8, 1], strides = [1, 1]} : vector<8x4xf32> to vector<8x1xf32>
    %21 = vector.shape_cast %20 : vector<8x1xf32> to vector<8x1xf32>
    %22 = vector.broadcast %21 : vector<8x1xf32> to vector<8x3xf32>
    %23 = vector.extract_strided_slice %19 {offsets = [0, 3], sizes = [8, 1], strides = [1, 1]} : vector<8x4xf32> to vector<8x1xf32>
    %24 = vector.shape_cast %23 : vector<8x1xf32> to vector<8x1xf32>
    %25 = vector.broadcast %24 : vector<8x1xf32> to vector<8x3xf32>
    %26 = vector.extract_strided_slice %3 {offsets = [0, 4], sizes = [8, 4], strides = [1, 1]} : vector<8x8xf32> to vector<8x4xf32>
    %27 = vector.extract_strided_slice %26 {offsets = [0, 0], sizes = [8, 1], strides = [1, 1]} : vector<8x4xf32> to vector<8x1xf32>
    %28 = vector.shape_cast %27 : vector<8x1xf32> to vector<8x1xf32>
    %29 = vector.broadcast %28 : vector<8x1xf32> to vector<8x3xf32>
    %30 = vector.extract_strided_slice %26 {offsets = [0, 3], sizes = [8, 1], strides = [1, 1]} : vector<8x4xf32> to vector<8x1xf32>
    %31 = vector.shape_cast %30 : vector<8x1xf32> to vector<8x1xf32>
    %32 = vector.broadcast %31 : vector<8x1xf32> to vector<8x3xf32>
    %33 = tpu.concatenate %22, %19, %25, %29, %26, %32 in 1 : vector<8x3xf32>, vector<8x4xf32>, vector<8x3xf32>, vector<8x3xf32>, vector<8x4xf32>, vector<8x3xf32> -> vector<8x20xf32>
    %34 = tpu.concatenate %18, %33 in 1 : vector<8x20xf32>, vector<8x20xf32> -> vector<8x40xf32>
    %c0_5 = arith.constant 0 : index
    %c0_6 = arith.constant 0 : index
    %c0_7 = arith.constant 0 : index
    %c0_8 = arith.constant 0 : index
    %35 = vector.load %arg4[%c0_5, %c0_6, %c0_7, %c0_8] : memref<1x2x16x40xf32, #tpu.memory_space<vmem>>, vector<1x1x16x40xf32>
    %36 = vector.shape_cast %35 : vector<1x1x16x40xf32> to vector<16x40xf32>
    %c0_9 = arith.constant 0 : index
    %c0_10 = arith.constant 0 : index
    %c0_11 = arith.constant 0 : index
    %c0_12 = arith.constant 0 : index
    %37 = vector.load %arg5[%c0_9, %c0_10, %c0_11, %c0_12] : memref<1x2x16x1xf32, #tpu.memory_space<vmem>>, vector<1x1x16x1xf32>
    %38 = vector.shape_cast %37 : vector<1x1x16x1xf32> to vector<16x1xf32>
    %c0_13 = arith.constant 0 : index
    %c0_14 = arith.constant 0 : index
    %c0_15 = arith.constant 0 : index
    %c0_16 = arith.constant 0 : index
    %39 = vector.load %arg6[%c0_13, %c0_14, %c0_15, %c0_16] : memref<1x2x16x48xf32, #tpu.memory_space<vmem>>, vector<1x1x16x48xf32>
    %40 = vector.shape_cast %39 : vector<1x1x16x48xf32> to vector<16x48xf32>
    %c0_17 = arith.constant 0 : index
    %c0_18 = arith.constant 0 : index
    %c0_19 = arith.constant 0 : index
    %c0_20 = arith.constant 0 : index
    %41 = vector.load %arg7[%c0_17, %c0_18, %c0_19, %c0_20] : memref<1x2x16x1xf32, #tpu.memory_space<vmem>>, vector<1x1x16x1xf32>
    %42 = vector.shape_cast %41 : vector<1x1x16x1xf32> to vector<16x1xf32>
    %43 = vector.extract_strided_slice %36 {offsets = [0, 0], sizes = [16, 8], strides = [1, 1]} : vector<16x40xf32> to vector<16x8xf32>
    %44 = vector.extract_strided_slice %34 {offsets = [0, 0], sizes = [8, 36], strides = [1, 1]} : vector<8x40xf32> to vector<8x36xf32>
    %cst = arith.constant dense<0.000000e+00> : vector<16x36xf32>
    %45 = tpu.matmul %43, %44, %cst {dimension_numbers = #tpu.dot_dimension_numbers<[1], [0], [0], [1], [0, 0, 1, 1], [], []>} : vector<16x8xf32>, vector<8x36xf32>, vector<16x36xf32> -> vector<16x36xf32>
    %46 = vector.extract_strided_slice %36 {offsets = [0, 8], sizes = [16, 8], strides = [1, 1]} : vector<16x40xf32> to vector<16x8xf32>
    %47 = vector.extract_strided_slice %34 {offsets = [0, 1], sizes = [8, 36], strides = [1, 1]} : vector<8x40xf32> to vector<8x36xf32>
    %cst_21 = arith.constant dense<0.000000e+00> : vector<16x36xf32>
    %48 = tpu.matmul %46, %47, %cst_21 {dimension_numbers = #tpu.dot_dimension_numbers<[1], [0], [0], [1], [0, 0, 1, 1], [], []>} : vector<16x8xf32>, vector<8x36xf32>, vector<16x36xf32> -> vector<16x36xf32>
    %49 = arith.addf %45, %48 : vector<16x36xf32>
    %50 = vector.extract_strided_slice %36 {offsets = [0, 16], sizes = [16, 8], strides = [1, 1]} : vector<16x40xf32> to vector<16x8xf32>
    %51 = vector.extract_strided_slice %34 {offsets = [0, 2], sizes = [8, 36], strides = [1, 1]} : vector<8x40xf32> to vector<8x36xf32>
    %cst_22 = arith.constant dense<0.000000e+00> : vector<16x36xf32>
    %52 = tpu.matmul %50, %51, %cst_22 {dimension_numbers = #tpu.dot_dimension_numbers<[1], [0], [0], [1], [0, 0, 1, 1], [], []>} : vector<16x8xf32>, vector<8x36xf32>, vector<16x36xf32> -> vector<16x36xf32>
    %53 = arith.addf %49, %52 : vector<16x36xf32>
    %54 = vector.extract_strided_slice %36 {offsets = [0, 24], sizes = [16, 8], strides = [1, 1]} : vector<16x40xf32> to vector<16x8xf32>
    %55 = vector.extract_strided_slice %34 {offsets = [0, 3], sizes = [8, 36], strides = [1, 1]} : vector<8x40xf32> to vector<8x36xf32>
    %cst_23 = arith.constant dense<0.000000e+00> : vector<16x36xf32>
    %56 = tpu.matmul %54, %55, %cst_23 {dimension_numbers = #tpu.dot_dimension_numbers<[1], [0], [0], [1], [0, 0, 1, 1], [], []>} : vector<16x8xf32>, vector<8x36xf32>, vector<16x36xf32> -> vector<16x36xf32>
    %57 = arith.addf %53, %56 : vector<16x36xf32>
    %58 = vector.extract_strided_slice %36 {offsets = [0, 32], sizes = [16, 8], strides = [1, 1]} : vector<16x40xf32> to vector<16x8xf32>
    %59 = vector.extract_strided_slice %34 {offsets = [0, 4], sizes = [8, 36], strides = [1, 1]} : vector<8x40xf32> to vector<8x36xf32>
    %cst_24 = arith.constant dense<0.000000e+00> : vector<16x36xf32>
    %60 = tpu.matmul %58, %59, %cst_24 {dimension_numbers = #tpu.dot_dimension_numbers<[1], [0], [0], [1], [0, 0, 1, 1], [], []>} : vector<16x8xf32>, vector<8x36xf32>, vector<16x36xf32> -> vector<16x36xf32>
    %61 = arith.addf %57, %60 : vector<16x36xf32>
    %62 = vector.broadcast %38 : vector<16x1xf32> to vector<16x36xf32>
    %63 = arith.addf %61, %62 : vector<16x36xf32>
    %cst_25 = arith.constant 0.00999999977 : f32
    %64 = vector.broadcast %cst_25 : f32 to vector<16x36xf32>
    %65 = arith.mulf %64, %63 : vector<16x36xf32>
    %66 = arith.maximumf %63, %65 : vector<16x36xf32>
    %67 = vector.extract_strided_slice %40 {offsets = [0, 0], sizes = [16, 16], strides = [1, 1]} : vector<16x48xf32> to vector<16x16xf32>
    %68 = vector.extract_strided_slice %66 {offsets = [0, 0], sizes = [16, 34], strides = [1, 1]} : vector<16x36xf32> to vector<16x34xf32>
    %cst_26 = arith.constant dense<0.000000e+00> : vector<16x34xf32>
    %69 = tpu.matmul %67, %68, %cst_26 {dimension_numbers = #tpu.dot_dimension_numbers<[1], [0], [0], [1], [0, 0, 1, 1], [], []>} : vector<16x16xf32>, vector<16x34xf32>, vector<16x34xf32> -> vector<16x34xf32>
    %70 = vector.extract_strided_slice %40 {offsets = [0, 16], sizes = [16, 16], strides = [1, 1]} : vector<16x48xf32> to vector<16x16xf32>
    %71 = vector.extract_strided_slice %66 {offsets = [0, 1], sizes = [16, 34], strides = [1, 1]} : vector<16x36xf32> to vector<16x34xf32>
    %cst_27 = arith.constant dense<0.000000e+00> : vector<16x34xf32>
    %72 = tpu.matmul %70, %71, %cst_27 {dimension_numbers = #tpu.dot_dimension_numbers<[1], [0], [0], [1], [0, 0, 1, 1], [], []>} : vector<16x16xf32>, vector<16x34xf32>, vector<16x34xf32> -> vector<16x34xf32>
    %73 = arith.addf %69, %72 : vector<16x34xf32>
    %74 = vector.extract_strided_slice %40 {offsets = [0, 32], sizes = [16, 16], strides = [1, 1]} : vector<16x48xf32> to vector<16x16xf32>
    %75 = vector.extract_strided_slice %66 {offsets = [0, 2], sizes = [16, 34], strides = [1, 1]} : vector<16x36xf32> to vector<16x34xf32>
    %cst_28 = arith.constant dense<0.000000e+00> : vector<16x34xf32>
    %76 = tpu.matmul %74, %75, %cst_28 {dimension_numbers = #tpu.dot_dimension_numbers<[1], [0], [0], [1], [0, 0, 1, 1], [], []>} : vector<16x16xf32>, vector<16x34xf32>, vector<16x34xf32> -> vector<16x34xf32>
    %77 = arith.addf %73, %76 : vector<16x34xf32>
    %78 = vector.broadcast %42 : vector<16x1xf32> to vector<16x34xf32>
    %79 = arith.addf %77, %78 : vector<16x34xf32>
    %80 = math.tanh %79 : vector<16x34xf32>
    %81 = vector.extract_strided_slice %80 {offsets = [0, 0], sizes = [8, 14], strides = [1, 1]} : vector<16x34xf32> to vector<8x14xf32>
    %82 = vector.extract_strided_slice %80 {offsets = [8, 20], sizes = [8, 14], strides = [1, 1]} : vector<16x34xf32> to vector<8x14xf32>
    %83 = vector.extract_strided_slice %18 {offsets = [0, 3], sizes = [8, 14], strides = [1, 1]} : vector<8x20xf32> to vector<8x14xf32>
    %84 = vector.extract_strided_slice %33 {offsets = [0, 3], sizes = [8, 14], strides = [1, 1]} : vector<8x20xf32> to vector<8x14xf32>
    %85 = math.exp %81 : vector<8x14xf32>
    %86 = arith.mulf %84, %85 : vector<8x14xf32>
    %87 = math.exp %82 : vector<8x14xf32>
    %88 = arith.mulf %83, %87 : vector<8x14xf32>
    %89 = vector.extract_strided_slice %86 {offsets = [0, 0], sizes = [8, 4], strides = [1, 1]} : vector<8x14xf32> to vector<8x4xf32>
    %90 = vector.extract_strided_slice %89 {offsets = [0, 0], sizes = [8, 1], strides = [1, 1]} : vector<8x4xf32> to vector<8x1xf32>
    %91 = vector.shape_cast %90 : vector<8x1xf32> to vector<8x1xf32>
    %92 = vector.broadcast %91 : vector<8x1xf32> to vector<8x3xf32>
    %93 = vector.extract_strided_slice %89 {offsets = [0, 3], sizes = [8, 1], strides = [1, 1]} : vector<8x4xf32> to vector<8x1xf32>
    %94 = vector.shape_cast %93 : vector<8x1xf32> to vector<8x1xf32>
    %95 = vector.broadcast %94 : vector<8x1xf32> to vector<8x3xf32>
    %96 = vector.extract_strided_slice %86 {offsets = [0, 10], sizes = [8, 4], strides = [1, 1]} : vector<8x14xf32> to vector<8x4xf32>
    %97 = vector.extract_strided_slice %96 {offsets = [0, 0], sizes = [8, 1], strides = [1, 1]} : vector<8x4xf32> to vector<8x1xf32>
    %98 = vector.shape_cast %97 : vector<8x1xf32> to vector<8x1xf32>
    %99 = vector.broadcast %98 : vector<8x1xf32> to vector<8x3xf32>
    %100 = vector.extract_strided_slice %96 {offsets = [0, 3], sizes = [8, 1], strides = [1, 1]} : vector<8x4xf32> to vector<8x1xf32>
    %101 = vector.shape_cast %100 : vector<8x1xf32> to vector<8x1xf32>
    %102 = vector.broadcast %101 : vector<8x1xf32> to vector<8x3xf32>
    %103 = tpu.concatenate %92, %89, %95, %99, %96, %102 in 1 : vector<8x3xf32>, vector<8x4xf32>, vector<8x3xf32>, vector<8x3xf32>, vector<8x4xf32>, vector<8x3xf32> -> vector<8x20xf32>
    %104 = vector.extract_strided_slice %88 {offsets = [0, 0], sizes = [8, 4], strides = [1, 1]} : vector<8x14xf32> to vector<8x4xf32>
    %105 = vector.extract_strided_slice %104 {offsets = [0, 0], sizes = [8, 1], strides = [1, 1]} : vector<8x4xf32> to vector<8x1xf32>
    %106 = vector.shape_cast %105 : vector<8x1xf32> to vector<8x1xf32>
    %107 = vector.broadcast %106 : vector<8x1xf32> to vector<8x3xf32>
    %108 = vector.extract_strided_slice %104 {offsets = [0, 3], sizes = [8, 1], strides = [1, 1]} : vector<8x4xf32> to vector<8x1xf32>
    %109 = vector.shape_cast %108 : vector<8x1xf32> to vector<8x1xf32>
    %110 = vector.broadcast %109 : vector<8x1xf32> to vector<8x3xf32>
    %111 = vector.extract_strided_slice %88 {offsets = [0, 10], sizes = [8, 4], strides = [1, 1]} : vector<8x14xf32> to vector<8x4xf32>
    %112 = vector.extract_strided_slice %111 {offsets = [0, 0], sizes = [8, 1], strides = [1, 1]} : vector<8x4xf32> to vector<8x1xf32>
    %113 = vector.shape_cast %112 : vector<8x1xf32> to vector<8x1xf32>
    %114 = vector.broadcast %113 : vector<8x1xf32> to vector<8x3xf32>
    %115 = vector.extract_strided_slice %111 {offsets = [0, 3], sizes = [8, 1], strides = [1, 1]} : vector<8x4xf32> to vector<8x1xf32>
    %116 = vector.shape_cast %115 : vector<8x1xf32> to vector<8x1xf32>
    %117 = vector.broadcast %116 : vector<8x1xf32> to vector<8x3xf32>
    %118 = tpu.concatenate %107, %104, %110, %114, %111, %117 in 1 : vector<8x3xf32>, vector<8x4xf32>, vector<8x3xf32>, vector<8x3xf32>, vector<8x4xf32>, vector<8x3xf32> -> vector<8x20xf32>
    %119 = tpu.concatenate %103, %118 in 1 : vector<8x20xf32>, vector<8x20xf32> -> vector<8x40xf32>
    %c0_29 = arith.constant 0 : index
    %c1 = arith.constant 1 : index
    %c0_30 = arith.constant 0 : index
    %c0_31 = arith.constant 0 : index
    %120 = vector.load %arg4[%c0_29, %c1, %c0_30, %c0_31] : memref<1x2x16x40xf32, #tpu.memory_space<vmem>>, vector<1x1x16x40xf32>
    %121 = vector.shape_cast %120 : vector<1x1x16x40xf32> to vector<16x40xf32>
    %c0_32 = arith.constant 0 : index
    %c1_33 = arith.constant 1 : index
    %c0_34 = arith.constant 0 : index
    %c0_35 = arith.constant 0 : index
    %122 = vector.load %arg5[%c0_32, %c1_33, %c0_34, %c0_35] : memref<1x2x16x1xf32, #tpu.memory_space<vmem>>, vector<1x1x16x1xf32>
    %123 = vector.shape_cast %122 : vector<1x1x16x1xf32> to vector<16x1xf32>
    %c0_36 = arith.constant 0 : index
    %c1_37 = arith.constant 1 : index
    %c0_38 = arith.constant 0 : index
    %c0_39 = arith.constant 0 : index
    %124 = vector.load %arg6[%c0_36, %c1_37, %c0_38, %c0_39] : memref<1x2x16x48xf32, #tpu.memory_space<vmem>>, vector<1x1x16x48xf32>
    %125 = vector.shape_cast %124 : vector<1x1x16x48xf32> to vector<16x48xf32>
    %c0_40 = arith.constant 0 : index
    %c1_41 = arith.constant 1 : index
    %c0_42 = arith.constant 0 : index
    %c0_43 = arith.constant 0 : index
    %126 = vector.load %arg7[%c0_40, %c1_41, %c0_42, %c0_43] : memref<1x2x16x1xf32, #tpu.memory_space<vmem>>, vector<1x1x16x1xf32>
    %127 = vector.shape_cast %126 : vector<1x1x16x1xf32> to vector<16x1xf32>
    %128 = vector.extract_strided_slice %121 {offsets = [0, 0], sizes = [16, 8], strides = [1, 1]} : vector<16x40xf32> to vector<16x8xf32>
    %129 = vector.extract_strided_slice %119 {offsets = [0, 0], sizes = [8, 36], strides = [1, 1]} : vector<8x40xf32> to vector<8x36xf32>
    %cst_44 = arith.constant dense<0.000000e+00> : vector<16x36xf32>
    %130 = tpu.matmul %128, %129, %cst_44 {dimension_numbers = #tpu.dot_dimension_numbers<[1], [0], [0], [1], [0, 0, 1, 1], [], []>} : vector<16x8xf32>, vector<8x36xf32>, vector<16x36xf32> -> vector<16x36xf32>
    %131 = vector.extract_strided_slice %121 {offsets = [0, 8], sizes = [16, 8], strides = [1, 1]} : vector<16x40xf32> to vector<16x8xf32>
    %132 = vector.extract_strided_slice %119 {offsets = [0, 1], sizes = [8, 36], strides = [1, 1]} : vector<8x40xf32> to vector<8x36xf32>
    %cst_45 = arith.constant dense<0.000000e+00> : vector<16x36xf32>
    %133 = tpu.matmul %131, %132, %cst_45 {dimension_numbers = #tpu.dot_dimension_numbers<[1], [0], [0], [1], [0, 0, 1, 1], [], []>} : vector<16x8xf32>, vector<8x36xf32>, vector<16x36xf32> -> vector<16x36xf32>
    %134 = arith.addf %130, %133 : vector<16x36xf32>
    %135 = vector.extract_strided_slice %121 {offsets = [0, 16], sizes = [16, 8], strides = [1, 1]} : vector<16x40xf32> to vector<16x8xf32>
    %136 = vector.extract_strided_slice %119 {offsets = [0, 2], sizes = [8, 36], strides = [1, 1]} : vector<8x40xf32> to vector<8x36xf32>
    %cst_46 = arith.constant dense<0.000000e+00> : vector<16x36xf32>
    %137 = tpu.matmul %135, %136, %cst_46 {dimension_numbers = #tpu.dot_dimension_numbers<[1], [0], [0], [1], [0, 0, 1, 1], [], []>} : vector<16x8xf32>, vector<8x36xf32>, vector<16x36xf32> -> vector<16x36xf32>
    %138 = arith.addf %134, %137 : vector<16x36xf32>
    %139 = vector.extract_strided_slice %121 {offsets = [0, 24], sizes = [16, 8], strides = [1, 1]} : vector<16x40xf32> to vector<16x8xf32>
    %140 = vector.extract_strided_slice %119 {offsets = [0, 3], sizes = [8, 36], strides = [1, 1]} : vector<8x40xf32> to vector<8x36xf32>
    %cst_47 = arith.constant dense<0.000000e+00> : vector<16x36xf32>
    %141 = tpu.matmul %139, %140, %cst_47 {dimension_numbers = #tpu.dot_dimension_numbers<[1], [0], [0], [1], [0, 0, 1, 1], [], []>} : vector<16x8xf32>, vector<8x36xf32>, vector<16x36xf32> -> vector<16x36xf32>
    %142 = arith.addf %138, %141 : vector<16x36xf32>
    %143 = vector.extract_strided_slice %121 {offsets = [0, 32], sizes = [16, 8], strides = [1, 1]} : vector<16x40xf32> to vector<16x8xf32>
    %144 = vector.extract_strided_slice %119 {offsets = [0, 4], sizes = [8, 36], strides = [1, 1]} : vector<8x40xf32> to vector<8x36xf32>
    %cst_48 = arith.constant dense<0.000000e+00> : vector<16x36xf32>
    %145 = tpu.matmul %143, %144, %cst_48 {dimension_numbers = #tpu.dot_dimension_numbers<[1], [0], [0], [1], [0, 0, 1, 1], [], []>} : vector<16x8xf32>, vector<8x36xf32>, vector<16x36xf32> -> vector<16x36xf32>
    %146 = arith.addf %142, %145 : vector<16x36xf32>
    %147 = vector.broadcast %123 : vector<16x1xf32> to vector<16x36xf32>
    %148 = arith.addf %146, %147 : vector<16x36xf32>
    %cst_49 = arith.constant 0.00999999977 : f32
    %149 = vector.broadcast %cst_49 : f32 to vector<16x36xf32>
    %150 = arith.mulf %149, %148 : vector<16x36xf32>
    %151 = arith.maximumf %148, %150 : vector<16x36xf32>
    %152 = vector.extract_strided_slice %125 {offsets = [0, 0], sizes = [16, 16], strides = [1, 1]} : vector<16x48xf32> to vector<16x16xf32>
    %153 = vector.extract_strided_slice %151 {offsets = [0, 0], sizes = [16, 34], strides = [1, 1]} : vector<16x36xf32> to vector<16x34xf32>
    %cst_50 = arith.constant dense<0.000000e+00> : vector<16x34xf32>
    %154 = tpu.matmul %152, %153, %cst_50 {dimension_numbers = #tpu.dot_dimension_numbers<[1], [0], [0], [1], [0, 0, 1, 1], [], []>} : vector<16x16xf32>, vector<16x34xf32>, vector<16x34xf32> -> vector<16x34xf32>
    %155 = vector.extract_strided_slice %125 {offsets = [0, 16], sizes = [16, 16], strides = [1, 1]} : vector<16x48xf32> to vector<16x16xf32>
    %156 = vector.extract_strided_slice %151 {offsets = [0, 1], sizes = [16, 34], strides = [1, 1]} : vector<16x36xf32> to vector<16x34xf32>
    %cst_51 = arith.constant dense<0.000000e+00> : vector<16x34xf32>
    %157 = tpu.matmul %155, %156, %cst_51 {dimension_numbers = #tpu.dot_dimension_numbers<[1], [0], [0], [1], [0, 0, 1, 1], [], []>} : vector<16x16xf32>, vector<16x34xf32>, vector<16x34xf32> -> vector<16x34xf32>
    %158 = arith.addf %154, %157 : vector<16x34xf32>
    %159 = vector.extract_strided_slice %125 {offsets = [0, 32], sizes = [16, 16], strides = [1, 1]} : vector<16x48xf32> to vector<16x16xf32>
    %160 = vector.extract_strided_slice %151 {offsets = [0, 2], sizes = [16, 34], strides = [1, 1]} : vector<16x36xf32> to vector<16x34xf32>
    %cst_52 = arith.constant dense<0.000000e+00> : vector<16x34xf32>
    %161 = tpu.matmul %159, %160, %cst_52 {dimension_numbers = #tpu.dot_dimension_numbers<[1], [0], [0], [1], [0, 0, 1, 1], [], []>} : vector<16x16xf32>, vector<16x34xf32>, vector<16x34xf32> -> vector<16x34xf32>
    %162 = arith.addf %158, %161 : vector<16x34xf32>
    %163 = vector.broadcast %127 : vector<16x1xf32> to vector<16x34xf32>
    %164 = arith.addf %162, %163 : vector<16x34xf32>
    %165 = math.tanh %164 : vector<16x34xf32>
    %166 = vector.extract_strided_slice %165 {offsets = [0, 0], sizes = [8, 14], strides = [1, 1]} : vector<16x34xf32> to vector<8x14xf32>
    %167 = vector.extract_strided_slice %165 {offsets = [8, 20], sizes = [8, 14], strides = [1, 1]} : vector<16x34xf32> to vector<8x14xf32>
    %168 = arith.addf %88, %166 : vector<8x14xf32>
    %169 = vector.extract_strided_slice %168 {offsets = [0, 0], sizes = [8, 4], strides = [1, 1]} : vector<8x14xf32> to vector<8x4xf32>
    %170 = vector.extract_strided_slice %168 {offsets = [0, 10], sizes = [8, 4], strides = [1, 1]} : vector<8x14xf32> to vector<8x4xf32>
    %171 = tpu.concatenate %169, %170 in 1 : vector<8x4xf32>, vector<8x4xf32> -> vector<8x8xf32>
    %c0_53 = arith.constant 0 : index
    %c0_54 = arith.constant 0 : index
    %c0_55 = arith.constant 0 : index
    %172 = vector.load %arg8[%c0_53, %c0_54, %c0_55] : memref<2x8x8xf32, #tpu.memory_space<vmem>>, vector<1x8x8xf32>
    %173 = vector.shape_cast %172 : vector<1x8x8xf32> to vector<8x8xf32>
    %174 = vector.shape_cast %171 : vector<8x8xf32> to vector<1x8x8xf32>
    tpu.vector_store %arg8[%c0_53, %c0_54, %c0_55], %174 {strides = array<i32>} : memref<2x8x8xf32, #tpu.memory_space<vmem>>, vector<1x8x8xf32>,
    %175 = arith.subf %86, %167 : vector<8x14xf32>
    %176 = vector.extract_strided_slice %175 {offsets = [0, 0], sizes = [8, 4], strides = [1, 1]} : vector<8x14xf32> to vector<8x4xf32>
    %177 = vector.extract_strided_slice %175 {offsets = [0, 10], sizes = [8, 4], strides = [1, 1]} : vector<8x14xf32> to vector<8x4xf32>
    %178 = tpu.concatenate %176, %177 in 1 : vector<8x4xf32>, vector<8x4xf32> -> vector<8x8xf32>
    %c1_56 = arith.constant 1 : index
    %c0_57 = arith.constant 0 : index
    %c0_58 = arith.constant 0 : index
    %179 = vector.load %arg8[%c1_56, %c0_57, %c0_58] : memref<2x8x8xf32, #tpu.memory_space<vmem>>, vector<1x8x8xf32>
    %180 = vector.shape_cast %179 : vector<1x8x8xf32> to vector<8x8xf32>
    %181 = vector.shape_cast %178 : vector<8x8xf32> to vector<1x8x8xf32>
    tpu.vector_store %arg8[%c1_56, %c0_57, %c0_58], %181 {strides = array<i32>} : memref<2x8x8xf32, #tpu.memory_space<vmem>>, vector<1x8x8xf32>,
    return
  }
  func.func @transform_0(%arg0: i32, %arg1: i32) -> (i32, i32, i32) {
    %c0_i32 = arith.constant 0 : i32
    %c0_i32_0 = arith.constant 0 : i32
    return %arg0, %c0_i32, %arg1 : i32, i32, i32
  }
  func.func @transform_1(%arg0: i32, %arg1: i32) -> (i32, i32, i32) {
    %c0_i32 = arith.constant 0 : i32
    %c0_i32_0 = arith.constant 0 : i32
    return %arg0, %c0_i32, %arg1 : i32, i32, i32
  }
  func.func @transform_2(%arg0: i32, %arg1: i32) -> (i32, i32, i32, i32) {
    %c0_i32 = arith.constant 0 : i32
    %c0_i32_0 = arith.constant 0 : i32
    %c0_i32_1 = arith.constant 0 : i32
    %c0_i32_2 = arith.constant 0 : i32
    return %arg0, %c0_i32, %c0_i32_0, %c0_i32_1 : i32, i32, i32, i32
  }
  func.func @transform_3(%arg0: i32, %arg1: i32) -> (i32, i32, i32, i32) {
    %c0_i32 = arith.constant 0 : i32
    %c0_i32_0 = arith.constant 0 : i32
    %c0_i32_1 = arith.constant 0 : i32
    %c0_i32_2 = arith.constant 0 : i32
    return %arg0, %c0_i32, %c0_i32_0, %c0_i32_1 : i32, i32, i32, i32
  }
  func.func @transform_4(%arg0: i32, %arg1: i32) -> (i32, i32, i32, i32) {
    %c0_i32 = arith.constant 0 : i32
    %c0_i32_0 = arith.constant 0 : i32
    %c0_i32_1 = arith.constant 0 : i32
    %c0_i32_2 = arith.constant 0 : i32
    return %arg0, %c0_i32, %c0_i32_0, %c0_i32_1 : i32, i32, i32, i32
  }
  func.func @transform_5(%arg0: i32, %arg1: i32) -> (i32, i32, i32, i32) {
    %c0_i32 = arith.constant 0 : i32
    %c0_i32_0 = arith.constant 0 : i32
    %c0_i32_1 = arith.constant 0 : i32
    %c0_i32_2 = arith.constant 0 : i32
    return %arg0, %c0_i32, %c0_i32_0, %c0_i32_1 : i32, i32, i32, i32
  }
  func.func @transform_6(%arg0: i32, %arg1: i32) -> (i32, i32, i32) {
    %c0_i32 = arith.constant 0 : i32
    %c0_i32_0 = arith.constant 0 : i32
    return %arg0, %c0_i32, %arg1 : i32, i32, i32
  }
}

module attributes {stable_mosaic.version = 11 : i64} {
  func.func @_interactor_kernel(%arg0: i32, %arg1: i32, %arg2: memref<1x8x4xf32, #tpu.memory_space<vmem>>, %arg3: memref<1x8x4xf32, #tpu.memory_space<vmem>>, %arg4: memref<1x2x16x40xf32, #tpu.memory_space<vmem>>, %arg5: memref<1x2x16x1xf32, #tpu.memory_space<vmem>>, %arg6: memref<1x2x16x48xf32, #tpu.memory_space<vmem>>, %arg7: memref<1x2x16x1xf32, #tpu.memory_space<vmem>>, %arg8: memref<2x8x4xf32, #tpu.memory_space<vmem>>) attributes {dimension_semantics = [#tpu.dimension_semantics<parallel>, #tpu.dimension_semantics<parallel>], iteration_bounds = array<i64: 4, 1>, scalar_prefetch = 0 : i64, scratch_operands = 0 : i64, tpu.core_type = #tpu.core_type<tc>, window_params = [{transform_indices = @transform_0, window_bounds = array<i64: 1, 8, 4>}, {transform_indices = @transform_1, window_bounds = array<i64: 1, 8, 4>}, {transform_indices = @transform_2, window_bounds = array<i64: 1, 2, 16, 40>}, {transform_indices = @transform_3, window_bounds = array<i64: 1, 2, 16, 1>}, {transform_indices = @transform_4, window_bounds = array<i64: 1, 2, 16, 48>}, {transform_indices = @transform_5, window_bounds = array<i64: 1, 2, 16, 1>}, {transform_indices = @transform_6, window_bounds = array<i64: 2, 8, 4>}]} {
    %c0 = arith.constant 0 : index
    %c0_0 = arith.constant 0 : index
    %c0_1 = arith.constant 0 : index
    %0 = vector.load %arg2[%c0, %c0_0, %c0_1] : memref<1x8x4xf32, #tpu.memory_space<vmem>>, vector<1x8x4xf32>
    %1 = vector.shape_cast %0 : vector<1x8x4xf32> to vector<8x4xf32>
    %c0_2 = arith.constant 0 : index
    %c0_3 = arith.constant 0 : index
    %c0_4 = arith.constant 0 : index
    %2 = vector.load %arg3[%c0_2, %c0_3, %c0_4] : memref<1x8x4xf32, #tpu.memory_space<vmem>>, vector<1x8x4xf32>
    %3 = vector.shape_cast %2 : vector<1x8x4xf32> to vector<8x4xf32>
    %4 = vector.extract_strided_slice %1 {offsets = [0, 0], sizes = [8, 2], strides = [1, 1]} : vector<8x4xf32> to vector<8x2xf32>
    %5 = vector.extract_strided_slice %4 {offsets = [0, 0], sizes = [8, 1], strides = [1, 1]} : vector<8x2xf32> to vector<8x1xf32>
    %6 = vector.shape_cast %5 : vector<8x1xf32> to vector<8x1xf32>
    %7 = vector.broadcast %6 : vector<8x1xf32> to vector<8x3xf32>
    %8 = vector.extract_strided_slice %4 {offsets = [0, 1], sizes = [8, 1], strides = [1, 1]} : vector<8x2xf32> to vector<8x1xf32>
    %9 = vector.shape_cast %8 : vector<8x1xf32> to vector<8x1xf32>
    %10 = vector.broadcast %9 : vector<8x1xf32> to vector<8x3xf32>
    %11 = vector.extract_strided_slice %1 {offsets = [0, 2], sizes = [8, 2], strides = [1, 1]} : vector<8x4xf32> to vector<8x2xf32>
    %12 = vector.extract_strided_slice %11 {offsets = [0, 0], sizes = [8, 1], strides = [1, 1]} : vector<8x2xf32> to vector<8x1xf32>
    %13 = vector.shape_cast %12 : vector<8x1xf32> to vector<8x1xf32>
    %14 = vector.broadcast %13 : vector<8x1xf32> to vector<8x3xf32>
    %15 = vector.extract_strided_slice %11 {offsets = [0, 1], sizes = [8, 1], strides = [1, 1]} : vector<8x2xf32> to vector<8x1xf32>
    %16 = vector.shape_cast %15 : vector<8x1xf32> to vector<8x1xf32>
    %17 = vector.broadcast %16 : vector<8x1xf32> to vector<8x3xf32>
    %18 = tpu.concatenate %7, %4, %10, %14, %11, %17 in 1 : vector<8x3xf32>, vector<8x2xf32>, vector<8x3xf32>, vector<8x3xf32>, vector<8x2xf32>, vector<8x3xf32> -> vector<8x16xf32>
    %19 = vector.extract_strided_slice %3 {offsets = [0, 0], sizes = [8, 2], strides = [1, 1]} : vector<8x4xf32> to vector<8x2xf32>
    %20 = vector.extract_strided_slice %19 {offsets = [0, 0], sizes = [8, 1], strides = [1, 1]} : vector<8x2xf32> to vector<8x1xf32>
    %21 = vector.shape_cast %20 : vector<8x1xf32> to vector<8x1xf32>
    %22 = vector.broadcast %21 : vector<8x1xf32> to vector<8x3xf32>
    %23 = vector.extract_strided_slice %19 {offsets = [0, 1], sizes = [8, 1], strides = [1, 1]} : vector<8x2xf32> to vector<8x1xf32>
    %24 = vector.shape_cast %23 : vector<8x1xf32> to vector<8x1xf32>
    %25 = vector.broadcast %24 : vector<8x1xf32> to vector<8x3xf32>
    %26 = vector.extract_strided_slice %3 {offsets = [0, 2], sizes = [8, 2], strides = [1, 1]} : vector<8x4xf32> to vector<8x2xf32>
    %27 = vector.extract_strided_slice %26 {offsets = [0, 0], sizes = [8, 1], strides = [1, 1]} : vector<8x2xf32> to vector<8x1xf32>
    %28 = vector.shape_cast %27 : vector<8x1xf32> to vector<8x1xf32>
    %29 = vector.broadcast %28 : vector<8x1xf32> to vector<8x3xf32>
    %30 = vector.extract_strided_slice %26 {offsets = [0, 1], sizes = [8, 1], strides = [1, 1]} : vector<8x2xf32> to vector<8x1xf32>
    %31 = vector.shape_cast %30 : vector<8x1xf32> to vector<8x1xf32>
    %32 = vector.broadcast %31 : vector<8x1xf32> to vector<8x3xf32>
    %33 = tpu.concatenate %22, %19, %25, %29, %26, %32 in 1 : vector<8x3xf32>, vector<8x2xf32>, vector<8x3xf32>, vector<8x3xf32>, vector<8x2xf32>, vector<8x3xf32> -> vector<8x16xf32>
    %34 = tpu.concatenate %18, %33 in 1 : vector<8x16xf32>, vector<8x16xf32> -> vector<8x32xf32>
    %c0_5 = arith.constant 0 : index
    %c0_6 = arith.constant 0 : index
    %c0_7 = arith.constant 0 : index
    %c0_8 = arith.constant 0 : index
    %35 = vector.load %arg4[%c0_5, %c0_6, %c0_7, %c0_8] : memref<1x2x16x40xf32, #tpu.memory_space<vmem>>, vector<1x1x16x40xf32>
    %36 = vector.shape_cast %35 : vector<1x1x16x40xf32> to vector<16x40xf32>
    %c0_9 = arith.constant 0 : index
    %c0_10 = arith.constant 0 : index
    %c0_11 = arith.constant 0 : index
    %c0_12 = arith.constant 0 : index
    %37 = vector.load %arg5[%c0_9, %c0_10, %c0_11, %c0_12] : memref<1x2x16x1xf32, #tpu.memory_space<vmem>>, vector<1x1x16x1xf32>
    %38 = vector.shape_cast %37 : vector<1x1x16x1xf32> to vector<16x1xf32>
    %c0_13 = arith.constant 0 : index
    %c0_14 = arith.constant 0 : index
    %c0_15 = arith.constant 0 : index
    %c0_16 = arith.constant 0 : index
    %39 = vector.load %arg6[%c0_13, %c0_14, %c0_15, %c0_16] : memref<1x2x16x48xf32, #tpu.memory_space<vmem>>, vector<1x1x16x48xf32>
    %40 = vector.shape_cast %39 : vector<1x1x16x48xf32> to vector<16x48xf32>
    %c0_17 = arith.constant 0 : index
    %c0_18 = arith.constant 0 : index
    %c0_19 = arith.constant 0 : index
    %c0_20 = arith.constant 0 : index
    %41 = vector.load %arg7[%c0_17, %c0_18, %c0_19, %c0_20] : memref<1x2x16x1xf32, #tpu.memory_space<vmem>>, vector<1x1x16x1xf32>
    %42 = vector.shape_cast %41 : vector<1x1x16x1xf32> to vector<16x1xf32>
    %43 = vector.extract_strided_slice %36 {offsets = [0, 0], sizes = [16, 8], strides = [1, 1]} : vector<16x40xf32> to vector<16x8xf32>
    %44 = vector.extract_strided_slice %34 {offsets = [0, 0], sizes = [8, 28], strides = [1, 1]} : vector<8x32xf32> to vector<8x28xf32>
    %cst = arith.constant dense<0.000000e+00> : vector<16x28xf32>
    %45 = tpu.matmul %43, %44, %cst {dimension_numbers = #tpu.dot_dimension_numbers<[1], [0], [0], [1], [0, 0, 1, 1], [], []>} : vector<16x8xf32>, vector<8x28xf32>, vector<16x28xf32> -> vector<16x28xf32>
    %46 = vector.extract_strided_slice %36 {offsets = [0, 8], sizes = [16, 8], strides = [1, 1]} : vector<16x40xf32> to vector<16x8xf32>
    %47 = vector.extract_strided_slice %34 {offsets = [0, 1], sizes = [8, 28], strides = [1, 1]} : vector<8x32xf32> to vector<8x28xf32>
    %cst_21 = arith.constant dense<0.000000e+00> : vector<16x28xf32>
    %48 = tpu.matmul %46, %47, %cst_21 {dimension_numbers = #tpu.dot_dimension_numbers<[1], [0], [0], [1], [0, 0, 1, 1], [], []>} : vector<16x8xf32>, vector<8x28xf32>, vector<16x28xf32> -> vector<16x28xf32>
    %49 = arith.addf %45, %48 : vector<16x28xf32>
    %50 = vector.extract_strided_slice %36 {offsets = [0, 16], sizes = [16, 8], strides = [1, 1]} : vector<16x40xf32> to vector<16x8xf32>
    %51 = vector.extract_strided_slice %34 {offsets = [0, 2], sizes = [8, 28], strides = [1, 1]} : vector<8x32xf32> to vector<8x28xf32>
    %cst_22 = arith.constant dense<0.000000e+00> : vector<16x28xf32>
    %52 = tpu.matmul %50, %51, %cst_22 {dimension_numbers = #tpu.dot_dimension_numbers<[1], [0], [0], [1], [0, 0, 1, 1], [], []>} : vector<16x8xf32>, vector<8x28xf32>, vector<16x28xf32> -> vector<16x28xf32>
    %53 = arith.addf %49, %52 : vector<16x28xf32>
    %54 = vector.extract_strided_slice %36 {offsets = [0, 24], sizes = [16, 8], strides = [1, 1]} : vector<16x40xf32> to vector<16x8xf32>
    %55 = vector.extract_strided_slice %34 {offsets = [0, 3], sizes = [8, 28], strides = [1, 1]} : vector<8x32xf32> to vector<8x28xf32>
    %cst_23 = arith.constant dense<0.000000e+00> : vector<16x28xf32>
    %56 = tpu.matmul %54, %55, %cst_23 {dimension_numbers = #tpu.dot_dimension_numbers<[1], [0], [0], [1], [0, 0, 1, 1], [], []>} : vector<16x8xf32>, vector<8x28xf32>, vector<16x28xf32> -> vector<16x28xf32>
    %57 = arith.addf %53, %56 : vector<16x28xf32>
    %58 = vector.extract_strided_slice %36 {offsets = [0, 32], sizes = [16, 8], strides = [1, 1]} : vector<16x40xf32> to vector<16x8xf32>
    %59 = vector.extract_strided_slice %34 {offsets = [0, 4], sizes = [8, 28], strides = [1, 1]} : vector<8x32xf32> to vector<8x28xf32>
    %cst_24 = arith.constant dense<0.000000e+00> : vector<16x28xf32>
    %60 = tpu.matmul %58, %59, %cst_24 {dimension_numbers = #tpu.dot_dimension_numbers<[1], [0], [0], [1], [0, 0, 1, 1], [], []>} : vector<16x8xf32>, vector<8x28xf32>, vector<16x28xf32> -> vector<16x28xf32>
    %61 = arith.addf %57, %60 : vector<16x28xf32>
    %62 = vector.broadcast %38 : vector<16x1xf32> to vector<16x28xf32>
    %63 = arith.addf %61, %62 : vector<16x28xf32>
    %cst_25 = arith.constant 0.00999999977 : f32
    %64 = vector.broadcast %cst_25 : f32 to vector<16x28xf32>
    %65 = arith.mulf %64, %63 : vector<16x28xf32>
    %66 = arith.maximumf %63, %65 : vector<16x28xf32>
    %67 = vector.extract_strided_slice %40 {offsets = [0, 0], sizes = [16, 16], strides = [1, 1]} : vector<16x48xf32> to vector<16x16xf32>
    %68 = vector.extract_strided_slice %66 {offsets = [0, 0], sizes = [16, 26], strides = [1, 1]} : vector<16x28xf32> to vector<16x26xf32>
    %cst_26 = arith.constant dense<0.000000e+00> : vector<16x26xf32>
    %69 = tpu.matmul %67, %68, %cst_26 {dimension_numbers = #tpu.dot_dimension_numbers<[1], [0], [0], [1], [0, 0, 1, 1], [], []>} : vector<16x16xf32>, vector<16x26xf32>, vector<16x26xf32> -> vector<16x26xf32>
    %70 = vector.extract_strided_slice %40 {offsets = [0, 16], sizes = [16, 16], strides = [1, 1]} : vector<16x48xf32> to vector<16x16xf32>
    %71 = vector.extract_strided_slice %66 {offsets = [0, 1], sizes = [16, 26], strides = [1, 1]} : vector<16x28xf32> to vector<16x26xf32>
    %cst_27 = arith.constant dense<0.000000e+00> : vector<16x26xf32>
    %72 = tpu.matmul %70, %71, %cst_27 {dimension_numbers = #tpu.dot_dimension_numbers<[1], [0], [0], [1], [0, 0, 1, 1], [], []>} : vector<16x16xf32>, vector<16x26xf32>, vector<16x26xf32> -> vector<16x26xf32>
    %73 = arith.addf %69, %72 : vector<16x26xf32>
    %74 = vector.extract_strided_slice %40 {offsets = [0, 32], sizes = [16, 16], strides = [1, 1]} : vector<16x48xf32> to vector<16x16xf32>
    %75 = vector.extract_strided_slice %66 {offsets = [0, 2], sizes = [16, 26], strides = [1, 1]} : vector<16x28xf32> to vector<16x26xf32>
    %cst_28 = arith.constant dense<0.000000e+00> : vector<16x26xf32>
    %76 = tpu.matmul %74, %75, %cst_28 {dimension_numbers = #tpu.dot_dimension_numbers<[1], [0], [0], [1], [0, 0, 1, 1], [], []>} : vector<16x16xf32>, vector<16x26xf32>, vector<16x26xf32> -> vector<16x26xf32>
    %77 = arith.addf %73, %76 : vector<16x26xf32>
    %78 = vector.broadcast %42 : vector<16x1xf32> to vector<16x26xf32>
    %79 = arith.addf %77, %78 : vector<16x26xf32>
    %80 = math.tanh %79 : vector<16x26xf32>
    %81 = vector.extract_strided_slice %80 {offsets = [0, 0], sizes = [8, 10], strides = [1, 1]} : vector<16x26xf32> to vector<8x10xf32>
    %82 = vector.extract_strided_slice %80 {offsets = [8, 16], sizes = [8, 10], strides = [1, 1]} : vector<16x26xf32> to vector<8x10xf32>
    %83 = vector.extract_strided_slice %18 {offsets = [0, 3], sizes = [8, 10], strides = [1, 1]} : vector<8x16xf32> to vector<8x10xf32>
    %84 = vector.extract_strided_slice %33 {offsets = [0, 3], sizes = [8, 10], strides = [1, 1]} : vector<8x16xf32> to vector<8x10xf32>
    %85 = math.exp %81 : vector<8x10xf32>
    %86 = arith.mulf %84, %85 : vector<8x10xf32>
    %87 = math.exp %82 : vector<8x10xf32>
    %88 = arith.mulf %83, %87 : vector<8x10xf32>
    %89 = vector.extract_strided_slice %86 {offsets = [0, 0], sizes = [8, 2], strides = [1, 1]} : vector<8x10xf32> to vector<8x2xf32>
    %90 = vector.extract_strided_slice %89 {offsets = [0, 0], sizes = [8, 1], strides = [1, 1]} : vector<8x2xf32> to vector<8x1xf32>
    %91 = vector.shape_cast %90 : vector<8x1xf32> to vector<8x1xf32>
    %92 = vector.broadcast %91 : vector<8x1xf32> to vector<8x3xf32>
    %93 = vector.extract_strided_slice %89 {offsets = [0, 1], sizes = [8, 1], strides = [1, 1]} : vector<8x2xf32> to vector<8x1xf32>
    %94 = vector.shape_cast %93 : vector<8x1xf32> to vector<8x1xf32>
    %95 = vector.broadcast %94 : vector<8x1xf32> to vector<8x3xf32>
    %96 = vector.extract_strided_slice %86 {offsets = [0, 8], sizes = [8, 2], strides = [1, 1]} : vector<8x10xf32> to vector<8x2xf32>
    %97 = vector.extract_strided_slice %96 {offsets = [0, 0], sizes = [8, 1], strides = [1, 1]} : vector<8x2xf32> to vector<8x1xf32>
    %98 = vector.shape_cast %97 : vector<8x1xf32> to vector<8x1xf32>
    %99 = vector.broadcast %98 : vector<8x1xf32> to vector<8x3xf32>
    %100 = vector.extract_strided_slice %96 {offsets = [0, 1], sizes = [8, 1], strides = [1, 1]} : vector<8x2xf32> to vector<8x1xf32>
    %101 = vector.shape_cast %100 : vector<8x1xf32> to vector<8x1xf32>
    %102 = vector.broadcast %101 : vector<8x1xf32> to vector<8x3xf32>
    %103 = tpu.concatenate %92, %89, %95, %99, %96, %102 in 1 : vector<8x3xf32>, vector<8x2xf32>, vector<8x3xf32>, vector<8x3xf32>, vector<8x2xf32>, vector<8x3xf32> -> vector<8x16xf32>
    %104 = vector.extract_strided_slice %88 {offsets = [0, 0], sizes = [8, 2], strides = [1, 1]} : vector<8x10xf32> to vector<8x2xf32>
    %105 = vector.extract_strided_slice %104 {offsets = [0, 0], sizes = [8, 1], strides = [1, 1]} : vector<8x2xf32> to vector<8x1xf32>
    %106 = vector.shape_cast %105 : vector<8x1xf32> to vector<8x1xf32>
    %107 = vector.broadcast %106 : vector<8x1xf32> to vector<8x3xf32>
    %108 = vector.extract_strided_slice %104 {offsets = [0, 1], sizes = [8, 1], strides = [1, 1]} : vector<8x2xf32> to vector<8x1xf32>
    %109 = vector.shape_cast %108 : vector<8x1xf32> to vector<8x1xf32>
    %110 = vector.broadcast %109 : vector<8x1xf32> to vector<8x3xf32>
    %111 = vector.extract_strided_slice %88 {offsets = [0, 8], sizes = [8, 2], strides = [1, 1]} : vector<8x10xf32> to vector<8x2xf32>
    %112 = vector.extract_strided_slice %111 {offsets = [0, 0], sizes = [8, 1], strides = [1, 1]} : vector<8x2xf32> to vector<8x1xf32>
    %113 = vector.shape_cast %112 : vector<8x1xf32> to vector<8x1xf32>
    %114 = vector.broadcast %113 : vector<8x1xf32> to vector<8x3xf32>
    %115 = vector.extract_strided_slice %111 {offsets = [0, 1], sizes = [8, 1], strides = [1, 1]} : vector<8x2xf32> to vector<8x1xf32>
    %116 = vector.shape_cast %115 : vector<8x1xf32> to vector<8x1xf32>
    %117 = vector.broadcast %116 : vector<8x1xf32> to vector<8x3xf32>
    %118 = tpu.concatenate %107, %104, %110, %114, %111, %117 in 1 : vector<8x3xf32>, vector<8x2xf32>, vector<8x3xf32>, vector<8x3xf32>, vector<8x2xf32>, vector<8x3xf32> -> vector<8x16xf32>
    %119 = tpu.concatenate %103, %118 in 1 : vector<8x16xf32>, vector<8x16xf32> -> vector<8x32xf32>
    %c0_29 = arith.constant 0 : index
    %c1 = arith.constant 1 : index
    %c0_30 = arith.constant 0 : index
    %c0_31 = arith.constant 0 : index
    %120 = vector.load %arg4[%c0_29, %c1, %c0_30, %c0_31] : memref<1x2x16x40xf32, #tpu.memory_space<vmem>>, vector<1x1x16x40xf32>
    %121 = vector.shape_cast %120 : vector<1x1x16x40xf32> to vector<16x40xf32>
    %c0_32 = arith.constant 0 : index
    %c1_33 = arith.constant 1 : index
    %c0_34 = arith.constant 0 : index
    %c0_35 = arith.constant 0 : index
    %122 = vector.load %arg5[%c0_32, %c1_33, %c0_34, %c0_35] : memref<1x2x16x1xf32, #tpu.memory_space<vmem>>, vector<1x1x16x1xf32>
    %123 = vector.shape_cast %122 : vector<1x1x16x1xf32> to vector<16x1xf32>
    %c0_36 = arith.constant 0 : index
    %c1_37 = arith.constant 1 : index
    %c0_38 = arith.constant 0 : index
    %c0_39 = arith.constant 0 : index
    %124 = vector.load %arg6[%c0_36, %c1_37, %c0_38, %c0_39] : memref<1x2x16x48xf32, #tpu.memory_space<vmem>>, vector<1x1x16x48xf32>
    %125 = vector.shape_cast %124 : vector<1x1x16x48xf32> to vector<16x48xf32>
    %c0_40 = arith.constant 0 : index
    %c1_41 = arith.constant 1 : index
    %c0_42 = arith.constant 0 : index
    %c0_43 = arith.constant 0 : index
    %126 = vector.load %arg7[%c0_40, %c1_41, %c0_42, %c0_43] : memref<1x2x16x1xf32, #tpu.memory_space<vmem>>, vector<1x1x16x1xf32>
    %127 = vector.shape_cast %126 : vector<1x1x16x1xf32> to vector<16x1xf32>
    %128 = vector.extract_strided_slice %121 {offsets = [0, 0], sizes = [16, 8], strides = [1, 1]} : vector<16x40xf32> to vector<16x8xf32>
    %129 = vector.extract_strided_slice %119 {offsets = [0, 0], sizes = [8, 28], strides = [1, 1]} : vector<8x32xf32> to vector<8x28xf32>
    %cst_44 = arith.constant dense<0.000000e+00> : vector<16x28xf32>
    %130 = tpu.matmul %128, %129, %cst_44 {dimension_numbers = #tpu.dot_dimension_numbers<[1], [0], [0], [1], [0, 0, 1, 1], [], []>} : vector<16x8xf32>, vector<8x28xf32>, vector<16x28xf32> -> vector<16x28xf32>
    %131 = vector.extract_strided_slice %121 {offsets = [0, 8], sizes = [16, 8], strides = [1, 1]} : vector<16x40xf32> to vector<16x8xf32>
    %132 = vector.extract_strided_slice %119 {offsets = [0, 1], sizes = [8, 28], strides = [1, 1]} : vector<8x32xf32> to vector<8x28xf32>
    %cst_45 = arith.constant dense<0.000000e+00> : vector<16x28xf32>
    %133 = tpu.matmul %131, %132, %cst_45 {dimension_numbers = #tpu.dot_dimension_numbers<[1], [0], [0], [1], [0, 0, 1, 1], [], []>} : vector<16x8xf32>, vector<8x28xf32>, vector<16x28xf32> -> vector<16x28xf32>
    %134 = arith.addf %130, %133 : vector<16x28xf32>
    %135 = vector.extract_strided_slice %121 {offsets = [0, 16], sizes = [16, 8], strides = [1, 1]} : vector<16x40xf32> to vector<16x8xf32>
    %136 = vector.extract_strided_slice %119 {offsets = [0, 2], sizes = [8, 28], strides = [1, 1]} : vector<8x32xf32> to vector<8x28xf32>
    %cst_46 = arith.constant dense<0.000000e+00> : vector<16x28xf32>
    %137 = tpu.matmul %135, %136, %cst_46 {dimension_numbers = #tpu.dot_dimension_numbers<[1], [0], [0], [1], [0, 0, 1, 1], [], []>} : vector<16x8xf32>, vector<8x28xf32>, vector<16x28xf32> -> vector<16x28xf32>
    %138 = arith.addf %134, %137 : vector<16x28xf32>
    %139 = vector.extract_strided_slice %121 {offsets = [0, 24], sizes = [16, 8], strides = [1, 1]} : vector<16x40xf32> to vector<16x8xf32>
    %140 = vector.extract_strided_slice %119 {offsets = [0, 3], sizes = [8, 28], strides = [1, 1]} : vector<8x32xf32> to vector<8x28xf32>
    %cst_47 = arith.constant dense<0.000000e+00> : vector<16x28xf32>
    %141 = tpu.matmul %139, %140, %cst_47 {dimension_numbers = #tpu.dot_dimension_numbers<[1], [0], [0], [1], [0, 0, 1, 1], [], []>} : vector<16x8xf32>, vector<8x28xf32>, vector<16x28xf32> -> vector<16x28xf32>
    %142 = arith.addf %138, %141 : vector<16x28xf32>
    %143 = vector.extract_strided_slice %121 {offsets = [0, 32], sizes = [16, 8], strides = [1, 1]} : vector<16x40xf32> to vector<16x8xf32>
    %144 = vector.extract_strided_slice %119 {offsets = [0, 4], sizes = [8, 28], strides = [1, 1]} : vector<8x32xf32> to vector<8x28xf32>
    %cst_48 = arith.constant dense<0.000000e+00> : vector<16x28xf32>
    %145 = tpu.matmul %143, %144, %cst_48 {dimension_numbers = #tpu.dot_dimension_numbers<[1], [0], [0], [1], [0, 0, 1, 1], [], []>} : vector<16x8xf32>, vector<8x28xf32>, vector<16x28xf32> -> vector<16x28xf32>
    %146 = arith.addf %142, %145 : vector<16x28xf32>
    %147 = vector.broadcast %123 : vector<16x1xf32> to vector<16x28xf32>
    %148 = arith.addf %146, %147 : vector<16x28xf32>
    %cst_49 = arith.constant 0.00999999977 : f32
    %149 = vector.broadcast %cst_49 : f32 to vector<16x28xf32>
    %150 = arith.mulf %149, %148 : vector<16x28xf32>
    %151 = arith.maximumf %148, %150 : vector<16x28xf32>
    %152 = vector.extract_strided_slice %125 {offsets = [0, 0], sizes = [16, 16], strides = [1, 1]} : vector<16x48xf32> to vector<16x16xf32>
    %153 = vector.extract_strided_slice %151 {offsets = [0, 0], sizes = [16, 26], strides = [1, 1]} : vector<16x28xf32> to vector<16x26xf32>
    %cst_50 = arith.constant dense<0.000000e+00> : vector<16x26xf32>
    %154 = tpu.matmul %152, %153, %cst_50 {dimension_numbers = #tpu.dot_dimension_numbers<[1], [0], [0], [1], [0, 0, 1, 1], [], []>} : vector<16x16xf32>, vector<16x26xf32>, vector<16x26xf32> -> vector<16x26xf32>
    %155 = vector.extract_strided_slice %125 {offsets = [0, 16], sizes = [16, 16], strides = [1, 1]} : vector<16x48xf32> to vector<16x16xf32>
    %156 = vector.extract_strided_slice %151 {offsets = [0, 1], sizes = [16, 26], strides = [1, 1]} : vector<16x28xf32> to vector<16x26xf32>
    %cst_51 = arith.constant dense<0.000000e+00> : vector<16x26xf32>
    %157 = tpu.matmul %155, %156, %cst_51 {dimension_numbers = #tpu.dot_dimension_numbers<[1], [0], [0], [1], [0, 0, 1, 1], [], []>} : vector<16x16xf32>, vector<16x26xf32>, vector<16x26xf32> -> vector<16x26xf32>
    %158 = arith.addf %154, %157 : vector<16x26xf32>
    %159 = vector.extract_strided_slice %125 {offsets = [0, 32], sizes = [16, 16], strides = [1, 1]} : vector<16x48xf32> to vector<16x16xf32>
    %160 = vector.extract_strided_slice %151 {offsets = [0, 2], sizes = [16, 26], strides = [1, 1]} : vector<16x28xf32> to vector<16x26xf32>
    %cst_52 = arith.constant dense<0.000000e+00> : vector<16x26xf32>
    %161 = tpu.matmul %159, %160, %cst_52 {dimension_numbers = #tpu.dot_dimension_numbers<[1], [0], [0], [1], [0, 0, 1, 1], [], []>} : vector<16x16xf32>, vector<16x26xf32>, vector<16x26xf32> -> vector<16x26xf32>
    %162 = arith.addf %158, %161 : vector<16x26xf32>
    %163 = vector.broadcast %127 : vector<16x1xf32> to vector<16x26xf32>
    %164 = arith.addf %162, %163 : vector<16x26xf32>
    %165 = math.tanh %164 : vector<16x26xf32>
    %166 = vector.extract_strided_slice %165 {offsets = [0, 0], sizes = [8, 10], strides = [1, 1]} : vector<16x26xf32> to vector<8x10xf32>
    %167 = vector.extract_strided_slice %165 {offsets = [8, 16], sizes = [8, 10], strides = [1, 1]} : vector<16x26xf32> to vector<8x10xf32>
    %168 = arith.addf %88, %166 : vector<8x10xf32>
    %169 = vector.extract_strided_slice %168 {offsets = [0, 0], sizes = [8, 2], strides = [1, 1]} : vector<8x10xf32> to vector<8x2xf32>
    %170 = vector.extract_strided_slice %168 {offsets = [0, 8], sizes = [8, 2], strides = [1, 1]} : vector<8x10xf32> to vector<8x2xf32>
    %171 = tpu.concatenate %169, %170 in 1 : vector<8x2xf32>, vector<8x2xf32> -> vector<8x4xf32>
    %c0_53 = arith.constant 0 : index
    %c0_54 = arith.constant 0 : index
    %c0_55 = arith.constant 0 : index
    %172 = vector.load %arg8[%c0_53, %c0_54, %c0_55] : memref<2x8x4xf32, #tpu.memory_space<vmem>>, vector<1x8x4xf32>
    %173 = vector.shape_cast %172 : vector<1x8x4xf32> to vector<8x4xf32>
    %174 = vector.shape_cast %171 : vector<8x4xf32> to vector<1x8x4xf32>
    tpu.vector_store %arg8[%c0_53, %c0_54, %c0_55], %174 {strides = array<i32>} : memref<2x8x4xf32, #tpu.memory_space<vmem>>, vector<1x8x4xf32>,
    %175 = arith.subf %86, %167 : vector<8x10xf32>
    %176 = vector.extract_strided_slice %175 {offsets = [0, 0], sizes = [8, 2], strides = [1, 1]} : vector<8x10xf32> to vector<8x2xf32>
    %177 = vector.extract_strided_slice %175 {offsets = [0, 8], sizes = [8, 2], strides = [1, 1]} : vector<8x10xf32> to vector<8x2xf32>
    %178 = tpu.concatenate %176, %177 in 1 : vector<8x2xf32>, vector<8x2xf32> -> vector<8x4xf32>
    %c1_56 = arith.constant 1 : index
    %c0_57 = arith.constant 0 : index
    %c0_58 = arith.constant 0 : index
    %179 = vector.load %arg8[%c1_56, %c0_57, %c0_58] : memref<2x8x4xf32, #tpu.memory_space<vmem>>, vector<1x8x4xf32>
    %180 = vector.shape_cast %179 : vector<1x8x4xf32> to vector<8x4xf32>
    %181 = vector.shape_cast %178 : vector<8x4xf32> to vector<1x8x4xf32>
    tpu.vector_store %arg8[%c1_56, %c0_57, %c0_58], %181 {strides = array<i32>} : memref<2x8x4xf32, #tpu.memory_space<vmem>>, vector<1x8x4xf32>,
    return
  }
  func.func @transform_0(%arg0: i32, %arg1: i32) -> (i32, i32, i32) {
    %c0_i32 = arith.constant 0 : i32
    %c0_i32_0 = arith.constant 0 : i32
    return %arg0, %c0_i32, %arg1 : i32, i32, i32
  }
  func.func @transform_1(%arg0: i32, %arg1: i32) -> (i32, i32, i32) {
    %c0_i32 = arith.constant 0 : i32
    %c0_i32_0 = arith.constant 0 : i32
    return %arg0, %c0_i32, %arg1 : i32, i32, i32
  }
  func.func @transform_2(%arg0: i32, %arg1: i32) -> (i32, i32, i32, i32) {
    %c0_i32 = arith.constant 0 : i32
    %c0_i32_0 = arith.constant 0 : i32
    %c0_i32_1 = arith.constant 0 : i32
    %c0_i32_2 = arith.constant 0 : i32
    return %arg0, %c0_i32, %c0_i32_0, %c0_i32_1 : i32, i32, i32, i32
  }
  func.func @transform_3(%arg0: i32, %arg1: i32) -> (i32, i32, i32, i32) {
    %c0_i32 = arith.constant 0 : i32
    %c0_i32_0 = arith.constant 0 : i32
    %c0_i32_1 = arith.constant 0 : i32
    %c0_i32_2 = arith.constant 0 : i32
    return %arg0, %c0_i32, %c0_i32_0, %c0_i32_1 : i32, i32, i32, i32
  }
  func.func @transform_4(%arg0: i32, %arg1: i32) -> (i32, i32, i32, i32) {
    %c0_i32 = arith.constant 0 : i32
    %c0_i32_0 = arith.constant 0 : i32
    %c0_i32_1 = arith.constant 0 : i32
    %c0_i32_2 = arith.constant 0 : i32
    return %arg0, %c0_i32, %c0_i32_0, %c0_i32_1 : i32, i32, i32, i32
  }
  func.func @transform_5(%arg0: i32, %arg1: i32) -> (i32, i32, i32, i32) {
    %c0_i32 = arith.constant 0 : i32
    %c0_i32_0 = arith.constant 0 : i32
    %c0_i32_1 = arith.constant 0 : i32
    %c0_i32_2 = arith.constant 0 : i32
    return %arg0, %c0_i32, %c0_i32_0, %c0_i32_1 : i32, i32, i32, i32
  }
  func.func @transform_6(%arg0: i32, %arg1: i32) -> (i32, i32, i32) {
    %c0_i32 = arith.constant 0 : i32
    %c0_i32_0 = arith.constant 0 : i32
    return %arg0, %c0_i32, %arg1 : i32, i32, i32
  }
}

module attributes {stable_mosaic.version = 11 : i64} {
  func.func @_residual_projection_kernel(%arg0: i32, %arg1: memref<16x16xf32, #tpu.memory_space<vmem>>, %arg2: memref<16x16xf32, #tpu.memory_space<vmem>>, %arg3: memref<8x16xf32, #tpu.memory_space<vmem>>, %arg4: memref<8x16xf32, #tpu.memory_space<vmem>>) attributes {dimension_semantics = [#tpu.dimension_semantics<arbitrary>], iteration_bounds = array<i64: 1>, scalar_prefetch = 0 : i64, scratch_operands = 0 : i64, tpu.core_type = #tpu.core_type<tc>, window_params = [{pipeline_mode = #tpu.pipeline_mode<synchronous>, transform_indices = @transform_0, window_bounds = array<i64: 16, 16>}, {pipeline_mode = #tpu.pipeline_mode<synchronous>, transform_indices = @transform_1, window_bounds = array<i64: 16, 16>}, {pipeline_mode = #tpu.pipeline_mode<synchronous>, transform_indices = @transform_2, window_bounds = array<i64: 8, 16>}, {pipeline_mode = #tpu.pipeline_mode<synchronous>, transform_indices = @transform_3, window_bounds = array<i64: 8, 16>}]} {
    %c0 = arith.constant 0 : index
    %c0_0 = arith.constant 0 : index
    %0 = vector.load %arg1[%c0, %c0_0] : memref<16x16xf32, #tpu.memory_space<vmem>>, vector<16x16xf32>
    %c0_1 = arith.constant 0 : index
    %c0_2 = arith.constant 0 : index
    %1 = vector.load %arg2[%c0_1, %c0_2] : memref<16x16xf32, #tpu.memory_space<vmem>>, vector<16x16xf32>
    %2 = arith.addf %0, %1 : vector<16x16xf32>
    %c0_3 = arith.constant 0 : index
    %c0_4 = arith.constant 0 : index
    %3 = vector.load %arg3[%c0_3, %c0_4] : memref<8x16xf32, #tpu.memory_space<vmem>>, vector<8x16xf32>
    %cst = arith.constant dense<0.000000e+00> : vector<8x16xf32>
    %4 = tpu.matmul %3, %2, %cst {dimension_numbers = #tpu.dot_dimension_numbers<[1], [0], [0], [1], [0, 0, 1, 1], [], []>} : vector<8x16xf32>, vector<16x16xf32>, vector<8x16xf32> -> vector<8x16xf32>
    %c0_5 = arith.constant 0 : index
    %c0_6 = arith.constant 0 : index
    %5 = vector.load %arg4[%c0_5, %c0_6] : memref<8x16xf32, #tpu.memory_space<vmem>>, vector<8x16xf32>
    tpu.vector_store %arg4[%c0_5, %c0_6], %4 {strides = array<i32>} : memref<8x16xf32, #tpu.memory_space<vmem>>, vector<8x16xf32>,
    return
  }
  func.func @transform_0(%arg0: i32) -> (i32, i32) {
    %c0_i32 = arith.constant 0 : i32
    %c0_i32_0 = arith.constant 0 : i32
    %c0_i32_1 = arith.constant 0 : i32
    return %c0_i32, %c0_i32_0 : i32, i32
  }
  func.func @transform_1(%arg0: i32) -> (i32, i32) {
    %c0_i32 = arith.constant 0 : i32
    %c0_i32_0 = arith.constant 0 : i32
    %c0_i32_1 = arith.constant 0 : i32
    return %c0_i32, %c0_i32_0 : i32, i32
  }
  func.func @transform_2(%arg0: i32) -> (i32, i32) {
    %c0_i32 = arith.constant 0 : i32
    %c0_i32_0 = arith.constant 0 : i32
    %c0_i32_1 = arith.constant 0 : i32
    return %c0_i32, %c0_i32_0 : i32, i32
  }
  func.func @transform_3(%arg0: i32) -> (i32, i32) {
    %c0_i32 = arith.constant 0 : i32
    %c0_i32_0 = arith.constant 0 : i32
    %c0_i32_1 = arith.constant 0 : i32
    return %c0_i32, %c0_i32_0 : i32, i32
  }
}

</mosaic_0001>

<bundles_post_ra>
// kernel: scinet_forward.7
= control target key start
LH: loop header
LB: loop body
LE: loop exit
PB: predicated region body
PF: predicated region fallthrough
CT: control target
= control target key end

     0   :  { %v113_v0 = vmov 0.0   ;;  %vm114_vm0 = vmmov 0   ;;  %vm21_vm1 = vcmask 130048   ;;  %s153_s0 = inlined_call_operand.vmem [shape: f32[16,16], index: 0, kind: input, shape index: {}]   ;;  %s154_s1 = inlined_call_operand.vmem [shape: f32[16,16], index: 1, kind: input, shape index: {}]   ;;  %s155_s2 = inlined_call_operand.vmem [shape: f32[8,16], index: 2, kind: input, shape index: {}]   ;;  %s156_s3 = inlined_call_operand.vmem [shape: f32[8,16], index: 3, kind: output, shape index: {}]  }
   0x1   :  { %104 = vmatprep.subr.mxu0 %v113_v0  ;;  %v14_v1 = vld [vmem:[%s153_s0] sm:$0xff]  ;;  %v15_v2 = vld [vmem:[%s153_s0 + $0x8] sm:$0xff]  ;;  %108 = vmatprep.mubr.msk.f32.mxu0 %vm114_vm0, %v113_v0 }
   0x2   :  { %v16_v3 = vld [vmem:[%s154_s1] sm:$0xff]  ;;  %v17_v4 = vld [vmem:[%s154_s1 + $0x8] sm:$0xff] }
   0x3   :  { %v19_v5 = vadd.f32 %v17_v4, %v15_v2  ;;  %v18_v6 = vadd.f32 %v16_v3, %v14_v1  ;;  %v20_v7 = vld [vmem:[%s155_s2] sm:$0xff] }
   0x5   :  { %105 = vmatpush3.msra.mxu0 %v19_v5 }
   0x6   :  { %106 = vmatprep.subr.mxu0 %v113_v0 }
   0x7   :  { %107 = vmatpush3.msra.mxu0 %v18_v6 }
   0x8   :  { %109 = vmatmul.mubr.msk.f32.vlgmr.msra.gmra.mxu0 %vm21_vm1, %v20_v7 }
  0xc8   :  { %v91_v8 = vpop.f32.mrf.mxu0 }
  0xc9   :  { %95 = vst.msk [vmem:[%s156_s3] sm:$0xff] %vm21_vm1, %v91_v8 }
  0xca   :  { %v110_v9 = vpop.f32.mrf.mxu0 }

// kernel: scinet_forward.4
= control target key start
LH: loop header
LB: loop body
LE: loop exit
PB: predicated region body
PF: predicated region fallthrough
CT: control target
= control target key end

     0   :  { %v1899_v0 = vmov 8   ;;  %v1900_v1 = vmov 0   ;;  %v1901_v3 = vmov 15   ;;  %v1902_v4 = vmov 7   ;;  %s1903_s23 = smov 3   ;;  %s1904_s24 = smov 9   ;;  %s2155_s1 = inlined_call_operand.vmem [shape: f32[1,8,16], index: 1, kind: input, shape index: {}]   ;;  %s2156_s0 = inlined_call_operand.vmem [shape: f32[1,8,16], index: 0, kind: input, shape index: {}]   ;;  %s2157_s2 = inlined_call_operand.vmem [shape: f32[1,2,16,40], index: 2, kind: input, shape index: {}]   ;;  %s2158_s3 = inlined_call_operand.vmem [shape: f32[1,2,16,1], index: 3, kind: input, shape index: {}]   ;;  %s2159_s4 = inlined_call_operand.vmem [shape: f32[1,2,16,48], index: 4, kind: input, shape index: {}]   ;;  %s2160_s5 = inlined_call_operand.vmem [shape: f32[1,2,16,1], index: 5, kind: input, shape index: {}]   ;;  %s2161_s6 = inlined_call_operand.vmem [shape: f32[2,8,16], index: 6, kind: output, shape index: {}]  }
   0x1   :  { %1870 = vset.pattern.permute.xlu1 %v1899_v0  ;;  %1868 = vset.pattern.permute.xlu0 %v1900_v1  ;;  %v24_v2 = vld [vmem:[%s2155_s1] sm:$0xff]  ;;  %v93_v6 = vld [vmem:[%s2157_s2 + $0x8] sm:$0xff]  ;;  %s1905_s28 = smov 120   ;;  %s1906_s30 = smov 112   ;;  %vm48_vm0 = vcmask 23552   ;;  %vm50_vm1 = vcmask 89088  }
   0x2   :  { %68 = vperm.xlu1 %1870, %v24_v2   ;;  %60 = vperm.xlu0 %1868, %v24_v2   ;;  %v23_v5 = vld [vmem:[%s2156_s0] sm:$0xff]  ;;  %vm52_vm2 = vcmask 113664   ;;  %vm54_vm3 = vcmask 138240   ;;  %vm56_vm4 = vcmask 203776   ;;  %s1907_s7 = smov 28   ;;  %vm110_vm5 = vcmask 64512  }
   0x3   :  { %v92_v7 = vld [vmem:[%s2157_s2] sm:$0xff]  ;;  %s1908_s8 = smov 104   ;;  %vm90_vm6 = vcmask 228352   ;;  %s1909_s9 = smov 126   ;;  %v95_v36 = vld [vmem:[%s2158_s3 + $0x8] sm:$0xff]  ;;  %vm563_vm7 = vcmask 130048  }
   0x4   :  { %1762 = vmatprep.mubr.msk.f32.mxu1 %vm110_vm5, %v92_v7  ;;  %s1910_s10 = smov 127   ;;  %s1911_s11 = smov 124   ;;  %v94_v34 = vld [vmem:[%s2158_s3] sm:$0xff]  ;;  %v97_v47 = vld [vmem:[%s2159_s4 + $0x8] sm:$0xff] }
   0x5   :  { %s1912_s12 = smov 125   ;;  %s1913_s13 = smov 96   ;;  %v96_v46 = vld [vmem:[%s2159_s4] sm:$0xff] }
   0x6   :  { %1871 = vset.pattern.permute.xlu1 %v1901_v3  ;;  %1869 = vset.pattern.permute.xlu0 %v1902_v4  ;;  %s1916_s1 = smov 103  }
   0x7   :  { %72 = vperm.xlu1 %1871, %v24_v2   ;;  %64 = vperm.xlu0 %1869, %v24_v2  }
   0xb   :  { %75 = vrot.lane.b32.xlu1 %v24_v2, %s1903_s23  ;;  %78 = vrot.lane.b32.xlu0 %v24_v2, %s1904_s24 }
   0xc   :  { %1872 = vset.pattern.permute.xlu1 %v1900_v1 }
   0xf   :  { %31 = vperm.xlu0 %1869, %v23_v5   ;;  %27 = vperm.xlu1 %1872, %v23_v5  }
  0x13   :  { %1873 = vset.pattern.permute.xlu1 %v1899_v0  ;;  %1874 = vset.pattern.permute.xlu0 %v1901_v3 }
  0x14   :  { %35 = vperm.xlu1 %1873, %v23_v5   ;;  %39 = vperm.xlu0 %1874, %v23_v5  }
  0x18   :  { %42 = vrot.lane.b32.xlu1 %v23_v5, %s1903_s23  ;;  %1876 = vset.pattern.permute.xlu0 %v1900_v1 }
  0x19   :  { %1875 = vset.pattern.permute.xlu1 %v1900_v1 }
  0x1c   :  { %45 = vrot.lane.b32.xlu1 %v23_v5, %s1904_s24 }
  0x20   :  { %104 = vrot.lane.b32.xlu1 %v93_v6, %s1905_s28 }
  0x24   :  { %269 = vrot.lane.b32.xlu1 %v92_v7, %s1906_s30 }
  0x7d   :  { %v69_v8 = vpop.permute.xlu1 %68  ;;  %v61_v9 = vpop.permute.xlu0 %60 }
  0x82   :  { %v73_v10 = vpop.permute.xlu1 %72  ;;  %v65_v11 = vpop.permute.xlu0 %64 }
  0x86   :  { %v76_v12 = vpop.permute.xlu1 %75  ;;  %v79_v16 = vpop.permute.xlu0 %78 }
  0x87   :  { %v81_v13 = vsel %vm48_vm0, %v61_v9, %v76_v12  ;;  %v99_v12 = vld [vmem:[%s2160_s5 + $0x8] sm:$0xff] }
  0x88   :  { %v82_v14 = vsel %vm50_vm1, %v81_v13, %v65_v11  ;;  %v98_v13 = vld [vmem:[%s2160_s5] sm:$0xff] }
  0x89   :  { %v83_v15 = vsel %vm52_vm2, %v82_v14, %v69_v8 }
  0x8a   :  { %v84_v17 = vsel %vm54_vm3, %v83_v15, %v79_v16  ;;  %v28_v19 = vpop.permute.xlu1 %27  ;;  %v32_v23 = vpop.permute.xlu0 %31 }
  0x8b   :  { %v1980_v18 = vsel %vm56_vm4, %v84_v17, %v73_v10 }
  0x8c   :  { %87 = vrot.lane.b32.xlu0 %v1980_v18, %s1907_s7 }
  0x8f   :  { %v36_v20 = vpop.permute.xlu1 %35  ;;  %v40_v27 = vpop.permute.xlu0 %39 }
  0x90   :  { %102 = vrot.lane.b32.xlu0 %v92_v7, %s1905_s28 }
  0x93   :  { %v43_v21 = vpop.permute.xlu1 %42 }
  0x94   :  { %271 = vrot.lane.b32.xlu0 %v93_v6, %s1906_s30  ;;  %v49_v22 = vsel %vm48_vm0, %v28_v19, %v43_v21 }
  0x95   :  { %v51_v24 = vsel %vm50_vm1, %v49_v22, %v32_v23 }
  0x96   :  { %v53_v25 = vsel %vm52_vm2, %v51_v24, %v36_v20 }
  0x97   :  { %v46_v26 = vpop.permute.xlu1 %45 }
  0x98   :  { %357 = vrot.lane.b32.xlu0 %v92_v7, %s1908_s8  ;;  %v55_v28 = vsel %vm54_vm3, %v53_v25, %v46_v26 }
  0x99   :  { %v1993_v29 = vsel %vm56_vm4, %v55_v28, %v40_v27 }
  0x9b   :  { %v105_v37 = vpop.permute.xlu1 %104 }
  0x9f   :  { %v270_v38 = vpop.permute.xlu1 %269 }
  0xfe   :  { %v88_v30 = vpop.permute.xlu0 %87 }
  0xff   :  { %v91_v31 = vsel %vm90_vm6, %v1993_v29, %v88_v30 }
 0x100   :  { %273 = vrot.lane.b32.xlu0 %v91_v31, %s1909_s9  ;;  %107 = vrot.lane.b32.xlu1 %v91_v31, %s1910_s10 }
 0x101   :  { %1760 = vmatprep.subr.mxu1 %v91_v31 }
 0x102   :  { %1761 = vmatpush3.msra.mxu1 %v91_v31  ;;  %v103_v32 = vpop.permute.xlu0 %102 }
 0x103   :  { %1757 = vmatprep.mubr.msk.f32.mxu0 %vm110_vm5, %v103_v32  ;;  %1763 = vmatmul.mubr.msk.f32.vlgmr.msra.gmra.mxu1 %vm110_vm5, %v93_v6 }
 0x104   :  { %449 = vrot.lane.b32.xlu0 %v91_v31, %s1911_s11  ;;  %359 = vrot.lane.b32.xlu1 %v93_v6, %s1908_s8 }
 0x106   :  { %v272_v33 = vpop.permute.xlu0 %271 }
 0x108   :  { %361 = vrot.lane.b32.xlu1 %v91_v31, %s1912_s12  ;;  %447 = vrot.lane.b32.xlu0 %v93_v6, %s1913_s13 }
 0x10a   :  { %v358_v35 = vpop.permute.xlu0 %357 }
 0x10b   :  { %1772 = vmatprep.mubr.msk.f32.mxu1 %vm110_vm5, %v358_v35 }
 0x10c   :  { %445 = vrot.lane.b32.xlu1 %v92_v7, %s1913_s13  ;;  %535 = vperm.xlu0 %1876, %v94_v34  }
 0x110   :  { %540 = vperm.xlu1 %1875, %v95_v36   ;;  %551 = vrot.lane.b32.xlu0 %v96_v46, %s1906_s30 }
 0x114   :  { %553 = vrot.lane.b32.xlu1 %v97_v47, %s1906_s30 }
 0x172   :  { %v274_v39 = vpop.permute.xlu0 %273  ;;  %v108_v40 = vpop.permute.xlu1 %107 }
 0x173   :  { %1755 = vmatprep.subr.mxu0 %v108_v40 }
 0x174   :  { %1756 = vmatpush3.msra.mxu0 %v108_v40 }
 0x175   :  { %1758 = vmatmul.mubr.msk.f32.vlgmr.msra.gmra.mxu0 %vm110_vm5, %v105_v37  ;;  %1765 = vmatprep.subr.mxu0 %v274_v39 }
 0x176   :  { %v450_v41 = vpop.permute.xlu0 %449  ;;  %1766 = vmatpush3.msra.mxu0 %v274_v39  ;;  %1767 = vmatprep.mubr.msk.f32.mxu0 %vm110_vm5, %v270_v38  ;;  %v360_v42 = vpop.permute.xlu1 %359 }
 0x177   :  { %1775 = vmatprep.subr.mxu0 %v450_v41 }
 0x179   :  { %1768 = vmatmul.mubr.msk.f32.vlgmr.msra.gmra.mxu0 %vm110_vm5, %v272_v33 }
 0x17a   :  { %1776 = vmatpush3.msra.mxu0 %v450_v41  ;;  %v362_v43 = vpop.permute.xlu1 %361  ;;  %v448_v44 = vpop.permute.xlu0 %447  ;;  %v1914_v41 = vmov 3  }
 0x17b   :  { %1770 = vmatprep.subr.mxu1 %v362_v43 }
 0x17c   :  { %1771 = vmatpush3.msra.mxu1 %v362_v43 }
 0x17d   :  { %1773 = vmatmul.mubr.msk.f32.vlgmr.msra.gmra.mxu1 %vm110_vm5, %v360_v42  ;;  %v1915_v42 = vmov 10  }
 0x17e   :  { %v446_v45 = vpop.permute.xlu1 %445 }
 0x17f   :  { %1777 = vmatprep.mubr.msk.f32.mxu0 %vm110_vm5, %v446_v45 }
 0x180   :  { %1778 = vmatmul.mubr.msk.f32.vlgmr.msra.gmra.mxu0 %vm110_vm5, %v448_v44 }
 0x181   :  { %1791 = vmatprep.mubr.msk.f32.mxu0 %vm563_vm7, %v96_v46 }
 0x187   :  { %v536_v53 = vpop.permute.xlu0 %535 }
 0x18b   :  { %v552_v59 = vpop.permute.xlu0 %551  ;;  %v541_v2 = vpop.permute.xlu1 %540 }
 0x18c   :  { %1784 = vmatprep.mubr.msk.f32.mxu1 %vm563_vm7, %v552_v59 }
 0x18f   :  { %v554_v14 = vpop.permute.xlu1 %553 }
 0x1c3   :  { %v1764_v48 = vpop.f32.mrf.mxu1 }
 0x1c5   :  { %v260_v51 = vpop.f32.mrf.mxu1 }
 0x235   :  { %v1759_v49 = vpop.f32.mrf.mxu0 }
 0x236   :  { %v266_v54 = vadd.f32 %v1764_v48, %v1759_v49  ;;  %v1918_v48 = vmov 17  }
 0x237   :  { %v181_v50 = vpop.f32.mrf.mxu0 }
 0x238   :  { %v261_v56 = vadd.f32 %v260_v51, %v181_v50 }
 0x239   :  { %v1769_v52 = vpop.f32.mrf.mxu0 }
 0x23a   :  { %v356_v57 = vadd.f32 %v1769_v52, %v266_v54 }
 0x23b   :  { %v346_v55 = vpop.f32.mrf.mxu0 }
 0x23c   :  { %v355_v60 = vadd.f32 %v346_v55, %v261_v56 }
 0x23d   :  { %v1774_v58 = vpop.f32.mrf.mxu1 }
 0x23e   :  { %v444_v61 = vadd.f32 %v1774_v58, %v356_v57 }
 0x23f   :  { %v434_v62 = vpop.f32.mrf.mxu1 }
 0x240   :  { %v443_v63 = vadd.f32 %v434_v62, %v355_v60  ;;  %v1779_v0 = vpop.f32.mrf.mxu0 }
 0x241   :  { %v532_v3 = vadd.f32 %v1779_v0, %v444_v61 }
 0x242   :  { %v522_v4 = vpop.f32.mrf.mxu0 }
 0x243   :  { %v531_v5 = vadd.f32 %v522_v4, %v443_v63  ;;  %v544_v6 = vadd.f32 %v541_v2, %v532_v3 }
 0x245   :  { %v546_v7 = vmul.f32 0.01, %v544_v6  ;;  %v543_v8 = vadd.f32 %v536_v53, %v531_v5 }
 0x247   :  { %v548_v9 = vmax.f32 %v544_v6, %v546_v7  ;;  %v545_v10 = vmul.f32 0.01, %v543_v8 }
 0x249   :  { %v547_v11 = vmax.f32 %v543_v8, %v545_v10  ;;  %728 = vrot.lane.b32.xlu0 %v548_v9, %s1909_s9  ;;  %559 = vrot.lane.b32.xlu1 %v548_v9, %s1910_s10 }
 0x24a   :  { %1787 = vmatprep.subr.mxu0 %v548_v9 }
 0x24b   :  { %1788 = vmatpush3.msra.mxu0 %v548_v9  ;;  %v1678_v9 = vld [vmem:[%s2158_s3 + $0x10] sm:$0xff] }
 0x24c   :  { %1789 = vmatprep.subr.mxu0 %v547_v11 }
 0x24d   :  { %1790 = vmatpush3.msra.mxu0 %v547_v11  ;;  %722 = vrot.lane.b32.xlu0 %v96_v46, %s1913_s13 }
 0x24e   :  { %557 = vrot.lane.b32.xlu1 %v547_v11, %s1910_s10  ;;  %1792 = vmatmul.mubr.msk.f32.vlgmr.msra.gmra.mxu0 %vm563_vm7, %v97_v47 }
 0x251   :  { %820 = vperm.xlu0 %1876, %v99_v12  }
 0x252   :  { %726 = vrot.lane.b32.xlu1 %v547_v11, %s1909_s9  ;;  %v1679_v11 = vld [vmem:[%s2158_s3 + $0x18] sm:$0xff] }
 0x255   :  { %1877 = vset.pattern.permute.xlu0 %v1914_v41 }
 0x256   :  { %724 = vrot.lane.b32.xlu1 %v97_v47, %s1913_s13  ;;  %v1917_v47 = vmov 24  }
 0x25a   :  { %815 = vperm.xlu1 %1875, %v98_v13  }
 0x25e   :  { %1878 = vset.pattern.permute.xlu1 %v1915_v42 }
 0x2bb   :  { %v560_v15 = vpop.permute.xlu1 %559  ;;  %v729_v16 = vpop.permute.xlu0 %728 }
 0x2bc   :  { %1780 = vmatprep.subr.mxu1 %v560_v15 }
 0x2bd   :  { %1781 = vmatpush3.msra.mxu1 %v560_v15 }
 0x2bf   :  { %v723_v19 = vpop.permute.xlu0 %722 }
 0x2c0   :  { %v558_v17 = vpop.permute.xlu1 %557 }
 0x2c1   :  { %1782 = vmatprep.subr.mxu1 %v558_v17 }
 0x2c2   :  { %1783 = vmatpush3.msra.mxu1 %v558_v17 }
 0x2c3   :  { %1785 = vmatmul.mubr.msk.f32.vlgmr.msra.gmra.mxu1 %vm563_vm7, %v554_v14  ;;  %1794 = vmatprep.subr.mxu1 %v729_v16 }
 0x2c4   :  { %1795 = vmatpush3.msra.mxu1 %v729_v16  ;;  %v727_v20 = vpop.permute.xlu1 %726  ;;  %1798 = vmatprep.mubr.msk.f32.mxu1 %vm563_vm7, %v723_v19 }
 0x2c5   :  { %1796 = vmatprep.subr.mxu1 %v727_v20 }
 0x2c6   :  { %1797 = vmatpush3.msra.mxu1 %v727_v20 }
 0x2c8   :  { %v725_v21 = vpop.permute.xlu1 %724 }
 0x2c9   :  { %1799 = vmatmul.mubr.msk.f32.vlgmr.msra.gmra.mxu1 %vm563_vm7, %v725_v21 }
 0x2cc   :  { %v821_v31 = vpop.permute.xlu0 %820 }
 0x2d5   :  { %v816_v35 = vpop.permute.xlu1 %815 }
 0x30e   :  { %v1793_v23 = vpop.f32.mrf.mxu0 }
 0x310   :  { %v713_v25 = vpop.f32.mrf.mxu0 }
 0x383   :  { %v1786_v22 = vpop.f32.mrf.mxu1 }
 0x384   :  { %v719_v26 = vadd.f32 %v1793_v23, %v1786_v22  ;;  %v1680_v22 = vld [vmem:[%s2159_s4 + $0x10] sm:$0xff]  ;;  %v1681_v23 = vld [vmem:[%s2159_s4 + $0x18] sm:$0xff] }
 0x385   :  { %v634_v24 = vpop.f32.mrf.mxu1 }
 0x386   :  { %v714_v28 = vadd.f32 %v713_v25, %v634_v24 }
 0x389   :  { %v1800_v27 = vpop.f32.mrf.mxu1 }
 0x38a   :  { %v812_v30 = vadd.f32 %v1800_v27, %v719_v26 }
 0x38b   :  { %v802_v32 = vpop.f32.mrf.mxu1 }
 0x38c   :  { %v824_v33 = vadd.f32 %v821_v31, %v812_v30  ;;  %v811_v34 = vadd.f32 %v802_v32, %v714_v28 }
 0x38e   :  { %1887 = vtanh.f32 %v824_v33  ;;  %v823_v36 = vadd.f32 %v816_v35, %v811_v34 }
 0x390   :  { %1889 = vtanh.f32 %v823_v36 }
 0x39b   :  { %v1888_v37 = vpop.eup %1887 }
 0x39c   :  { %v834_v38 = vmul.f32 1.442695, %v1888_v37 }
 0x39d   :  { %v1890_v39 = vpop.eup %1889 }
 0x39e   :  { %1891 = vpow2.f32 %v834_v38  ;;  %v827_v40 = vmul.f32 1.442695, %v1890_v39 }
 0x3a0   :  { %1893 = vpow2.f32 %v827_v40 }
 0x3ab   :  { %v1892_v43 = vpop.eup %1891 }
 0x3ac   :  { %837 = vrot.lane.b32.xlu0 %v1892_v43, %s1916_s1 }
 0x3ad   :  { %v1894_v44 = vpop.eup %1893 }
 0x3ae   :  { %830 = vrot.lane.b32.xlu1 %v1894_v44, %s1903_s23 }
 0x41e   :  { %v838_v45 = vpop.permute.xlu0 %837 }
 0x41f   :  { %v2048_v46 = vmul.f32 %v838_v45, %v1993_v29  ;;  %v1676_v29 = vld [vmem:[%s2157_s2 + $0x10] sm:$0xff] }
 0x420   :  { %v831_v49 = vpop.permute.xlu1 %830  ;;  %1808 = vmatprep.mubr.msk.f32.mxu1 %vm110_vm5, %v1676_v29 }
 0x421   :  { %865 = vperm.xlu0 %1877, %v2048_v46   ;;  %869 = vperm.xlu1 %1878, %v2048_v46   ;;  %v2055_v50 = vmul.f32 %v831_v49, %v1980_v18  ;;  %v1677_v18 = vld [vmem:[%s2157_s2 + $0x18] sm:$0xff] }
 0x425   :  { %1880 = vset.pattern.permute.xlu0 %v1917_v47  ;;  %1879 = vset.pattern.permute.xlu1 %v1918_v48 }
 0x426   :  { %877 = vperm.xlu0 %1880, %v2048_v46   ;;  %873 = vperm.xlu1 %1879, %v2048_v46  }
 0x42a   :  { %1883 = vset.pattern.permute.xlu0 %v1918_v48  ;;  %1881 = vset.pattern.permute.xlu1 %v1914_v41 }
 0x42b   :  { %851 = vperm.xlu0 %1883, %v2055_v50   ;;  %843 = vperm.xlu1 %1881, %v2055_v50  }
 0x42f   :  { %1882 = vset.pattern.permute.xlu1 %v1915_v42  ;;  %1885 = vset.pattern.permute.xlu0 %v1900_v1 }
 0x430   :  { %847 = vperm.xlu1 %1882, %v2055_v50   ;;  %906 = vrot.lane.b32.xlu0 %v1677_v18, %s1905_s28 }
 0x434   :  { %1884 = vset.pattern.permute.xlu1 %v1917_v47  ;;  %1070 = vrot.lane.b32.xlu0 %v1676_v29, %s1906_s30 }
 0x435   :  { %855 = vperm.xlu1 %1884, %v2055_v50  }
 0x439   :  { %1886 = vset.pattern.permute.xlu1 %v1900_v1 }
 0x49c   :  { %v866_v51 = vpop.permute.xlu0 %865  ;;  %v870_v52 = vpop.permute.xlu1 %869 }
 0x49d   :  { %v880_v53 = vsel %vm48_vm0, %v866_v51, %v2048_v46 }
 0x49e   :  { %v881_v54 = vsel %vm50_vm1, %v880_v53, %v870_v52  ;;  %v1682_v52 = vld [vmem:[%s2160_s5 + $0x10] sm:$0xff]  ;;  %v1683_v53 = vld [vmem:[%s2160_s5 + $0x18] sm:$0xff]  ;;  %s1919_s5 = smov 119  }
 0x4a1   :  { %v874_v55 = vpop.permute.xlu1 %873  ;;  %v878_v57 = vpop.permute.xlu0 %877 }
 0x4a2   :  { %v882_v56 = vsel %vm52_vm2, %v881_v54, %v874_v55 }
 0x4a3   :  { %v883_v58 = vsel %vm54_vm3, %v882_v56, %v2048_v46 }
 0x4a4   :  { %v884_v59 = vsel %vm56_vm4, %v883_v58, %v878_v57 }
 0x4a5   :  { %886 = vrot.lane.b32.xlu1 %v884_v59, %s1907_s7 }
 0x4a6   :  { %v844_v1 = vpop.permute.xlu1 %843  ;;  %v852_v63 = vpop.permute.xlu0 %851 }
 0x4a7   :  { %v858_v61 = vsel %vm48_vm0, %v844_v1, %v2055_v50 }
 0x4a9   :  { %904 = vrot.lane.b32.xlu1 %v1676_v29, %s1905_s28 }
 0x4aa   :  { %v907_v12 = vpop.permute.xlu0 %906 }
 0x4ab   :  { %v848_v60 = vpop.permute.xlu1 %847 }
 0x4ac   :  { %v859_v62 = vsel %vm50_vm1, %v858_v61, %v848_v60 }
 0x4ad   :  { %1072 = vrot.lane.b32.xlu1 %v1677_v18, %s1906_s30  ;;  %v860_v0 = vsel %vm52_vm2, %v859_v62, %v852_v63 }
 0x4ae   :  { %v861_v3 = vsel %vm54_vm3, %v860_v0, %v2055_v50  ;;  %v1071_v13 = vpop.permute.xlu0 %1070 }
 0x4b0   :  { %v856_v2 = vpop.permute.xlu1 %855 }
 0x4b1   :  { %1158 = vrot.lane.b32.xlu1 %v1676_v29, %s1908_s8  ;;  %v862_v4 = vsel %vm56_vm4, %v861_v3, %v856_v2 }
 0x517   :  { %v887_v5 = vpop.permute.xlu1 %886 }
 0x518   :  { %v889_v6 = vsel %vm90_vm6, %v862_v4, %v887_v5 }
 0x519   :  { %1074 = vrot.lane.b32.xlu1 %v889_v6, %s1909_s9  ;;  %909 = vrot.lane.b32.xlu0 %v889_v6, %s1910_s10 }
 0x51a   :  { %1806 = vmatprep.subr.mxu1 %v889_v6 }
 0x51b   :  { %1807 = vmatpush3.msra.mxu1 %v889_v6  ;;  %v905_v7 = vpop.permute.xlu1 %904 }
 0x51c   :  { %1803 = vmatprep.mubr.msk.f32.mxu0 %vm110_vm5, %v905_v7  ;;  %1809 = vmatmul.mubr.msk.f32.vlgmr.msra.gmra.mxu1 %vm110_vm5, %v1677_v18 }
 0x51d   :  { %1250 = vrot.lane.b32.xlu1 %v889_v6, %s1911_s11  ;;  %1160 = vrot.lane.b32.xlu0 %v1677_v18, %s1908_s8 }
 0x51f   :  { %v1073_v8 = vpop.permute.xlu1 %1072 }
 0x521   :  { %1162 = vrot.lane.b32.xlu0 %v889_v6, %s1912_s12  ;;  %1248 = vrot.lane.b32.xlu1 %v1677_v18, %s1913_s13 }
 0x523   :  { %v1159_v10 = vpop.permute.xlu1 %1158 }
 0x524   :  { %1818 = vmatprep.mubr.msk.f32.mxu1 %vm110_vm5, %v1159_v10 }
 0x525   :  { %1246 = vrot.lane.b32.xlu0 %v1676_v29, %s1913_s13  ;;  %1336 = vperm.xlu1 %1886, %v1678_v9  }
 0x529   :  { %1341 = vperm.xlu0 %1885, %v1679_v11   ;;  %1352 = vrot.lane.b32.xlu1 %v1680_v22, %s1906_s30 }
 0x52d   :  { %1354 = vrot.lane.b32.xlu0 %v1681_v23, %s1906_s30 }
 0x58b   :  { %v910_v14 = vpop.permute.xlu0 %909  ;;  %v1075_v15 = vpop.permute.xlu1 %1074 }
 0x58c   :  { %1801 = vmatprep.subr.mxu0 %v910_v14 }
 0x58d   :  { %1802 = vmatpush3.msra.mxu0 %v910_v14 }
 0x58e   :  { %1804 = vmatmul.mubr.msk.f32.vlgmr.msra.gmra.mxu0 %vm110_vm5, %v907_v12  ;;  %1811 = vmatprep.subr.mxu0 %v1075_v15 }
 0x58f   :  { %v1161_v16 = vpop.permute.xlu0 %1160  ;;  %1812 = vmatpush3.msra.mxu0 %v1075_v15  ;;  %1813 = vmatprep.mubr.msk.f32.mxu0 %vm110_vm5, %v1071_v13  ;;  %v1251_v17 = vpop.permute.xlu1 %1250 }
 0x590   :  { %1821 = vmatprep.subr.mxu0 %v1251_v17 }
 0x592   :  { %1814 = vmatmul.mubr.msk.f32.vlgmr.msra.gmra.mxu0 %vm110_vm5, %v1073_v8 }
 0x593   :  { %1822 = vmatpush3.msra.mxu0 %v1251_v17  ;;  %v1163_v19 = vpop.permute.xlu0 %1162  ;;  %v1249_v20 = vpop.permute.xlu1 %1248 }
 0x594   :  { %1816 = vmatprep.subr.mxu1 %v1163_v19 }
 0x595   :  { %1817 = vmatpush3.msra.mxu1 %v1163_v19 }
 0x596   :  { %1819 = vmatmul.mubr.msk.f32.vlgmr.msra.gmra.mxu1 %vm110_vm5, %v1161_v16 }
 0x597   :  { %v1247_v21 = vpop.permute.xlu0 %1246 }
 0x598   :  { %1823 = vmatprep.mubr.msk.f32.mxu0 %vm110_vm5, %v1247_v21 }
 0x599   :  { %1824 = vmatmul.mubr.msk.f32.vlgmr.msra.gmra.mxu0 %vm110_vm5, %v1249_v20 }
 0x59a   :  { %1837 = vmatprep.mubr.msk.f32.mxu0 %vm563_vm7, %v1680_v22 }
 0x5a0   :  { %v1337_v24 = vpop.permute.xlu1 %1336 }
 0x5a4   :  { %v1353_v28 = vpop.permute.xlu1 %1352  ;;  %v1342_v42 = vpop.permute.xlu0 %1341 }
 0x5a5   :  { %1830 = vmatprep.mubr.msk.f32.mxu1 %vm563_vm7, %v1353_v28 }
 0x5a8   :  { %v1355_v54 = vpop.permute.xlu0 %1354 }
 0x5dc   :  { %v1810_v26 = vpop.f32.mrf.mxu1 }
 0x5de   :  { %v1061_v30 = vpop.f32.mrf.mxu1 }
 0x64e   :  { %v1805_v25 = vpop.f32.mrf.mxu0 }
 0x64f   :  { %v1067_v32 = vadd.f32 %v1810_v26, %v1805_v25 }
 0x650   :  { %v982_v27 = vpop.f32.mrf.mxu0 }
 0x651   :  { %v1062_v34 = vadd.f32 %v1061_v30, %v982_v27 }
 0x652   :  { %v1815_v31 = vpop.f32.mrf.mxu0 }
 0x653   :  { %v1157_v35 = vadd.f32 %v1815_v31, %v1067_v32 }
 0x654   :  { %v1147_v33 = vpop.f32.mrf.mxu0 }
 0x655   :  { %v1156_v37 = vadd.f32 %v1147_v33, %v1062_v34 }
 0x656   :  { %v1820_v36 = vpop.f32.mrf.mxu1 }
 0x657   :  { %v1245_v38 = vadd.f32 %v1820_v36, %v1157_v35 }
 0x658   :  { %v1235_v39 = vpop.f32.mrf.mxu1 }
 0x659   :  { %v1244_v40 = vadd.f32 %v1235_v39, %v1156_v37  ;;  %v1825_v41 = vpop.f32.mrf.mxu0 }
 0x65a   :  { %v1333_v43 = vadd.f32 %v1825_v41, %v1245_v38 }
 0x65b   :  { %v1323_v44 = vpop.f32.mrf.mxu0 }
 0x65c   :  { %v1345_v45 = vadd.f32 %v1342_v42, %v1333_v43  ;;  %v1332_v47 = vadd.f32 %v1323_v44, %v1244_v40 }
 0x65e   :  { %v1347_v48 = vmul.f32 0.01, %v1345_v45  ;;  %v1344_v49 = vadd.f32 %v1337_v24, %v1332_v47 }
 0x660   :  { %v1349_v29 = vmax.f32 %v1345_v45, %v1347_v48  ;;  %v1346_v18 = vmul.f32 0.01, %v1344_v49 }
 0x662   :  { %v1348_v51 = vmax.f32 %v1344_v49, %v1346_v18  ;;  %1360 = vrot.lane.b32.xlu1 %v1349_v29, %s1910_s10  ;;  %1833 = vmatprep.subr.mxu0 %v1349_v29 }
 0x663   :  { %1834 = vmatpush3.msra.mxu0 %v1349_v29 }
 0x664   :  { %1358 = vrot.lane.b32.xlu0 %v1348_v51, %s1910_s10  ;;  %1835 = vmatprep.subr.mxu0 %v1348_v51 }
 0x665   :  { %1836 = vmatpush3.msra.mxu0 %v1348_v51 }
 0x666   :  { %1528 = vrot.lane.b32.xlu1 %v1349_v29, %s1909_s9  ;;  %1838 = vmatmul.mubr.msk.f32.vlgmr.msra.gmra.mxu0 %vm563_vm7, %v1681_v23 }
 0x668   :  { %1526 = vrot.lane.b32.xlu0 %v1348_v51, %s1909_s9 }
 0x66a   :  { %1522 = vrot.lane.b32.xlu1 %v1680_v22, %s1913_s13 }
 0x66c   :  { %1524 = vrot.lane.b32.xlu0 %v1681_v23, %s1913_s13 }
 0x66e   :  { %1615 = vperm.xlu1 %1886, %v1682_v52  }
 0x670   :  { %1620 = vperm.xlu0 %1885, %v1683_v53  }
 0x6d4   :  { %v1361_v55 = vpop.permute.xlu1 %1360 }
 0x6d5   :  { %1826 = vmatprep.subr.mxu1 %v1361_v55 }
 0x6d6   :  { %v1359_v56 = vpop.permute.xlu0 %1358  ;;  %1827 = vmatpush3.msra.mxu1 %v1361_v55 }
 0x6d7   :  { %1828 = vmatprep.subr.mxu1 %v1359_v56 }
 0x6d8   :  { %1829 = vmatpush3.msra.mxu1 %v1359_v56  ;;  %v1529_v57 = vpop.permute.xlu1 %1528 }
 0x6d9   :  { %1831 = vmatmul.mubr.msk.f32.vlgmr.msra.gmra.mxu1 %vm563_vm7, %v1355_v54  ;;  %1840 = vmatprep.subr.mxu1 %v1529_v57 }
 0x6da   :  { %v1527_v58 = vpop.permute.xlu0 %1526  ;;  %1841 = vmatpush3.msra.mxu1 %v1529_v57 }
 0x6db   :  { %1842 = vmatprep.subr.mxu1 %v1527_v58 }
 0x6dc   :  { %1843 = vmatpush3.msra.mxu1 %v1527_v58  ;;  %v1523_v59 = vpop.permute.xlu1 %1522 }
 0x6dd   :  { %1844 = vmatprep.mubr.msk.f32.mxu1 %vm563_vm7, %v1523_v59 }
 0x6de   :  { %v1525_v1 = vpop.permute.xlu0 %1524 }
 0x6df   :  { %1845 = vmatmul.mubr.msk.f32.vlgmr.msra.gmra.mxu1 %vm563_vm7, %v1525_v1 }
 0x6e9   :  { %v1616_v9 = vpop.permute.xlu1 %1615 }
 0x6eb   :  { %v1621_v5 = vpop.permute.xlu0 %1620 }
 0x726   :  { %v1839_v61 = vpop.f32.mrf.mxu0 }
 0x728   :  { %v1513_v63 = vpop.f32.mrf.mxu0 }
 0x799   :  { %v1832_v60 = vpop.f32.mrf.mxu1 }
 0x79a   :  { %v1519_v0 = vadd.f32 %v1839_v61, %v1832_v60 }
 0x79b   :  { %v1434_v62 = vpop.f32.mrf.mxu1 }
 0x79c   :  { %v1514_v3 = vadd.f32 %v1513_v63, %v1434_v62 }
 0x79f   :  { %v1846_v2 = vpop.f32.mrf.mxu1 }
 0x7a0   :  { %v1612_v4 = vadd.f32 %v1846_v2, %v1519_v0 }
 0x7a1   :  { %v1602_v6 = vpop.f32.mrf.mxu1 }
 0x7a2   :  { %v1624_v7 = vadd.f32 %v1621_v5, %v1612_v4  ;;  %v1611_v8 = vadd.f32 %v1602_v6, %v1514_v3 }
 0x7a4   :  { %1895 = vtanh.f32 %v1624_v7  ;;  %v1623_v10 = vadd.f32 %v1616_v9, %v1611_v8 }
 0x7a6   :  { %1897 = vtanh.f32 %v1623_v10 }
 0x7b1   :  { %v1896_v11 = vpop.eup %1895 }
 0x7b2   :  { %1642 = vrot.lane.b32.xlu0 %v1896_v11, %s1916_s1 }
 0x7b3   :  { %v1898_v12 = vpop.eup %1897 }
 0x7b4   :  { %1628 = vrot.lane.b32.xlu1 %v1898_v12, %s1903_s23 }
 0x824   :  { %v1643_v15 = vpop.permute.xlu0 %1642 }
 0x825   :  { %v1645_v16 = vsub.f32 %v2055_v50, %v1643_v15 }
 0x826   :  { %v1629_v13 = vpop.permute.xlu1 %1628 }
 0x827   :  { %v1631_v14 = vadd.f32 %v1629_v13, %v2048_v46 }
 0x829   :  { %1636 = vrot.lane.b32.xlu0 %v1631_v14, %s1919_s5  ;;  %1633 = vrot.lane.b32.xlu1 %v1631_v14, %s1912_s12 }
 0x82d   :  { %1650 = vrot.lane.b32.xlu0 %v1645_v16, %s1919_s5  ;;  %1647 = vrot.lane.b32.xlu1 %v1645_v16, %s1912_s12 }
 0x89b   :  { %v1637_v17 = vpop.permute.xlu0 %1636  ;;  %v1634_v19 = vpop.permute.xlu1 %1633 }
 0x89c   :  { %v1639_v20 = vsel %vm110_vm5, %v1634_v19, %v1637_v17 }
 0x89d   :  { %1640 = vst.msk [vmem:[%s2161_s6] sm:$0xff] %vm563_vm7, %v1639_v20 }
 0x89f   :  { %v1651_v46 = vpop.permute.xlu0 %1650  ;;  %v1648_v21 = vpop.permute.xlu1 %1647 }
 0x8a0   :  { %v1653_v22 = vsel %vm110_vm5, %v1648_v21, %v1651_v46 }
 0x8a1   :  { %1700 = vst.msk [vmem:[%s2161_s6 + $0x8] sm:$0xff] %vm563_vm7, %v1653_v22 }

// kernel: scinet_forward.5
= control target key start
LH: loop header
LB: loop body
LE: loop exit
PB: predicated region body
PF: predicated region fallthrough
CT: control target
= control target key end

     0   :  { %s2528_s21 = smov 0   ;;  %s2530_s22 = smov 0   ;;  %s2752_s0 = inlined_call_operand.vmem [shape: f32[2,8,8], index: 0, kind: input, shape index: {}]   ;;  %s2753_s1 = inlined_call_operand.vmem [shape: f32[2,8,8], index: 1, kind: input, shape index: {}]   ;;  %s2754_s2 = inlined_call_operand.vmem [shape: f32[2,2,16,40], index: 2, kind: input, shape index: {}]   ;;  %s2755_s3 = inlined_call_operand.vmem [shape: f32[2,2,16,1], index: 3, kind: input, shape index: {}]   ;;  %s2756_s4 = inlined_call_operand.vmem [shape: f32[2,2,16,48], index: 4, kind: input, shape index: {}]   ;;  %s2757_s5 = inlined_call_operand.vmem [shape: f32[2,2,16,1], index: 5, kind: input, shape index: {}]   ;;  %s2758_s6 = inlined_call_operand.vmem [shape: f32[4,8,8], index: 6, kind: output, shape index: {}]  }
   0x1   :  { %s2532_s23 = smov 0  }
   0x2 LB: > { %s28_s24 = sadd.s32 1, %s2467_s22  ;;  %p2168_p0 = scmp.ge.s32.totalorder %s2471_s23, 1  ;;  %s2471_s23 = sphi %s2532_s23, %s16_s23   ;;  %s2467_s22 = sphi %s2530_s22, %s2760_s22   ;;  %s2463_s21 = sphi %s2528_s21, %s2759_s21  }
   0x3   : > { %p30_p1 = scmp.ge.s32.totalorder %s28_s24, 2  ;;  %p284_p2 = scmp.lt.s32.totalorder %s2471_s23, 3 }
   0x5   : > { %s2762_s24 = smov (%p30_p1, %s28_s24), 0  ;;  %p285_p3 = pnand %p2168_p0, %p284_p2 }
   0x6   : > { %p346_p4 = scmp.lt.s32.totalorder (!%p285_p3), %s2463_s21, 1  ;;  %s2477_s9 = smov (!%p285_p3), 3  }
   0x7   : > { %288 = sbr.rel (%p285_p3) target bundleno = 2225 (0x8b1), region = 44  ;;  %s2478_s10 = smov (!%p285_p3), 9  }
   0x8   : > { %s2479_s15 = smov (!%p285_p3), 120   ;;  %s2480_s16 = smov (!%p285_p3), 112  }
   0x9   : > { %s2481_s17 = smov (!%p285_p3), 20   ;;  %s2482_s18 = smov (!%p285_p3), 104  }
   0xa   : > { %s2483_s19 = smov (!%p285_p3), 126   ;;  %s2484_s20 = smov (!%p285_p3), 127  }
   0xb   : > { %s2487_s27 = smov (!%p285_p3), 96  }
   0xc   : > { %v2473_v0 = vmov 4   ;;  %v2474_v1 = vmov 0   ;;  %s347_s25 = scalar_select %p346_p4, %s2463_s21, 1  ;;  %v2475_v3 = vmov 7   ;;  %v2476_v4 = vmov 3  }
   0xd   : > { %2420 = vset.pattern.permute.xlu1 %v2473_v0  ;;  %2418 = vset.pattern.permute.xlu0 %v2474_v1  ;;  %vm414_vm0 = vcmask 23552   ;;  %vm416_vm1 = vcmask 56320   ;;  %vm418_vm2 = vcmask 80896   ;;  %vm420_vm3 = vcmask 105472  }
   0xe   : > { %s2169_s26 = sshll.u32 %s347_s25, 3  ;;  %s2562_s11 = sshll.u32 %s347_s25, 5  ;;  %vm422_vm4 = vcmask 138240   ;;  %vm476_vm5 = vcmask 64512   ;;  %vm456_vm6 = vcmask 162816   ;;  %vm929_vm7 = vcmask 130048  }
   0xf   : > { %s359_s29 = scalar_lea.vmem %s2753_s1, %s2169_s26  ;;  %s352_s8 = scalar_lea.vmem %s2752_s0, %s2169_s26  ;;  %vm2005_vm8 = vcmask 31744  }
  0x10   : > { %v390_v2 = vld [vmem:[%s359_s29] sm:$0xff]  ;;  %s2569_s14 = scalar_lea.vmem %s2754_s2, %s2562_s11  ;;  %s2485_s25 = smov 124  }
  0x11   : > { %434 = vperm.xlu1 %2420, %v390_v2   ;;  %426 = vperm.xlu0 %2418, %v390_v2   ;;  %v389_v5 = vld [vmem:[%s352_s8] sm:$0xff]  ;;  %v459_v6 = vld [vmem:[%s2569_s14 + $0x8] sm:$0xff]  ;;  %s2486_s26 = smov 125   ;;  %s2609_s30 = scalar_lea.vmem %s2755_s3, %s2562_s11 }
  0x12   : > { %v458_v7 = vld [vmem:[%s2569_s14] sm:$0xff]  ;;  %v461_v36 = vld [vmem:[%s2609_s30 + $0x8] sm:$0xff]  ;;  %s2639_s28 = scalar_lea.vmem %s2757_s5, %s2562_s11 }
  0x13   : > { %2289 = vmatprep.mubr.msk.f32.mxu1 %vm476_vm5, %v458_v7  ;;  %v460_v34 = vld [vmem:[%s2609_s30] sm:$0xff] }
  0x15   : > { %2421 = vset.pattern.permute.xlu1 %v2475_v3  ;;  %2419 = vset.pattern.permute.xlu0 %v2476_v4 }
  0x16   : > { %438 = vperm.xlu1 %2421, %v390_v2   ;;  %430 = vperm.xlu0 %2419, %v390_v2  }
  0x1a   : > { %441 = vrot.lane.b32.xlu1 %v390_v2, %s2477_s9  ;;  %444 = vrot.lane.b32.xlu0 %v390_v2, %s2478_s10 }
  0x1b   : > { %2422 = vset.pattern.permute.xlu1 %v2474_v1 }
  0x1e   : > { %397 = vperm.xlu0 %2419, %v389_v5   ;;  %393 = vperm.xlu1 %2422, %v389_v5  }
  0x22   : > { %2423 = vset.pattern.permute.xlu1 %v2473_v0  ;;  %2424 = vset.pattern.permute.xlu0 %v2475_v3 }
  0x23   : > { %401 = vperm.xlu1 %2423, %v389_v5   ;;  %405 = vperm.xlu0 %2424, %v389_v5  }
  0x27   : > { %408 = vrot.lane.b32.xlu1 %v389_v5, %s2477_s9  ;;  %2426 = vset.pattern.permute.xlu0 %v2474_v1 }
  0x28   : > { %2425 = vset.pattern.permute.xlu1 %v2474_v1 }
  0x2b   : > { %411 = vrot.lane.b32.xlu1 %v389_v5, %s2478_s10  ;;  %s2625_s10 = scalar_lea.vmem %s2756_s4, %s2562_s11  ;;  %s2489_s11 = smov 111  }
  0x2c   : > { %v462_v46 = vld [vmem:[%s2625_s10] sm:$0xff]  ;;  %v463_v47 = vld [vmem:[%s2625_s10 + $0x8] sm:$0xff] }
  0x2f   : > { %470 = vrot.lane.b32.xlu1 %v459_v6, %s2479_s15 }
  0x33   : > { %635 = vrot.lane.b32.xlu1 %v458_v7, %s2480_s16 }
  0x8c   : > { %v435_v8 = vpop.permute.xlu1 %434  ;;  %v427_v9 = vpop.permute.xlu0 %426 }
  0x91   : > { %v439_v10 = vpop.permute.xlu1 %438  ;;  %v431_v11 = vpop.permute.xlu0 %430 }
  0x95   : > { %v442_v12 = vpop.permute.xlu1 %441  ;;  %v445_v16 = vpop.permute.xlu0 %444 }
  0x96   : > { %v447_v13 = vsel %vm414_vm0, %v427_v9, %v442_v12 }
  0x97   : > { %v448_v14 = vsel %vm416_vm1, %v447_v13, %v431_v11  ;;  %v465_v13 = vld [vmem:[%s2639_s28 + $0x8] sm:$0xff] }
  0x98   : > { %v449_v15 = vsel %vm418_vm2, %v448_v14, %v435_v8  ;;  %v464_v14 = vld [vmem:[%s2639_s28] sm:$0xff] }
  0x99   : > { %v450_v17 = vsel %vm420_vm3, %v449_v15, %v445_v16  ;;  %v394_v19 = vpop.permute.xlu1 %393  ;;  %v398_v23 = vpop.permute.xlu0 %397 }
  0x9a   : > { %v2580_v18 = vsel %vm422_vm4, %v450_v17, %v439_v10 }
  0x9b   : > { %453 = vrot.lane.b32.xlu0 %v2580_v18, %s2481_s17 }
  0x9e   : > { %v402_v20 = vpop.permute.xlu1 %401  ;;  %v406_v27 = vpop.permute.xlu0 %405 }
  0x9f   : > { %468 = vrot.lane.b32.xlu0 %v458_v7, %s2479_s15 }
  0xa2   : > { %v409_v21 = vpop.permute.xlu1 %408 }
  0xa3   : > { %637 = vrot.lane.b32.xlu0 %v459_v6, %s2480_s16  ;;  %v415_v22 = vsel %vm414_vm0, %v394_v19, %v409_v21 }
  0xa4   : > { %v417_v24 = vsel %vm416_vm1, %v415_v22, %v398_v23 }
  0xa5   : > { %v419_v25 = vsel %vm418_vm2, %v417_v24, %v402_v20 }
  0xa6   : > { %v412_v26 = vpop.permute.xlu1 %411 }
  0xa7   : > { %723 = vrot.lane.b32.xlu0 %v458_v7, %s2482_s18  ;;  %v421_v28 = vsel %vm420_vm3, %v419_v25, %v412_v26 }
  0xa8   : > { %v2593_v29 = vsel %vm422_vm4, %v421_v28, %v406_v27 }
  0xaa   : > { %v471_v37 = vpop.permute.xlu1 %470 }
  0xae   : > { %v636_v38 = vpop.permute.xlu1 %635 }
 0x10d   : > { %v454_v30 = vpop.permute.xlu0 %453 }
 0x10e   : > { %v457_v31 = vsel %vm456_vm6, %v2593_v29, %v454_v30 }
 0x10f   : > { %639 = vrot.lane.b32.xlu0 %v457_v31, %s2483_s19  ;;  %473 = vrot.lane.b32.xlu1 %v457_v31, %s2484_s20 }
 0x110   : > { %2287 = vmatprep.subr.mxu1 %v457_v31 }
 0x111   : > { %2288 = vmatpush3.msra.mxu1 %v457_v31  ;;  %v469_v32 = vpop.permute.xlu0 %468 }
 0x112   : > { %2284 = vmatprep.mubr.msk.f32.mxu0 %vm476_vm5, %v469_v32  ;;  %2290 = vmatmul.mubr.msk.f32.vlgmr.msra.gmra.mxu1 %vm476_vm5, %v459_v6 }
 0x113   : > { %815 = vrot.lane.b32.xlu0 %v457_v31, %s2485_s25  ;;  %725 = vrot.lane.b32.xlu1 %v459_v6, %s2482_s18 }
 0x115   : > { %v638_v33 = vpop.permute.xlu0 %637 }
 0x117   : > { %727 = vrot.lane.b32.xlu1 %v457_v31, %s2486_s26  ;;  %813 = vrot.lane.b32.xlu0 %v459_v6, %s2487_s27 }
 0x119   : > { %v724_v35 = vpop.permute.xlu0 %723 }
 0x11a   : > { %2299 = vmatprep.mubr.msk.f32.mxu1 %vm476_vm5, %v724_v35 }
 0x11b   : > { %811 = vrot.lane.b32.xlu1 %v458_v7, %s2487_s27  ;;  %901 = vperm.xlu0 %2426, %v460_v34  }
 0x11f   : > { %906 = vperm.xlu1 %2425, %v461_v36   ;;  %917 = vrot.lane.b32.xlu0 %v462_v46, %s2480_s16 }
 0x123   : > { %919 = vrot.lane.b32.xlu1 %v463_v47, %s2480_s16 }
 0x181   : > { %v640_v39 = vpop.permute.xlu0 %639  ;;  %v474_v40 = vpop.permute.xlu1 %473 }
 0x182   : > { %2282 = vmatprep.subr.mxu0 %v474_v40 }
 0x183   : > { %2283 = vmatpush3.msra.mxu0 %v474_v40 }
 0x184   : > { %2285 = vmatmul.mubr.msk.f32.vlgmr.msra.gmra.mxu0 %vm476_vm5, %v471_v37  ;;  %2292 = vmatprep.subr.mxu0 %v640_v39 }
 0x185   : > { %v816_v41 = vpop.permute.xlu0 %815  ;;  %2293 = vmatpush3.msra.mxu0 %v640_v39  ;;  %2294 = vmatprep.mubr.msk.f32.mxu0 %vm476_vm5, %v636_v38  ;;  %v726_v42 = vpop.permute.xlu1 %725 }
 0x186   : > { %2302 = vmatprep.subr.mxu0 %v816_v41 }
 0x188   : > { %2295 = vmatmul.mubr.msk.f32.vlgmr.msra.gmra.mxu0 %vm476_vm5, %v638_v33 }
 0x189   : > { %2303 = vmatpush3.msra.mxu0 %v816_v41  ;;  %v728_v43 = vpop.permute.xlu1 %727  ;;  %v814_v44 = vpop.permute.xlu0 %813 }
 0x18a   : > { %2297 = vmatprep.subr.mxu1 %v728_v43 }
 0x18b   : > { %2298 = vmatpush3.msra.mxu1 %v728_v43 }
 0x18c   : > { %2300 = vmatmul.mubr.msk.f32.vlgmr.msra.gmra.mxu1 %vm476_vm5, %v726_v42  ;;  %v2488_v42 = vmov 6  }
 0x18d   : > { %v812_v45 = vpop.permute.xlu1 %811 }
 0x18e   : > { %2304 = vmatprep.mubr.msk.f32.mxu0 %vm476_vm5, %v812_v45 }
 0x18f   : > { %2305 = vmatmul.mubr.msk.f32.vlgmr.msra.gmra.mxu0 %vm476_vm5, %v814_v44 }
 0x190   : > { %2318 = vmatprep.mubr.msk.f32.mxu0 %vm929_vm7, %v462_v46 }
 0x196   : > { %v902_v53 = vpop.permute.xlu0 %901 }
 0x19a   : > { %v918_v59 = vpop.permute.xlu0 %917  ;;  %v907_v2 = vpop.permute.xlu1 %906 }
 0x19b   : > { %2311 = vmatprep.mubr.msk.f32.mxu1 %vm929_vm7, %v918_v59 }
 0x19e   : > { %v920_v15 = vpop.permute.xlu1 %919 }
 0x1d2   : > { %v2291_v48 = vpop.f32.mrf.mxu1 }
 0x1d4   : > { %v626_v51 = vpop.f32.mrf.mxu1 }
 0x244   : > { %v2286_v49 = vpop.f32.mrf.mxu0 }
 0x245   : > { %v632_v54 = vadd.f32 %v2291_v48, %v2286_v49  ;;  %v2491_v48 = vmov 13  }
 0x246   : > { %v547_v50 = vpop.f32.mrf.mxu0 }
 0x247   : > { %v627_v56 = vadd.f32 %v626_v51, %v547_v50  ;;  %v2198_v51 = vld [vmem:[%s2569_s14 + $0x18] sm:$0xff] }
 0x248   : > { %v2296_v52 = vpop.f32.mrf.mxu0 }
 0x249   : > { %v722_v57 = vadd.f32 %v2296_v52, %v632_v54 }
 0x24a   : > { %v712_v55 = vpop.f32.mrf.mxu0 }
 0x24b   : > { %v721_v60 = vadd.f32 %v712_v55, %v627_v56 }
 0x24c   : > { %v2301_v58 = vpop.f32.mrf.mxu1 }
 0x24d   : > { %v810_v61 = vadd.f32 %v2301_v58, %v722_v57 }
 0x24e   : > { %v800_v62 = vpop.f32.mrf.mxu1 }
 0x24f   : > { %v809_v63 = vadd.f32 %v800_v62, %v721_v60  ;;  %v2306_v0 = vpop.f32.mrf.mxu0 }
 0x250   : > { %v898_v3 = vadd.f32 %v2306_v0, %v810_v61 }
 0x251   : > { %v888_v5 = vpop.f32.mrf.mxu0 }
 0x252   : > { %v897_v6 = vadd.f32 %v888_v5, %v809_v63  ;;  %v910_v7 = vadd.f32 %v907_v2, %v898_v3 }
 0x254   : > { %v912_v8 = vmul.f32 0.01, %v910_v7  ;;  %v909_v9 = vadd.f32 %v902_v53, %v897_v6 }
 0x256   : > { %v914_v10 = vmax.f32 %v910_v7, %v912_v8  ;;  %v911_v11 = vmul.f32 0.01, %v909_v9 }
 0x258   : > { %v913_v12 = vmax.f32 %v909_v9, %v911_v11  ;;  %1094 = vrot.lane.b32.xlu0 %v914_v10, %s2483_s19  ;;  %925 = vrot.lane.b32.xlu1 %v914_v10, %s2484_s20  ;;  %v2199_v9 = vld [vmem:[%s2609_s30 + $0x10] sm:$0xff]  ;;  %v2200_v11 = vld [vmem:[%s2609_s30 + $0x18] sm:$0xff] }
 0x259   : > { %2314 = vmatprep.subr.mxu0 %v914_v10 }
 0x25a   : > { %2315 = vmatpush3.msra.mxu0 %v914_v10 }
 0x25b   : > { %2316 = vmatprep.subr.mxu0 %v913_v12 }
 0x25c   : > { %2317 = vmatpush3.msra.mxu0 %v913_v12  ;;  %1088 = vrot.lane.b32.xlu0 %v462_v46, %s2487_s27 }
 0x25d   : > { %923 = vrot.lane.b32.xlu1 %v913_v12, %s2484_s20  ;;  %2319 = vmatmul.mubr.msk.f32.vlgmr.msra.gmra.mxu0 %vm929_vm7, %v463_v47 }
 0x260   : > { %1186 = vperm.xlu0 %2426, %v465_v13  }
 0x261   : > { %1092 = vrot.lane.b32.xlu1 %v913_v12, %s2483_s19 }
 0x264   : > { %2427 = vset.pattern.permute.xlu0 %v2476_v4 }
 0x265   : > { %1090 = vrot.lane.b32.xlu1 %v463_v47, %s2487_s27  ;;  %v2490_v47 = vmov 16  }
 0x269   : > { %1181 = vperm.xlu1 %2425, %v464_v14  }
 0x26d   : > { %2428 = vset.pattern.permute.xlu1 %v2488_v42 }
 0x2ca   : > { %v926_v16 = vpop.permute.xlu1 %925  ;;  %v1095_v17 = vpop.permute.xlu0 %1094 }
 0x2cb   : > { %2307 = vmatprep.subr.mxu1 %v926_v16 }
 0x2cc   : > { %2308 = vmatpush3.msra.mxu1 %v926_v16 }
 0x2ce   : > { %v1089_v20 = vpop.permute.xlu0 %1088 }
 0x2cf   : > { %v924_v19 = vpop.permute.xlu1 %923 }
 0x2d0   : > { %2309 = vmatprep.subr.mxu1 %v924_v19 }
 0x2d1   : > { %2310 = vmatpush3.msra.mxu1 %v924_v19 }
 0x2d2   : > { %2312 = vmatmul.mubr.msk.f32.vlgmr.msra.gmra.mxu1 %vm929_vm7, %v920_v15  ;;  %2321 = vmatprep.subr.mxu1 %v1095_v17 }
 0x2d3   : > { %2322 = vmatpush3.msra.mxu1 %v1095_v17  ;;  %v1093_v21 = vpop.permute.xlu1 %1092  ;;  %2325 = vmatprep.mubr.msk.f32.mxu1 %vm929_vm7, %v1089_v20 }
 0x2d4   : > { %2323 = vmatprep.subr.mxu1 %v1093_v21 }
 0x2d5   : > { %2324 = vmatpush3.msra.mxu1 %v1093_v21 }
 0x2d7   : > { %v1091_v22 = vpop.permute.xlu1 %1090 }
 0x2d8   : > { %2326 = vmatmul.mubr.msk.f32.vlgmr.msra.gmra.mxu1 %vm929_vm7, %v1091_v22  ;;  %v2201_v22 = vld [vmem:[%s2625_s10 + $0x10] sm:$0xff] }
 0x2db   : > { %v1187_v32 = vpop.permute.xlu0 %1186 }
 0x2e4   : > { %v1182_v36 = vpop.permute.xlu1 %1181 }
 0x31d   : > { %v2320_v24 = vpop.f32.mrf.mxu0 }
 0x31f   : > { %v1079_v26 = vpop.f32.mrf.mxu0 }
 0x392   : > { %v2313_v23 = vpop.f32.mrf.mxu1 }
 0x393   : > { %v1085_v27 = vadd.f32 %v2320_v24, %v2313_v23  ;;  %v2202_v23 = vld [vmem:[%s2625_s10 + $0x18] sm:$0xff] }
 0x394   : > { %v1000_v25 = vpop.f32.mrf.mxu1 }
 0x395   : > { %v1080_v30 = vadd.f32 %v1079_v26, %v1000_v25 }
 0x398   : > { %v2327_v28 = vpop.f32.mrf.mxu1 }
 0x399   : > { %v1178_v31 = vadd.f32 %v2327_v28, %v1085_v27 }
 0x39a   : > { %v1168_v33 = vpop.f32.mrf.mxu1 }
 0x39b   : > { %v1190_v34 = vadd.f32 %v1187_v32, %v1178_v31  ;;  %v1177_v35 = vadd.f32 %v1168_v33, %v1080_v30 }
 0x39d   : > { %2437 = vtanh.f32 %v1190_v34  ;;  %v1189_v37 = vadd.f32 %v1182_v36, %v1177_v35 }
 0x39f   : > { %2439 = vtanh.f32 %v1189_v37 }
 0x3aa   : > { %v2438_v38 = vpop.eup %2437 }
 0x3ab   : > { %v1200_v39 = vmul.f32 1.442695, %v2438_v38 }
 0x3ac   : > { %v2440_v40 = vpop.eup %2439 }
 0x3ad   : > { %2441 = vpow2.f32 %v1200_v39  ;;  %v1193_v41 = vmul.f32 1.442695, %v2440_v40 }
 0x3af   : > { %2443 = vpow2.f32 %v1193_v41 }
 0x3ba   : > { %v2442_v43 = vpop.eup %2441 }
 0x3bb   : > { %1203 = vrot.lane.b32.xlu0 %v2442_v43, %s2489_s11 }
 0x3bc   : > { %v2444_v44 = vpop.eup %2443 }
 0x3bd   : > { %1196 = vrot.lane.b32.xlu1 %v2444_v44, %s2477_s9 }
 0x42d   : > { %v1204_v45 = vpop.permute.xlu0 %1203 }
 0x42e   : > { %v2655_v46 = vmul.f32 %v1204_v45, %v2593_v29  ;;  %v2197_v29 = vld [vmem:[%s2569_s14 + $0x10] sm:$0xff]  ;;  %s2492_s14 = smov 119  }
 0x42f   : > { %v1197_v49 = vpop.permute.xlu1 %1196  ;;  %2335 = vmatprep.mubr.msk.f32.mxu1 %vm476_vm5, %v2197_v29 }
 0x430   : > { %1231 = vperm.xlu0 %2427, %v2655_v46   ;;  %1235 = vperm.xlu1 %2428, %v2655_v46   ;;  %v2662_v50 = vmul.f32 %v1197_v49, %v2580_v18 }
 0x434   : > { %2430 = vset.pattern.permute.xlu0 %v2490_v47  ;;  %2429 = vset.pattern.permute.xlu1 %v2491_v48 }
 0x435   : > { %1243 = vperm.xlu0 %2430, %v2655_v46   ;;  %1239 = vperm.xlu1 %2429, %v2655_v46  }
 0x439   : > { %2433 = vset.pattern.permute.xlu0 %v2491_v48  ;;  %2431 = vset.pattern.permute.xlu1 %v2476_v4 }
 0x43a   : > { %1217 = vperm.xlu0 %2433, %v2662_v50   ;;  %1209 = vperm.xlu1 %2431, %v2662_v50  }
 0x43e   : > { %2432 = vset.pattern.permute.xlu1 %v2488_v42  ;;  %2435 = vset.pattern.permute.xlu0 %v2474_v1 }
 0x43f   : > { %1213 = vperm.xlu1 %2432, %v2662_v50   ;;  %1272 = vrot.lane.b32.xlu0 %v2198_v51, %s2479_s15 }
 0x443   : > { %2434 = vset.pattern.permute.xlu1 %v2490_v47  ;;  %1436 = vrot.lane.b32.xlu0 %v2197_v29, %s2480_s16 }
 0x444   : > { %1221 = vperm.xlu1 %2434, %v2662_v50  }
 0x448   : > { %2436 = vset.pattern.permute.xlu1 %v2474_v1 }
 0x4ab   : > { %v1232_v4 = vpop.permute.xlu0 %1231  ;;  %v1236_v18 = vpop.permute.xlu1 %1235 }
 0x4ac   : > { %v1246_v52 = vsel %vm414_vm0, %v1232_v4, %v2655_v46 }
 0x4ad   : > { %v1247_v53 = vsel %vm416_vm1, %v1246_v52, %v1236_v18  ;;  %v2203_v18 = vld [vmem:[%s2639_s28 + $0x10] sm:$0xff]  ;;  %v2204_v52 = vld [vmem:[%s2639_s28 + $0x18] sm:$0xff] }
 0x4b0   : > { %v1240_v54 = vpop.permute.xlu1 %1239  ;;  %v1244_v56 = vpop.permute.xlu0 %1243 }
 0x4b1   : > { %v1248_v55 = vsel %vm418_vm2, %v1247_v53, %v1240_v54 }
 0x4b2   : > { %v1249_v57 = vsel %vm420_vm3, %v1248_v55, %v2655_v46 }
 0x4b3   : > { %v1250_v58 = vsel %vm422_vm4, %v1249_v57, %v1244_v56 }
 0x4b4   : > { %1252 = vrot.lane.b32.xlu1 %v1250_v58, %s2481_s17 }
 0x4b5   : > { %v1210_v1 = vpop.permute.xlu1 %1209  ;;  %v1218_v62 = vpop.permute.xlu0 %1217 }
 0x4b6   : > { %v1224_v60 = vsel %vm414_vm0, %v1210_v1, %v2662_v50 }
 0x4b8   : > { %1270 = vrot.lane.b32.xlu1 %v2197_v29, %s2479_s15  ;;  %s2179_s15 = sshll.u32 %s2463_s21, 1 }
 0x4b9   : > { %v1273_v12 = vpop.permute.xlu0 %1272  ;;  %p381_p5 = scmp.lt.s32.totalorder %s2179_s15, 3 }
 0x4ba   : > { %v1214_v59 = vpop.permute.xlu1 %1213 }
 0x4bb   : > { %v1225_v61 = vsel %vm416_vm1, %v1224_v60, %v1214_v59  ;;  %s2764_s15 = smov (!%p381_p5, %s2179_s15), 3 }
 0x4bc   : > { %1438 = vrot.lane.b32.xlu1 %v2198_v51, %s2480_s16  ;;  %v1226_v63 = vsel %vm418_vm2, %v1225_v61, %v1218_v62 }
 0x4bd   : > { %v1227_v2 = vsel %vm420_vm3, %v1226_v63, %v2662_v50  ;;  %v1437_v13 = vpop.permute.xlu0 %1436 }
 0x4bf   : > { %v1222_v0 = vpop.permute.xlu1 %1221 }
 0x4c0   : > { %1524 = vrot.lane.b32.xlu1 %v2197_v29, %s2482_s18  ;;  %v1228_v3 = vsel %vm422_vm4, %v1227_v2, %v1222_v0 }
 0x526   : > { %v1253_v5 = vpop.permute.xlu1 %1252 }
 0x527   : > { %v1255_v6 = vsel %vm456_vm6, %v1228_v3, %v1253_v5 }
 0x528   : > { %1440 = vrot.lane.b32.xlu1 %v1255_v6, %s2483_s19  ;;  %1275 = vrot.lane.b32.xlu0 %v1255_v6, %s2484_s20 }
 0x529   : > { %2333 = vmatprep.subr.mxu1 %v1255_v6 }
 0x52a   : > { %2334 = vmatpush3.msra.mxu1 %v1255_v6  ;;  %v1271_v7 = vpop.permute.xlu1 %1270 }
 0x52b   : > { %2330 = vmatprep.mubr.msk.f32.mxu0 %vm476_vm5, %v1271_v7  ;;  %2336 = vmatmul.mubr.msk.f32.vlgmr.msra.gmra.mxu1 %vm476_vm5, %v2198_v51 }
 0x52c   : > { %1616 = vrot.lane.b32.xlu1 %v1255_v6, %s2485_s25  ;;  %1526 = vrot.lane.b32.xlu0 %v2198_v51, %s2482_s18 }
 0x52e   : > { %v1439_v8 = vpop.permute.xlu1 %1438 }
 0x530   : > { %1528 = vrot.lane.b32.xlu0 %v1255_v6, %s2486_s26  ;;  %1614 = vrot.lane.b32.xlu1 %v2198_v51, %s2487_s27 }
 0x532   : > { %v1525_v10 = vpop.permute.xlu1 %1524 }
 0x533   : > { %2345 = vmatprep.mubr.msk.f32.mxu1 %vm476_vm5, %v1525_v10 }
 0x534   : > { %1612 = vrot.lane.b32.xlu0 %v2197_v29, %s2487_s27  ;;  %1702 = vperm.xlu1 %2436, %v2199_v9  }
 0x538   : > { %1707 = vperm.xlu0 %2435, %v2200_v11   ;;  %1718 = vrot.lane.b32.xlu1 %v2201_v22, %s2480_s16 }
 0x53c   : > { %1720 = vrot.lane.b32.xlu0 %v2202_v23, %s2480_s16  ;;  %s2180_s16 = sshll.u32 %s2764_s15, 3 }
 0x53d   : > { %s387_s18 = scalar_lea.vmem %s2758_s6, %s2180_s16 }
 0x59a   : > { %v1276_v14 = vpop.permute.xlu0 %1275  ;;  %v1441_v15 = vpop.permute.xlu1 %1440 }
 0x59b   : > { %2328 = vmatprep.subr.mxu0 %v1276_v14 }
 0x59c   : > { %2329 = vmatpush3.msra.mxu0 %v1276_v14 }
 0x59d   : > { %2331 = vmatmul.mubr.msk.f32.vlgmr.msra.gmra.mxu0 %vm476_vm5, %v1273_v12  ;;  %2338 = vmatprep.subr.mxu0 %v1441_v15 }
 0x59e   : > { %v1527_v16 = vpop.permute.xlu0 %1526  ;;  %2339 = vmatpush3.msra.mxu0 %v1441_v15  ;;  %2340 = vmatprep.mubr.msk.f32.mxu0 %vm476_vm5, %v1437_v13  ;;  %v1617_v17 = vpop.permute.xlu1 %1616 }
 0x59f   : > { %2348 = vmatprep.subr.mxu0 %v1617_v17 }
 0x5a1   : > { %2341 = vmatmul.mubr.msk.f32.vlgmr.msra.gmra.mxu0 %vm476_vm5, %v1439_v8 }
 0x5a2   : > { %2349 = vmatpush3.msra.mxu0 %v1617_v17  ;;  %v1529_v19 = vpop.permute.xlu0 %1528  ;;  %v1615_v20 = vpop.permute.xlu1 %1614 }
 0x5a3   : > { %2343 = vmatprep.subr.mxu1 %v1529_v19 }
 0x5a4   : > { %2344 = vmatpush3.msra.mxu1 %v1529_v19 }
 0x5a5   : > { %2346 = vmatmul.mubr.msk.f32.vlgmr.msra.gmra.mxu1 %vm476_vm5, %v1527_v16 }
 0x5a6   : > { %v1613_v21 = vpop.permute.xlu0 %1612 }
 0x5a7   : > { %2350 = vmatprep.mubr.msk.f32.mxu0 %vm476_vm5, %v1613_v21 }
 0x5a8   : > { %2351 = vmatmul.mubr.msk.f32.vlgmr.msra.gmra.mxu0 %vm476_vm5, %v1615_v20 }
 0x5a9   : > { %2364 = vmatprep.mubr.msk.f32.mxu0 %vm929_vm7, %v2201_v22 }
 0x5af   : > { %v1703_v24 = vpop.permute.xlu1 %1702 }
 0x5b3   : > { %v1719_v28 = vpop.permute.xlu1 %1718  ;;  %v1708_v42 = vpop.permute.xlu0 %1707 }
 0x5b4   : > { %2357 = vmatprep.mubr.msk.f32.mxu1 %vm929_vm7, %v1719_v28 }
 0x5b7   : > { %v1721_v53 = vpop.permute.xlu0 %1720 }
 0x5eb   : > { %v2337_v26 = vpop.f32.mrf.mxu1 }
 0x5ed   : > { %v1427_v30 = vpop.f32.mrf.mxu1 }
 0x65d   : > { %v2332_v25 = vpop.f32.mrf.mxu0 }
 0x65e   : > { %v1433_v32 = vadd.f32 %v2337_v26, %v2332_v25 }
 0x65f   : > { %v1348_v27 = vpop.f32.mrf.mxu0 }
 0x660   : > { %v1428_v34 = vadd.f32 %v1427_v30, %v1348_v27 }
 0x661   : > { %v2342_v31 = vpop.f32.mrf.mxu0 }
 0x662   : > { %v1523_v35 = vadd.f32 %v2342_v31, %v1433_v32 }
 0x663   : > { %v1513_v33 = vpop.f32.mrf.mxu0 }
 0x664   : > { %v1522_v37 = vadd.f32 %v1513_v33, %v1428_v34 }
 0x665   : > { %v2347_v36 = vpop.f32.mrf.mxu1 }
 0x666   : > { %v1611_v38 = vadd.f32 %v2347_v36, %v1523_v35 }
 0x667   : > { %v1601_v39 = vpop.f32.mrf.mxu1 }
 0x668   : > { %v1610_v40 = vadd.f32 %v1601_v39, %v1522_v37  ;;  %v2352_v41 = vpop.f32.mrf.mxu0 }
 0x669   : > { %v1699_v43 = vadd.f32 %v2352_v41, %v1611_v38 }
 0x66a   : > { %v1689_v44 = vpop.f32.mrf.mxu0 }
 0x66b   : > { %v1711_v45 = vadd.f32 %v1708_v42, %v1699_v43  ;;  %v1698_v47 = vadd.f32 %v1689_v44, %v1610_v40 }
 0x66d   : > { %v1713_v48 = vmul.f32 0.01, %v1711_v45  ;;  %v1710_v49 = vadd.f32 %v1703_v24, %v1698_v47 }
 0x66f   : > { %v1715_v29 = vmax.f32 %v1711_v45, %v1713_v48  ;;  %v1712_v51 = vmul.f32 0.01, %v1710_v49 }
 0x671   : > { %v1714_v4 = vmax.f32 %v1710_v49, %v1712_v51  ;;  %1726 = vrot.lane.b32.xlu1 %v1715_v29, %s2484_s20  ;;  %2360 = vmatprep.subr.mxu0 %v1715_v29 }
 0x672   : > { %2361 = vmatpush3.msra.mxu0 %v1715_v29 }
 0x673   : > { %1724 = vrot.lane.b32.xlu0 %v1714_v4, %s2484_s20  ;;  %2362 = vmatprep.subr.mxu0 %v1714_v4 }
 0x674   : > { %2363 = vmatpush3.msra.mxu0 %v1714_v4 }
 0x675   : > { %1894 = vrot.lane.b32.xlu1 %v1715_v29, %s2483_s19  ;;  %2365 = vmatmul.mubr.msk.f32.vlgmr.msra.gmra.mxu0 %vm929_vm7, %v2202_v23 }
 0x677   : > { %1892 = vrot.lane.b32.xlu0 %v1714_v4, %s2483_s19 }
 0x679   : > { %1888 = vrot.lane.b32.xlu1 %v2201_v22, %s2487_s27 }
 0x67b   : > { %1890 = vrot.lane.b32.xlu0 %v2202_v23, %s2487_s27 }
 0x67d   : > { %1981 = vperm.xlu1 %2436, %v2203_v18  }
 0x67f   : > { %1986 = vperm.xlu0 %2435, %v2204_v52  }
 0x6e3   : > { %v1727_v54 = vpop.permute.xlu1 %1726 }
 0x6e4   : > { %2353 = vmatprep.subr.mxu1 %v1727_v54 }
 0x6e5   : > { %v1725_v55 = vpop.permute.xlu0 %1724  ;;  %2354 = vmatpush3.msra.mxu1 %v1727_v54 }
 0x6e6   : > { %2355 = vmatprep.subr.mxu1 %v1725_v55 }
 0x6e7   : > { %2356 = vmatpush3.msra.mxu1 %v1725_v55  ;;  %v1895_v56 = vpop.permute.xlu1 %1894 }
 0x6e8   : > { %2358 = vmatmul.mubr.msk.f32.vlgmr.msra.gmra.mxu1 %vm929_vm7, %v1721_v53  ;;  %2367 = vmatprep.subr.mxu1 %v1895_v56 }
 0x6e9   : > { %v1893_v57 = vpop.permute.xlu0 %1892  ;;  %2368 = vmatpush3.msra.mxu1 %v1895_v56 }
 0x6ea   : > { %2369 = vmatprep.subr.mxu1 %v1893_v57 }
 0x6eb   : > { %2370 = vmatpush3.msra.mxu1 %v1893_v57  ;;  %v1889_v58 = vpop.permute.xlu1 %1888 }
 0x6ec   : > { %2371 = vmatprep.mubr.msk.f32.mxu1 %vm929_vm7, %v1889_v58 }
 0x6ed   : > { %v1891_v1 = vpop.permute.xlu0 %1890 }
 0x6ee   : > { %2372 = vmatmul.mubr.msk.f32.vlgmr.msra.gmra.mxu1 %vm929_vm7, %v1891_v1 }
 0x6f8   : > { %v1982_v9 = vpop.permute.xlu1 %1981 }
 0x6fa   : > { %v1987_v5 = vpop.permute.xlu0 %1986 }
 0x735   : > { %v2366_v60 = vpop.f32.mrf.mxu0 }
 0x737   : > { %v1879_v62 = vpop.f32.mrf.mxu0 }
 0x7a8   : > { %v2359_v59 = vpop.f32.mrf.mxu1 }
 0x7a9   : > { %v1885_v63 = vadd.f32 %v2366_v60, %v2359_v59 }
 0x7aa   : > { %v1800_v61 = vpop.f32.mrf.mxu1 }
 0x7ab   : > { %v1880_v2 = vadd.f32 %v1879_v62, %v1800_v61 }
 0x7ae   : > { %v2373_v0 = vpop.f32.mrf.mxu1 }
 0x7af   : > { %v1978_v3 = vadd.f32 %v2373_v0, %v1885_v63 }
 0x7b0   : > { %v1968_v6 = vpop.f32.mrf.mxu1 }
 0x7b1   : > { %v1990_v7 = vadd.f32 %v1987_v5, %v1978_v3  ;;  %v1977_v8 = vadd.f32 %v1968_v6, %v1880_v2 }
 0x7b3   : > { %2445 = vtanh.f32 %v1990_v7  ;;  %v1989_v10 = vadd.f32 %v1982_v9, %v1977_v8 }
 0x7b5   : > { %2447 = vtanh.f32 %v1989_v10 }
 0x7c0   : > { %v2446_v11 = vpop.eup %2445 }
 0x7c1   : > { %2009 = vrot.lane.b32.xlu0 %v2446_v11, %s2489_s11 }
 0x7c2   : > { %v2448_v12 = vpop.eup %2447 }
 0x7c3   : > { %1994 = vrot.lane.b32.xlu1 %v2448_v12, %s2477_s9 }
 0x833   : > { %v2010_v15 = vpop.permute.xlu0 %2009 }
 0x834   : > { %v2012_v16 = vsub.f32 %v2662_v50, %v2010_v15 }
 0x835   : > { %v1995_v13 = vpop.permute.xlu1 %1994 }
 0x836   : > { %v1997_v14 = vadd.f32 %v1995_v13, %v2655_v46 }
 0x838   : > { %2002 = vrot.lane.b32.xlu0 %v1997_v14, %s2492_s14  ;;  %1999 = vrot.lane.b32.xlu1 %v1997_v14, %s2486_s26 }
 0x83c   : > { %2017 = vrot.lane.b32.xlu0 %v2012_v16, %s2492_s14  ;;  %2014 = vrot.lane.b32.xlu1 %v2012_v16, %s2486_s26 }
 0x8aa   : > { %v2003_v46 = vpop.permute.xlu0 %2002  ;;  %v2000_v17 = vpop.permute.xlu1 %1999 }
 0x8ab   : > { %v2006_v19 = vsel %vm2005_vm8, %v2000_v17, %v2003_v46 }
 0x8ac   : > { %2007 = vst.msk [vmem:[%s387_s18] sm:$0xff] %vm476_vm5, %v2006_v19 }
 0x8ae   : > { %v2018_v20 = vpop.permute.xlu0 %2017  ;;  %v2015_v21 = vpop.permute.xlu1 %2014 }
 0x8af   : > { %v2020_v50 = vsel %vm2005_vm8, %v2015_v21, %v2018_v20 }
 0x8b0   : > { %2221 = vst.msk [vmem:[%s387_s18 + $0x8] sm:$0xff] %vm476_vm5, %v2020_v50 }
 0x8b1 PF: > { %s16_s23 = sadd.s32 1, %s2471_s23   ;;  %s2759_s21 = smov %s2467_s22 }
 0x8b2   : > { %p13_p6 = scmp.ge.s32.totalorder %s16_s23, 4   ;;  %s2760_s22 = smov %s2762_s24 }
 0x8b4   :  { %15 = sbr.rel (!%p13_p6) target bundleno = 2 (0x2), region = 94 }

// kernel: scinet_forward.6
= control target key start
LH: loop header
LB: loop body
LE: loop exit
PB: predicated region body
PF: predicated region fallthrough
CT: control target
= control target key end

     0   :  { %s2527_s21 = smov 0   ;;  %s2529_s22 = smov 0   ;;  %s2757_s0 = inlined_call_operand.vmem [shape: f32[4,8,4], index: 0, kind: input, shape index: {}]   ;;  %s2758_s1 = inlined_call_operand.vmem [shape: f32[4,8,4], index: 1, kind: input, shape index: {}]   ;;  %s2759_s2 = inlined_call_operand.vmem [shape: f32[4,2,16,40], index: 2, kind: input, shape index: {}]   ;;  %s2760_s3 = inlined_call_operand.vmem [shape: f32[4,2,16,1], index: 3, kind: input, shape index: {}]   ;;  %s2761_s4 = inlined_call_operand.vmem [shape: f32[4,2,16,48], index: 4, kind: input, shape index: {}]   ;;  %s2762_s5 = inlined_call_operand.vmem [shape: f32[4,2,16,1], index: 5, kind: input, shape index: {}]   ;;  %s2763_s6 = inlined_call_operand.vmem [shape: f32[8,8,4], index: 6, kind: output, shape index: {}]  }
   0x1   :  { %s2531_s23 = smov 0  }
   0x2 LB: > { %s28_s24 = sadd.s32 1, %s2466_s22  ;;  %p2167_p0 = scmp.ge.s32.totalorder %s2470_s23, 1  ;;  %s2470_s23 = sphi %s2531_s23, %s16_s23   ;;  %s2466_s22 = sphi %s2529_s22, %s2765_s22   ;;  %s2462_s21 = sphi %s2527_s21, %s2764_s21  }
   0x3   : > { %p30_p1 = scmp.ge.s32.totalorder %s28_s24, 4  ;;  %p284_p2 = scmp.lt.s32.totalorder %s2470_s23, 5 }
   0x5   : > { %s2767_s24 = smov (%p30_p1, %s28_s24), 0  ;;  %p285_p3 = pnand %p2167_p0, %p284_p2 }
   0x6   : > { %p346_p4 = scmp.lt.s32.totalorder (!%p285_p3), %s2462_s21, 3  ;;  %s2476_s9 = smov (!%p285_p3), 3  }
   0x7   : > { %288 = sbr.rel (%p285_p3) target bundleno = 2225 (0x8b1), region = 44  ;;  %s2477_s10 = smov (!%p285_p3), 9  }
   0x8   : > { %s2478_s15 = smov (!%p285_p3), 120   ;;  %s2479_s16 = smov (!%p285_p3), 112  }
   0x9   : > { %s2480_s17 = smov (!%p285_p3), 16   ;;  %s2481_s18 = smov (!%p285_p3), 104  }
   0xa   : > { %s2482_s19 = smov (!%p285_p3), 126   ;;  %s2483_s20 = smov (!%p285_p3), 127  }
   0xb   : > { %s2486_s27 = smov (!%p285_p3), 96  }
   0xc   : > { %v2472_v0 = vmov 2   ;;  %v2473_v1 = vmov 0   ;;  %s347_s25 = scalar_select %p346_p4, %s2462_s21, 3  ;;  %v2474_v3 = vmov 3   ;;  %v2475_v4 = vmov 1  }
   0xd   : > { %2419 = vset.pattern.permute.xlu1 %v2472_v0  ;;  %2417 = vset.pattern.permute.xlu0 %v2473_v1  ;;  %vm418_vm0 = vcmask 64512   ;;  %vm414_vm1 = vcmask 23552   ;;  %vm416_vm2 = vcmask 39936   ;;  %vm420_vm3 = vcmask 89088  }
   0xe   : > { %s2168_s26 = sshll.u32 %s347_s25, 3  ;;  %s2562_s11 = sshll.u32 %s347_s25, 5  ;;  %vm422_vm4 = vcmask 105472   ;;  %vm456_vm5 = vcmask 130048   ;;  %vm2003_vm6 = vcmask 15360   ;;  %vm2005_vm7 = vcmask 31744  }
   0xf   : > { %s359_s29 = scalar_lea.vmem %s2758_s1, %s2168_s26  ;;  %s352_s8 = scalar_lea.vmem %s2757_s0, %s2168_s26 }
  0x10   : > { %v390_v2 = vld [vmem:[%s359_s29] sm:$0xff]  ;;  %s2569_s14 = scalar_lea.vmem %s2759_s2, %s2562_s11  ;;  %s2484_s25 = smov 124  }
  0x11   : > { %434 = vperm.xlu1 %2419, %v390_v2   ;;  %426 = vperm.xlu0 %2417, %v390_v2   ;;  %v389_v5 = vld [vmem:[%s352_s8] sm:$0xff]  ;;  %v459_v7 = vld [vmem:[%s2569_s14 + $0x8] sm:$0xff]  ;;  %s2485_s26 = smov 125   ;;  %s2615_s30 = scalar_lea.vmem %s2760_s3, %s2562_s11 }
  0x12   : > { %v2572_v6 = vld [vmem:[%s2569_s14] sm:$0xff]  ;;  %v461_v36 = vld [vmem:[%s2615_s30 + $0x8] sm:$0xff]  ;;  %s2646_s28 = scalar_lea.vmem %s2762_s5, %s2562_s11 }
  0x13   : > { %2288 = vmatprep.mubr.msk.f32.mxu1 %vm418_vm0, %v2572_v6  ;;  %v460_v34 = vld [vmem:[%s2615_s30] sm:$0xff] }
  0x15   : > { %2420 = vset.pattern.permute.xlu1 %v2474_v3  ;;  %2418 = vset.pattern.permute.xlu0 %v2475_v4 }
  0x16   : > { %438 = vperm.xlu1 %2420, %v390_v2   ;;  %430 = vperm.xlu0 %2418, %v390_v2  }
  0x1a   : > { %441 = vrot.lane.b32.xlu1 %v390_v2, %s2476_s9  ;;  %444 = vrot.lane.b32.xlu0 %v390_v2, %s2477_s10 }
  0x1b   : > { %2421 = vset.pattern.permute.xlu1 %v2473_v1 }
  0x1e   : > { %397 = vperm.xlu0 %2418, %v389_v5   ;;  %393 = vperm.xlu1 %2421, %v389_v5  }
  0x22   : > { %2422 = vset.pattern.permute.xlu1 %v2472_v0  ;;  %2423 = vset.pattern.permute.xlu0 %v2474_v3 }
  0x23   : > { %401 = vperm.xlu1 %2422, %v389_v5   ;;  %405 = vperm.xlu0 %2423, %v389_v5  }
  0x27   : > { %408 = vrot.lane.b32.xlu1 %v389_v5, %s2476_s9  ;;  %2425 = vset.pattern.permute.xlu0 %v2473_v1 }
  0x28   : > { %2424 = vset.pattern.permute.xlu1 %v2473_v1 }
  0x2b   : > { %411 = vrot.lane.b32.xlu1 %v389_v5, %s2477_s10  ;;  %s2632_s10 = scalar_lea.vmem %s2761_s4, %s2562_s11  ;;  %s2488_s11 = smov 115  }
  0x2c   : > { %v462_v46 = vld [vmem:[%s2632_s10] sm:$0xff]  ;;  %v463_v47 = vld [vmem:[%s2632_s10 + $0x8] sm:$0xff] }
  0x2f   : > { %470 = vrot.lane.b32.xlu1 %v459_v7, %s2478_s15 }
  0x33   : > { %634 = vrot.lane.b32.xlu1 %v2572_v6, %s2479_s16 }
  0x8c   : > { %v435_v8 = vpop.permute.xlu1 %434  ;;  %v427_v9 = vpop.permute.xlu0 %426 }
  0x91   : > { %v439_v10 = vpop.permute.xlu1 %438  ;;  %v431_v11 = vpop.permute.xlu0 %430 }
  0x95   : > { %v442_v12 = vpop.permute.xlu1 %441  ;;  %v445_v16 = vpop.permute.xlu0 %444 }
  0x96   : > { %v447_v13 = vsel %vm414_vm1, %v427_v9, %v442_v12 }
  0x97   : > { %v448_v14 = vsel %vm416_vm2, %v447_v13, %v431_v11  ;;  %v465_v13 = vld [vmem:[%s2646_s28 + $0x8] sm:$0xff] }
  0x98   : > { %v449_v15 = vsel %vm418_vm0, %v448_v14, %v435_v8  ;;  %v464_v14 = vld [vmem:[%s2646_s28] sm:$0xff] }
  0x99   : > { %v450_v17 = vsel %vm420_vm3, %v449_v15, %v445_v16  ;;  %v394_v19 = vpop.permute.xlu1 %393  ;;  %v398_v23 = vpop.permute.xlu0 %397 }
  0x9a   : > { %v2585_v18 = vsel %vm422_vm4, %v450_v17, %v439_v10 }
  0x9b   : > { %453 = vrot.lane.b32.xlu0 %v2585_v18, %s2480_s17 }
  0x9e   : > { %v402_v20 = vpop.permute.xlu1 %401  ;;  %v406_v27 = vpop.permute.xlu0 %405 }
  0x9f   : > { %468 = vrot.lane.b32.xlu0 %v2572_v6, %s2478_s15 }
  0xa2   : > { %v409_v21 = vpop.permute.xlu1 %408 }
  0xa3   : > { %636 = vrot.lane.b32.xlu0 %v459_v7, %s2479_s16  ;;  %v415_v22 = vsel %vm414_vm1, %v394_v19, %v409_v21 }
  0xa4   : > { %v417_v24 = vsel %vm416_vm2, %v415_v22, %v398_v23 }
  0xa5   : > { %v419_v25 = vsel %vm418_vm0, %v417_v24, %v402_v20 }
  0xa6   : > { %v412_v26 = vpop.permute.xlu1 %411 }
  0xa7   : > { %722 = vrot.lane.b32.xlu0 %v2572_v6, %s2481_s18  ;;  %v421_v28 = vsel %vm420_vm3, %v419_v25, %v412_v26 }
  0xa8   : > { %v2599_v29 = vsel %vm422_vm4, %v421_v28, %v406_v27 }
  0xaa   : > { %v471_v37 = vpop.permute.xlu1 %470 }
  0xae   : > { %v635_v38 = vpop.permute.xlu1 %634 }
 0x10d   : > { %v454_v30 = vpop.permute.xlu0 %453 }
 0x10e   : > { %v457_v31 = vsel %vm456_vm5, %v2599_v29, %v454_v30 }
 0x10f   : > { %638 = vrot.lane.b32.xlu0 %v457_v31, %s2482_s19  ;;  %473 = vrot.lane.b32.xlu1 %v457_v31, %s2483_s20 }
 0x110   : > { %2286 = vmatprep.subr.mxu1 %v457_v31 }
 0x111   : > { %2287 = vmatpush3.msra.mxu1 %v457_v31  ;;  %v469_v32 = vpop.permute.xlu0 %468 }
 0x112   : > { %2283 = vmatprep.mubr.msk.f32.mxu0 %vm418_vm0, %v469_v32  ;;  %2289 = vmatmul.mubr.msk.f32.vlgmr.msra.gmra.mxu1 %vm418_vm0, %v459_v7 }
 0x113   : > { %814 = vrot.lane.b32.xlu0 %v457_v31, %s2484_s25  ;;  %724 = vrot.lane.b32.xlu1 %v459_v7, %s2481_s18 }
 0x115   : > { %v637_v33 = vpop.permute.xlu0 %636 }
 0x117   : > { %726 = vrot.lane.b32.xlu1 %v457_v31, %s2485_s26  ;;  %812 = vrot.lane.b32.xlu0 %v459_v7, %s2486_s27 }
 0x119   : > { %v723_v35 = vpop.permute.xlu0 %722 }
 0x11a   : > { %2298 = vmatprep.mubr.msk.f32.mxu1 %vm418_vm0, %v723_v35 }
 0x11b   : > { %810 = vrot.lane.b32.xlu1 %v2572_v6, %s2486_s27  ;;  %900 = vperm.xlu0 %2425, %v460_v34  }
 0x11f   : > { %905 = vperm.xlu1 %2424, %v461_v36   ;;  %916 = vrot.lane.b32.xlu0 %v462_v46, %s2479_s16 }
 0x123   : > { %918 = vrot.lane.b32.xlu1 %v463_v47, %s2479_s16 }
 0x181   : > { %v639_v39 = vpop.permute.xlu0 %638  ;;  %v474_v40 = vpop.permute.xlu1 %473 }
 0x182   : > { %2281 = vmatprep.subr.mxu0 %v474_v40 }
 0x183   : > { %2282 = vmatpush3.msra.mxu0 %v474_v40 }
 0x184   : > { %2284 = vmatmul.mubr.msk.f32.vlgmr.msra.gmra.mxu0 %vm418_vm0, %v471_v37  ;;  %2291 = vmatprep.subr.mxu0 %v639_v39 }
 0x185   : > { %v815_v41 = vpop.permute.xlu0 %814  ;;  %2292 = vmatpush3.msra.mxu0 %v639_v39  ;;  %2293 = vmatprep.mubr.msk.f32.mxu0 %vm418_vm0, %v635_v38  ;;  %v725_v42 = vpop.permute.xlu1 %724 }
 0x186   : > { %2301 = vmatprep.subr.mxu0 %v815_v41 }
 0x188   : > { %2294 = vmatmul.mubr.msk.f32.vlgmr.msra.gmra.mxu0 %vm418_vm0, %v637_v33 }
 0x189   : > { %2302 = vmatpush3.msra.mxu0 %v815_v41  ;;  %v727_v43 = vpop.permute.xlu1 %726  ;;  %v813_v44 = vpop.permute.xlu0 %812 }
 0x18a   : > { %2296 = vmatprep.subr.mxu1 %v727_v43 }
 0x18b   : > { %2297 = vmatpush3.msra.mxu1 %v727_v43 }
 0x18c   : > { %2299 = vmatmul.mubr.msk.f32.vlgmr.msra.gmra.mxu1 %vm418_vm0, %v725_v42  ;;  %v2487_v42 = vmov 4  }
 0x18d   : > { %v811_v45 = vpop.permute.xlu1 %810 }
 0x18e   : > { %2303 = vmatprep.mubr.msk.f32.mxu0 %vm418_vm0, %v811_v45 }
 0x18f   : > { %2304 = vmatmul.mubr.msk.f32.vlgmr.msra.gmra.mxu0 %vm418_vm0, %v813_v44 }
 0x190   : > { %2317 = vmatprep.mubr.msk.f32.mxu0 %vm456_vm5, %v462_v46 }
 0x196   : > { %v901_v48 = vpop.permute.xlu0 %900 }
 0x19a   : > { %v917_v52 = vpop.permute.xlu0 %916  ;;  %v906_v2 = vpop.permute.xlu1 %905 }
 0x19b   : > { %2310 = vmatprep.mubr.msk.f32.mxu1 %vm456_vm5, %v917_v52 }
 0x19e   : > { %v919_v15 = vpop.permute.xlu1 %918 }
 0x1d2   : > { %v2290_v50 = vpop.f32.mrf.mxu1 }
 0x1d4   : > { %v625_v53 = vpop.f32.mrf.mxu1 }
 0x244   : > { %v2285_v49 = vpop.f32.mrf.mxu0 }
 0x245   : > { %v631_v55 = vadd.f32 %v2290_v50, %v2285_v49 }
 0x246   : > { %v546_v51 = vpop.f32.mrf.mxu0 }
 0x247   : > { %v626_v57 = vadd.f32 %v625_v53, %v546_v51  ;;  %v2197_v51 = vld [vmem:[%s2569_s14 + $0x18] sm:$0xff] }
 0x248   : > { %v2295_v54 = vpop.f32.mrf.mxu0 }
 0x249   : > { %v721_v58 = vadd.f32 %v2295_v54, %v631_v55 }
 0x24a   : > { %v711_v56 = vpop.f32.mrf.mxu0 }
 0x24b   : > { %v720_v60 = vadd.f32 %v711_v56, %v626_v57 }
 0x24c   : > { %v2300_v59 = vpop.f32.mrf.mxu1 }
 0x24d   : > { %v809_v61 = vadd.f32 %v2300_v59, %v721_v58 }
 0x24e   : > { %v799_v62 = vpop.f32.mrf.mxu1 }
 0x24f   : > { %v808_v63 = vadd.f32 %v799_v62, %v720_v60  ;;  %v2305_v0 = vpop.f32.mrf.mxu0 }
 0x250   : > { %v897_v4 = vadd.f32 %v2305_v0, %v809_v61 }
 0x251   : > { %v887_v5 = vpop.f32.mrf.mxu0 }
 0x252   : > { %v896_v6 = vadd.f32 %v887_v5, %v808_v63  ;;  %v909_v7 = vadd.f32 %v906_v2, %v897_v4 }
 0x254   : > { %v911_v8 = vmul.f32 0.01, %v909_v7  ;;  %v908_v9 = vadd.f32 %v901_v48, %v896_v6  ;;  %v2490_v48 = vmov 11  }
 0x256   : > { %v913_v10 = vmax.f32 %v909_v7, %v911_v8  ;;  %v910_v11 = vmul.f32 0.01, %v908_v9 }
 0x258   : > { %v912_v12 = vmax.f32 %v908_v9, %v910_v11  ;;  %1092 = vrot.lane.b32.xlu0 %v913_v10, %s2482_s19  ;;  %924 = vrot.lane.b32.xlu1 %v913_v10, %s2483_s20  ;;  %v2198_v9 = vld [vmem:[%s2615_s30 + $0x10] sm:$0xff]  ;;  %v2199_v11 = vld [vmem:[%s2615_s30 + $0x18] sm:$0xff] }
 0x259   : > { %2313 = vmatprep.subr.mxu0 %v913_v10 }
 0x25a   : > { %2314 = vmatpush3.msra.mxu0 %v913_v10 }
 0x25b   : > { %2315 = vmatprep.subr.mxu0 %v912_v12 }
 0x25c   : > { %2316 = vmatpush3.msra.mxu0 %v912_v12  ;;  %1086 = vrot.lane.b32.xlu0 %v462_v46, %s2486_s27 }
 0x25d   : > { %922 = vrot.lane.b32.xlu1 %v912_v12, %s2483_s20  ;;  %2318 = vmatmul.mubr.msk.f32.vlgmr.msra.gmra.mxu0 %vm456_vm5, %v463_v47 }
 0x260   : > { %1184 = vperm.xlu0 %2425, %v465_v13  }
 0x261   : > { %1090 = vrot.lane.b32.xlu1 %v912_v12, %s2482_s19 }
 0x264   : > { %2426 = vset.pattern.permute.xlu0 %v2474_v3 }
 0x265   : > { %1088 = vrot.lane.b32.xlu1 %v463_v47, %s2486_s27  ;;  %v2489_v47 = vmov 12  }
 0x269   : > { %1179 = vperm.xlu1 %2424, %v464_v14  }
 0x26d   : > { %2427 = vset.pattern.permute.xlu1 %v2487_v42 }
 0x2ca   : > { %v925_v16 = vpop.permute.xlu1 %924  ;;  %v1093_v17 = vpop.permute.xlu0 %1092 }
 0x2cb   : > { %2306 = vmatprep.subr.mxu1 %v925_v16 }
 0x2cc   : > { %2307 = vmatpush3.msra.mxu1 %v925_v16 }
 0x2ce   : > { %v1087_v20 = vpop.permute.xlu0 %1086 }
 0x2cf   : > { %v923_v19 = vpop.permute.xlu1 %922 }
 0x2d0   : > { %2308 = vmatprep.subr.mxu1 %v923_v19 }
 0x2d1   : > { %2309 = vmatpush3.msra.mxu1 %v923_v19 }
 0x2d2   : > { %2311 = vmatmul.mubr.msk.f32.vlgmr.msra.gmra.mxu1 %vm456_vm5, %v919_v15  ;;  %2320 = vmatprep.subr.mxu1 %v1093_v17 }
 0x2d3   : > { %2321 = vmatpush3.msra.mxu1 %v1093_v17  ;;  %v1091_v21 = vpop.permute.xlu1 %1090  ;;  %2324 = vmatprep.mubr.msk.f32.mxu1 %vm456_vm5, %v1087_v20 }
 0x2d4   : > { %2322 = vmatprep.subr.mxu1 %v1091_v21 }
 0x2d5   : > { %2323 = vmatpush3.msra.mxu1 %v1091_v21 }
 0x2d7   : > { %v1089_v22 = vpop.permute.xlu1 %1088 }
 0x2d8   : > { %2325 = vmatmul.mubr.msk.f32.vlgmr.msra.gmra.mxu1 %vm456_vm5, %v1089_v22  ;;  %v2200_v22 = vld [vmem:[%s2632_s10 + $0x10] sm:$0xff] }
 0x2db   : > { %v1185_v32 = vpop.permute.xlu0 %1184 }
 0x2e4   : > { %v1180_v36 = vpop.permute.xlu1 %1179 }
 0x31d   : > { %v2319_v24 = vpop.f32.mrf.mxu0 }
 0x31f   : > { %v1077_v26 = vpop.f32.mrf.mxu0 }
 0x392   : > { %v2312_v23 = vpop.f32.mrf.mxu1 }
 0x393   : > { %v1083_v27 = vadd.f32 %v2319_v24, %v2312_v23  ;;  %v2201_v23 = vld [vmem:[%s2632_s10 + $0x18] sm:$0xff] }
 0x394   : > { %v998_v25 = vpop.f32.mrf.mxu1 }
 0x395   : > { %v1078_v30 = vadd.f32 %v1077_v26, %v998_v25 }
 0x398   : > { %v2326_v28 = vpop.f32.mrf.mxu1 }
 0x399   : > { %v1176_v31 = vadd.f32 %v2326_v28, %v1083_v27 }
 0x39a   : > { %v1166_v33 = vpop.f32.mrf.mxu1 }
 0x39b   : > { %v1188_v34 = vadd.f32 %v1185_v32, %v1176_v31  ;;  %v1175_v35 = vadd.f32 %v1166_v33, %v1078_v30 }
 0x39d   : > { %2436 = vtanh.f32 %v1188_v34  ;;  %v1187_v37 = vadd.f32 %v1180_v36, %v1175_v35 }
 0x39f   : > { %2438 = vtanh.f32 %v1187_v37 }
 0x3aa   : > { %v2437_v38 = vpop.eup %2436 }
 0x3ab   : > { %v1198_v39 = vmul.f32 1.442695, %v2437_v38 }
 0x3ac   : > { %v2439_v40 = vpop.eup %2438 }
 0x3ad   : > { %2440 = vpow2.f32 %v1198_v39  ;;  %v1191_v41 = vmul.f32 1.442695, %v2439_v40 }
 0x3af   : > { %2442 = vpow2.f32 %v1191_v41 }
 0x3ba   : > { %v2441_v43 = vpop.eup %2440 }
 0x3bb   : > { %1201 = vrot.lane.b32.xlu0 %v2441_v43, %s2488_s11 }
 0x3bc   : > { %v2443_v44 = vpop.eup %2442 }
 0x3bd   : > { %1194 = vrot.lane.b32.xlu1 %v2443_v44, %s2476_s9 }
 0x42d   : > { %v1202_v45 = vpop.permute.xlu0 %1201 }
 0x42e   : > { %v2662_v46 = vmul.f32 %v1202_v45, %v2599_v29  ;;  %v2196_v29 = vld [vmem:[%s2569_s14 + $0x10] sm:$0xff]  ;;  %s2491_s14 = smov 119  }
 0x42f   : > { %v1195_v49 = vpop.permute.xlu1 %1194  ;;  %2334 = vmatprep.mubr.msk.f32.mxu1 %vm418_vm0, %v2196_v29 }
 0x430   : > { %1229 = vperm.xlu0 %2426, %v2662_v46   ;;  %1233 = vperm.xlu1 %2427, %v2662_v46   ;;  %v2669_v50 = vmul.f32 %v1195_v49, %v2585_v18 }
 0x434   : > { %2429 = vset.pattern.permute.xlu0 %v2489_v47  ;;  %2428 = vset.pattern.permute.xlu1 %v2490_v48 }
 0x435   : > { %1241 = vperm.xlu0 %2429, %v2662_v46   ;;  %1237 = vperm.xlu1 %2428, %v2662_v46  }
 0x439   : > { %2432 = vset.pattern.permute.xlu0 %v2490_v48  ;;  %2430 = vset.pattern.permute.xlu1 %v2474_v3 }
 0x43a   : > { %1215 = vperm.xlu0 %2432, %v2669_v50   ;;  %1207 = vperm.xlu1 %2430, %v2669_v50  }
 0x43e   : > { %2431 = vset.pattern.permute.xlu1 %v2487_v42  ;;  %2434 = vset.pattern.permute.xlu0 %v2473_v1 }
 0x43f   : > { %1211 = vperm.xlu1 %2431, %v2669_v50   ;;  %1270 = vrot.lane.b32.xlu0 %v2197_v51, %s2478_s15 }
 0x443   : > { %2433 = vset.pattern.permute.xlu1 %v2489_v47  ;;  %1434 = vrot.lane.b32.xlu0 %v2196_v29, %s2479_s16 }
 0x444   : > { %1219 = vperm.xlu1 %2433, %v2669_v50  }
 0x448   : > { %2435 = vset.pattern.permute.xlu1 %v2473_v1 }
 0x4ab   : > { %v1230_v3 = vpop.permute.xlu0 %1229  ;;  %v1234_v18 = vpop.permute.xlu1 %1233 }
 0x4ac   : > { %v1244_v52 = vsel %vm414_vm1, %v1230_v3, %v2662_v46 }
 0x4ad   : > { %v1245_v53 = vsel %vm416_vm2, %v1244_v52, %v1234_v18  ;;  %v2202_v18 = vld [vmem:[%s2646_s28 + $0x10] sm:$0xff]  ;;  %v2203_v52 = vld [vmem:[%s2646_s28 + $0x18] sm:$0xff] }
 0x4b0   : > { %v1238_v54 = vpop.permute.xlu1 %1237  ;;  %v1242_v56 = vpop.permute.xlu0 %1241 }
 0x4b1   : > { %v1246_v55 = vsel %vm418_vm0, %v1245_v53, %v1238_v54 }
 0x4b2   : > { %v1247_v57 = vsel %vm420_vm3, %v1246_v55, %v2662_v46 }
 0x4b3   : > { %v1248_v58 = vsel %vm422_vm4, %v1247_v57, %v1242_v56 }
 0x4b4   : > { %1250 = vrot.lane.b32.xlu1 %v1248_v58, %s2480_s17 }
 0x4b5   : > { %v1208_v1 = vpop.permute.xlu1 %1207  ;;  %v1216_v62 = vpop.permute.xlu0 %1215 }
 0x4b6   : > { %v1222_v60 = vsel %vm414_vm1, %v1208_v1, %v2669_v50 }
 0x4b8   : > { %1268 = vrot.lane.b32.xlu1 %v2196_v29, %s2478_s15  ;;  %s2178_s15 = sshll.u32 %s2462_s21, 1 }
 0x4b9   : > { %v1271_v12 = vpop.permute.xlu0 %1270  ;;  %p381_p5 = scmp.lt.s32.totalorder %s2178_s15, 7 }
 0x4ba   : > { %v1212_v59 = vpop.permute.xlu1 %1211 }
 0x4bb   : > { %v1223_v61 = vsel %vm416_vm2, %v1222_v60, %v1212_v59  ;;  %s2769_s15 = smov (!%p381_p5, %s2178_s15), 7 }
 0x4bc   : > { %1436 = vrot.lane.b32.xlu1 %v2197_v51, %s2479_s16  ;;  %v1224_v63 = vsel %vm418_vm0, %v1223_v61, %v1216_v62 }
 0x4bd   : > { %v1225_v2 = vsel %vm420_vm3, %v1224_v63, %v2669_v50  ;;  %v1435_v13 = vpop.permute.xlu0 %1434 }
 0x4bf   : > { %v1220_v0 = vpop.permute.xlu1 %1219 }
 0x4c0   : > { %1522 = vrot.lane.b32.xlu1 %v2196_v29, %s2481_s18  ;;  %v1226_v4 = vsel %vm422_vm4, %v1225_v2, %v1220_v0 }
 0x526   : > { %v1251_v5 = vpop.permute.xlu1 %1250 }
 0x527   : > { %v1253_v6 = vsel %vm456_vm5, %v1226_v4, %v1251_v5 }
 0x528   : > { %1438 = vrot.lane.b32.xlu1 %v1253_v6, %s2482_s19  ;;  %1273 = vrot.lane.b32.xlu0 %v1253_v6, %s2483_s20 }
 0x529   : > { %2332 = vmatprep.subr.mxu1 %v1253_v6 }
 0x52a   : > { %2333 = vmatpush3.msra.mxu1 %v1253_v6  ;;  %v1269_v7 = vpop.permute.xlu1 %1268 }
 0x52b   : > { %2329 = vmatprep.mubr.msk.f32.mxu0 %vm418_vm0, %v1269_v7  ;;  %2335 = vmatmul.mubr.msk.f32.vlgmr.msra.gmra.mxu1 %vm418_vm0, %v2197_v51 }
 0x52c   : > { %1614 = vrot.lane.b32.xlu1 %v1253_v6, %s2484_s25  ;;  %1524 = vrot.lane.b32.xlu0 %v2197_v51, %s2481_s18 }
 0x52e   : > { %v1437_v8 = vpop.permute.xlu1 %1436 }
 0x530   : > { %1526 = vrot.lane.b32.xlu0 %v1253_v6, %s2485_s26  ;;  %1612 = vrot.lane.b32.xlu1 %v2197_v51, %s2486_s27 }
 0x532   : > { %v1523_v10 = vpop.permute.xlu1 %1522 }
 0x533   : > { %2344 = vmatprep.mubr.msk.f32.mxu1 %vm418_vm0, %v1523_v10 }
 0x534   : > { %1610 = vrot.lane.b32.xlu0 %v2196_v29, %s2486_s27  ;;  %1700 = vperm.xlu1 %2435, %v2198_v9  }
 0x538   : > { %1705 = vperm.xlu0 %2434, %v2199_v11   ;;  %1716 = vrot.lane.b32.xlu1 %v2200_v22, %s2479_s16 }
 0x53c   : > { %1718 = vrot.lane.b32.xlu0 %v2201_v23, %s2479_s16  ;;  %s2179_s16 = sshll.u32 %s2769_s15, 3 }
 0x53d   : > { %s387_s18 = scalar_lea.vmem %s2763_s6, %s2179_s16 }
 0x59a   : > { %v1274_v14 = vpop.permute.xlu0 %1273  ;;  %v1439_v15 = vpop.permute.xlu1 %1438 }
 0x59b   : > { %2327 = vmatprep.subr.mxu0 %v1274_v14 }
 0x59c   : > { %2328 = vmatpush3.msra.mxu0 %v1274_v14 }
 0x59d   : > { %2330 = vmatmul.mubr.msk.f32.vlgmr.msra.gmra.mxu0 %vm418_vm0, %v1271_v12  ;;  %2337 = vmatprep.subr.mxu0 %v1439_v15 }
 0x59e   : > { %v1525_v16 = vpop.permute.xlu0 %1524  ;;  %2338 = vmatpush3.msra.mxu0 %v1439_v15  ;;  %2339 = vmatprep.mubr.msk.f32.mxu0 %vm418_vm0, %v1435_v13  ;;  %v1615_v17 = vpop.permute.xlu1 %1614 }
 0x59f   : > { %2347 = vmatprep.subr.mxu0 %v1615_v17 }
 0x5a1   : > { %2340 = vmatmul.mubr.msk.f32.vlgmr.msra.gmra.mxu0 %vm418_vm0, %v1437_v8 }
 0x5a2   : > { %2348 = vmatpush3.msra.mxu0 %v1615_v17  ;;  %v1527_v19 = vpop.permute.xlu0 %1526  ;;  %v1613_v20 = vpop.permute.xlu1 %1612 }
 0x5a3   : > { %2342 = vmatprep.subr.mxu1 %v1527_v19 }
 0x5a4   : > { %2343 = vmatpush3.msra.mxu1 %v1527_v19 }
 0x5a5   : > { %2345 = vmatmul.mubr.msk.f32.vlgmr.msra.gmra.mxu1 %vm418_vm0, %v1525_v16 }
 0x5a6   : > { %v1611_v21 = vpop.permute.xlu0 %1610 }
 0x5a7   : > { %2349 = vmatprep.mubr.msk.f32.mxu0 %vm418_vm0, %v1611_v21 }
 0x5a8   : > { %2350 = vmatmul.mubr.msk.f32.vlgmr.msra.gmra.mxu0 %vm418_vm0, %v1613_v20 }
 0x5a9   : > { %2363 = vmatprep.mubr.msk.f32.mxu0 %vm456_vm5, %v2200_v22 }
 0x5af   : > { %v1701_v24 = vpop.permute.xlu1 %1700 }
 0x5b3   : > { %v1717_v28 = vpop.permute.xlu1 %1716  ;;  %v1706_v42 = vpop.permute.xlu0 %1705 }
 0x5b4   : > { %2356 = vmatprep.mubr.msk.f32.mxu1 %vm456_vm5, %v1717_v28 }
 0x5b7   : > { %v1719_v53 = vpop.permute.xlu0 %1718 }
 0x5eb   : > { %v2336_v26 = vpop.f32.mrf.mxu1 }
 0x5ed   : > { %v1425_v30 = vpop.f32.mrf.mxu1 }
 0x65d   : > { %v2331_v25 = vpop.f32.mrf.mxu0 }
 0x65e   : > { %v1431_v32 = vadd.f32 %v2336_v26, %v2331_v25 }
 0x65f   : > { %v1346_v27 = vpop.f32.mrf.mxu0 }
 0x660   : > { %v1426_v34 = vadd.f32 %v1425_v30, %v1346_v27 }
 0x661   : > { %v2341_v31 = vpop.f32.mrf.mxu0 }
 0x662   : > { %v1521_v35 = vadd.f32 %v2341_v31, %v1431_v32 }
 0x663   : > { %v1511_v33 = vpop.f32.mrf.mxu0 }
 0x664   : > { %v1520_v37 = vadd.f32 %v1511_v33, %v1426_v34 }
 0x665   : > { %v2346_v36 = vpop.f32.mrf.mxu1 }
 0x666   : > { %v1609_v38 = vadd.f32 %v2346_v36, %v1521_v35 }
 0x667   : > { %v1599_v39 = vpop.f32.mrf.mxu1 }
 0x668   : > { %v1608_v40 = vadd.f32 %v1599_v39, %v1520_v37  ;;  %v2351_v41 = vpop.f32.mrf.mxu0 }
 0x669   : > { %v1697_v43 = vadd.f32 %v2351_v41, %v1609_v38 }
 0x66a   : > { %v1687_v44 = vpop.f32.mrf.mxu0 }
 0x66b   : > { %v1709_v45 = vadd.f32 %v1706_v42, %v1697_v43  ;;  %v1696_v47 = vadd.f32 %v1687_v44, %v1608_v40 }
 0x66d   : > { %v1711_v48 = vmul.f32 0.01, %v1709_v45  ;;  %v1708_v49 = vadd.f32 %v1701_v24, %v1696_v47 }
 0x66f   : > { %v1713_v29 = vmax.f32 %v1709_v45, %v1711_v48  ;;  %v1710_v51 = vmul.f32 0.01, %v1708_v49 }
 0x671   : > { %v1712_v3 = vmax.f32 %v1708_v49, %v1710_v51  ;;  %1724 = vrot.lane.b32.xlu1 %v1713_v29, %s2483_s20  ;;  %2359 = vmatprep.subr.mxu0 %v1713_v29 }
 0x672   : > { %2360 = vmatpush3.msra.mxu0 %v1713_v29 }
 0x673   : > { %1722 = vrot.lane.b32.xlu0 %v1712_v3, %s2483_s20  ;;  %2361 = vmatprep.subr.mxu0 %v1712_v3 }
 0x674   : > { %2362 = vmatpush3.msra.mxu0 %v1712_v3 }
 0x675   : > { %1892 = vrot.lane.b32.xlu1 %v1713_v29, %s2482_s19  ;;  %2364 = vmatmul.mubr.msk.f32.vlgmr.msra.gmra.mxu0 %vm456_vm5, %v2201_v23 }
 0x677   : > { %1890 = vrot.lane.b32.xlu0 %v1712_v3, %s2482_s19 }
 0x679   : > { %1886 = vrot.lane.b32.xlu1 %v2200_v22, %s2486_s27 }
 0x67b   : > { %1888 = vrot.lane.b32.xlu0 %v2201_v23, %s2486_s27 }
 0x67d   : > { %1979 = vperm.xlu1 %2435, %v2202_v18  }
 0x67f   : > { %1984 = vperm.xlu0 %2434, %v2203_v52  }
 0x6e3   : > { %v1725_v54 = vpop.permute.xlu1 %1724 }
 0x6e4   : > { %2352 = vmatprep.subr.mxu1 %v1725_v54 }
 0x6e5   : > { %v1723_v55 = vpop.permute.xlu0 %1722  ;;  %2353 = vmatpush3.msra.mxu1 %v1725_v54 }
 0x6e6   : > { %2354 = vmatprep.subr.mxu1 %v1723_v55 }
 0x6e7   : > { %2355 = vmatpush3.msra.mxu1 %v1723_v55  ;;  %v1893_v56 = vpop.permute.xlu1 %1892 }
 0x6e8   : > { %2357 = vmatmul.mubr.msk.f32.vlgmr.msra.gmra.mxu1 %vm456_vm5, %v1719_v53  ;;  %2366 = vmatprep.subr.mxu1 %v1893_v56 }
 0x6e9   : > { %v1891_v57 = vpop.permute.xlu0 %1890  ;;  %2367 = vmatpush3.msra.mxu1 %v1893_v56 }
 0x6ea   : > { %2368 = vmatprep.subr.mxu1 %v1891_v57 }
 0x6eb   : > { %2369 = vmatpush3.msra.mxu1 %v1891_v57  ;;  %v1887_v58 = vpop.permute.xlu1 %1886 }
 0x6ec   : > { %2370 = vmatprep.mubr.msk.f32.mxu1 %vm456_vm5, %v1887_v58 }
 0x6ed   : > { %v1889_v1 = vpop.permute.xlu0 %1888 }
 0x6ee   : > { %2371 = vmatmul.mubr.msk.f32.vlgmr.msra.gmra.mxu1 %vm456_vm5, %v1889_v1 }
 0x6f8   : > { %v1980_v9 = vpop.permute.xlu1 %1979 }
 0x6fa   : > { %v1985_v5 = vpop.permute.xlu0 %1984 }
 0x735   : > { %v2365_v60 = vpop.f32.mrf.mxu0 }
 0x737   : > { %v1877_v62 = vpop.f32.mrf.mxu0 }
 0x7a8   : > { %v2358_v59 = vpop.f32.mrf.mxu1 }
 0x7a9   : > { %v1883_v63 = vadd.f32 %v2365_v60, %v2358_v59 }
 0x7aa   : > { %v1798_v61 = vpop.f32.mrf.mxu1 }
 0x7ab   : > { %v1878_v2 = vadd.f32 %v1877_v62, %v1798_v61 }
 0x7ae   : > { %v2372_v0 = vpop.f32.mrf.mxu1 }
 0x7af   : > { %v1976_v4 = vadd.f32 %v2372_v0, %v1883_v63 }
 0x7b0   : > { %v1966_v6 = vpop.f32.mrf.mxu1 }
 0x7b1   : > { %v1988_v7 = vadd.f32 %v1985_v5, %v1976_v4  ;;  %v1975_v8 = vadd.f32 %v1966_v6, %v1878_v2 }
 0x7b3   : > { %2444 = vtanh.f32 %v1988_v7  ;;  %v1987_v10 = vadd.f32 %v1980_v9, %v1975_v8 }
 0x7b5   : > { %2446 = vtanh.f32 %v1987_v10 }
 0x7c0   : > { %v2445_v11 = vpop.eup %2444 }
 0x7c1   : > { %2008 = vrot.lane.b32.xlu0 %v2445_v11, %s2488_s11 }
 0x7c2   : > { %v2447_v12 = vpop.eup %2446 }
 0x7c3   : > { %1992 = vrot.lane.b32.xlu1 %v2447_v12, %s2476_s9 }
 0x833   : > { %v2009_v15 = vpop.permute.xlu0 %2008 }
 0x834   : > { %v2011_v16 = vsub.f32 %v2669_v50, %v2009_v15 }
 0x835   : > { %v1993_v13 = vpop.permute.xlu1 %1992 }
 0x836   : > { %v1995_v14 = vadd.f32 %v1993_v13, %v2662_v46 }
 0x838   : > { %2000 = vrot.lane.b32.xlu0 %v1995_v14, %s2491_s14  ;;  %1997 = vrot.lane.b32.xlu1 %v1995_v14, %s2485_s26 }
 0x83c   : > { %2016 = vrot.lane.b32.xlu0 %v2011_v16, %s2491_s14  ;;  %2013 = vrot.lane.b32.xlu1 %v2011_v16, %s2485_s26 }
 0x8aa   : > { %v2001_v46 = vpop.permute.xlu0 %2000  ;;  %v1998_v17 = vpop.permute.xlu1 %1997 }
 0x8ab   : > { %v2004_v19 = vsel %vm2003_vm6, %v1998_v17, %v2001_v46 }
 0x8ac   : > { %2006 = vst.msk [vmem:[%s387_s18] sm:$0xff] %vm2005_vm7, %v2004_v19 }
 0x8ae   : > { %v2017_v20 = vpop.permute.xlu0 %2016  ;;  %v2014_v21 = vpop.permute.xlu1 %2013 }
 0x8af   : > { %v2019_v50 = vsel %vm2003_vm6, %v2014_v21, %v2017_v20 }
 0x8b0   : > { %2220 = vst.msk [vmem:[%s387_s18 + $0x8] sm:$0xff] %vm2005_vm7, %v2019_v50 }
 0x8b1 PF: > { %s16_s23 = sadd.s32 1, %s2470_s23   ;;  %s2764_s21 = smov %s2466_s22 }
 0x8b2   : > { %p13_p6 = scmp.ge.s32.totalorder %s16_s23, 6   ;;  %s2765_s22 = smov %s2767_s24 }
 0x8b4   :  { %15 = sbr.rel (!%p13_p6) target bundleno = 2 (0x2), region = 94 }

</bundles_post_ra>
